<compile_context>
chip_gen: v6e
topology: v6e:2x2x1
jax: 0.10.0
libtpu: 0.0.40
codegen_flags: <defaults>
</compile_context>

<pallas_src>
import jax
import jax.numpy as jnp
import numpy as np
from jax.experimental import pallas as pl
from jax.experimental.pallas import tpu as pltpu

_NEG_SLOPE = 0.01   # nn.LeakyReLU default
_EPS = 1e-5         # nn.InstanceNorm3d default


# ----------------------------- fused cell kernel ---------------------------

def _make_cell_kernel(C, Do, Ho, Wo, L):
    Dp, Hp, Wp = Do + 2, Ho + 2, Wo + 2
    sy, sz = Wp, Hp * Wp
    inv_cnt = 1.0 / float(Do * Ho * Wo)
    # Centered 3x3x3 tap offsets in the flattened padded-volume ("slab") frame.
    shifts = [dz * sz + dy * sy + dx
              for dz in (-1, 0, 1) for dy in (-1, 0, 1) for dx in (-1, 0, 1)]

    def kernel(mask_ref, pool_ref, wfr_ref, gfr_ref, bfr_ref,
               ws1_ref, w12_ref, w03_ref, xab_ref, xs1_ref,
               out_ref, col_ref):
        maskb = mask_ref[...] > 0.5                    # (1, L) interior mask

        def leaky(x):
            return jnp.where(x > 0, x, _NEG_SLOPE * x)

        def interior(v):
            # Zero everything outside the Do*Ho*Wo interior (incl. the zero
            # padding ring the next conv/pool relies on).
            return jnp.where(maskb, v, 0.0)

        def fill_col(x):
            # col[t*C + ci, p] = x[ci, p + shifts[t]] for every interior p.
            # Out-of-window columns keep their zero init; they only feed
            # non-interior output lanes, which are masked away.
            for t, s in enumerate(shifts):
                r0 = t * C
                if s >= 0:
                    col_ref[r0:r0 + C, 0:L - s] = x[:, s:L]
                else:
                    a = -s
                    col_ref[r0:r0 + C, a:L] = x[:, 0:L - a]

        def inst_norm(r, gamma=None, beta=None):
            # InstanceNorm3d over the Do*Ho*Wo interior lanes (biased var).
            rm = jnp.where(maskb, r, 0.0)
            mean = jnp.sum(rm, axis=-1, keepdims=True) * inv_cnt
            var = jnp.sum(rm * rm, axis=-1, keepdims=True) * inv_cnt - mean * mean
            y = (r - mean) * jax.lax.rsqrt(var + _EPS)
            if gamma is not None:
                y = y * gamma + beta
            return y

        def conv3_bn(slab, w_ref):
            # LeakyReLU -> 3x3x3 conv (one (C,27C) @ (27C,L) MXU dot over the
            # in-VMEM im2col) -> InstanceNorm3d(affine=False).
            fill_col(leaky(slab))
            r = jnp.dot(w_ref[...], col_ref[...],
                        preferred_element_type=jnp.float32)
            return inst_norm(r)

        def pool3(slab):
            # AvgPool3d(3, stride=1, pad=1), count_include_pad=True: same
            # im2col contracted with a constant (C, 27C) averaging matrix.
            fill_col(slab)
            return jnp.dot(pool_ref[...], col_ref[...],
                           preferred_element_type=jnp.float32)

        # Zero the im2col scratch once; fill_col rewrites the same windows
        # every time, so out-of-window columns stay zero for the whole step.
        col_ref[...] = jnp.zeros((27 * C, L), jnp.float32)

        # Both FactorizedReduce(s0) edges: one (2C,2C)@(2C,L) dot + affine IN.
        fr = jnp.dot(wfr_ref[...], leaky(xab_ref[0]),
                     preferred_element_type=jnp.float32)
        fr = inst_norm(fr, gfr_ref[...], bfr_ref[...])
        fr0, fr1 = fr[:C, :], fr[C:, :]

        # DAG; every node stays resident as a (C, L) slab.
        node0 = interior(fr0 + conv3_bn(xs1_ref[0], ws1_ref))   # FR0 + dil-conv(s1)
        node1 = interior(fr1 + pool3(node0))                    # FR1 + avgpool(n0)
        node2 = interior(node0 + conv3_bn(node1, w12_ref))      # id(n0) + conv(n1)
        node3 = interior(conv3_bn(node0, w03_ref) + pool3(node2))

        out_ref[0, 0:C, :] = node1.astype(out_ref.dtype)
        out_ref[0, C:2 * C, :] = node2.astype(out_ref.dtype)
        out_ref[0, 2 * C:3 * C, :] = node3.astype(out_ref.dtype)

    return kernel


# ------------------------------ ReductionCell ------------------------------

def reduction_cell(params, s0, s1):
    N, C, D, H, W = s0.shape
    assert s1.shape == s0.shape
    assert C % 2 == 0 and D % 2 == 0 and H % 2 == 0 and W % 2 == 0
    Do, Ho, Wo = D // 2, H // 2, W // 2
    Dp, Hp, Wp = Do + 2, Ho + 2, Wo + 2
    SP = Dp * Hp * Wp
    L = ((SP + 127) // 128) * 128          # lane-dense slab width
    f32 = jnp.float32

    def to_slab(v):
        # (N, c, Do, Ho, Wo) -> zero-ringed (Dp,Hp,Wp) volume flattened onto
        # the lane axis, padded out to L lanes (all XLA glue, one-shot).
        vp = jnp.pad(v, ((0, 0), (0, 0), (1, 1), (1, 1), (1, 1)))
        vf = vp.reshape(v.shape[0], v.shape[1], SP)
        return jnp.pad(vf, ((0, 0), (0, 0), (0, L - SP))).astype(f32)

    # FactorizedReduce stride-2 sampling: even grid + odd-shifted grid.
    xab = to_slab(jnp.concatenate(
        [s0[:, :, ::2, ::2, ::2], s0[:, :, 1::2, 1::2, 1::2]], axis=1))
    # edge_s1_0 (k=3, s=2, p=2, d=2): every tap hits an even padded index, so
    # it reduces to a dense valid 3x3x3 conv on the even-subsampled,
    # zero-ringed volume (leaky(0) == 0 keeps pad-then-relu exact).
    xs1 = to_slab(s1[:, :, ::2, ::2, ::2])

    mask3 = jnp.zeros((Dp, Hp, Wp), f32).at[1:1 + Do, 1:1 + Ho, 1:1 + Wo].set(1.0)
    mask = jnp.pad(mask3.reshape(1, SP), ((0, 0), (0, L - SP)))

    pool_mat = jnp.tile(jnp.eye(C, dtype=f32), (1, 27)) / 27.0       # (C, 27C)

    def fr_block(p):      # block-diagonal [[W1, 0], [0, W2]] : (C, 2C)
        w1 = p[0].reshape(C // 2, C).astype(f32)
        w2 = p[1].reshape(C // 2, C).astype(f32)
        z = jnp.zeros((C // 2, C), f32)
        return jnp.concatenate([jnp.concatenate([w1, z], axis=1),
                                jnp.concatenate([z, w2], axis=1)], axis=0)

    wfr = jnp.concatenate([fr_block(params["edge_s0_0"]),
                           fr_block(params["edge_s0_1"])], axis=0)   # (2C, 2C)
    gfr = jnp.concatenate([params["edge_s0_0"][2],
                           params["edge_s0_1"][2]]).reshape(2 * C, 1).astype(f32)
    bfr = jnp.concatenate([params["edge_s0_0"][3],
                           params["edge_s0_1"][3]]).reshape(2 * C, 1).astype(f32)

    def conv_mat(w):      # (C, C, 3,3,3) -> (C, 27C); columns = (kz, ky, kx, ci)
        return jnp.transpose(w, (0, 2, 3, 4, 1)).reshape(C, 27 * C).astype(f32)

    ws1 = conv_mat(params["edge_s1_0"])
    w12 = conv_mat(params["edge_1_2"])
    w03 = conv_mat(params["edge_0_3"])

    cspec = lambda shape: pl.BlockSpec(shape, lambda n: (0,) * len(shape))
    bspec = lambda c: pl.BlockSpec((1, c, L), lambda n: (n, 0, 0))

    out_slab = pl.pallas_call(
        _make_cell_kernel(C, Do, Ho, Wo, L),
        grid=(N,),
        in_specs=[
            cspec((1, L)),            # interior mask
            cspec((C, 27 * C)),       # avg-pool contraction matrix
            cspec((2 * C, 2 * C)),    # both FactorizedReduce 1x1 convs
            cspec((2 * C, 1)),        # FR InstanceNorm gamma
            cspec((2 * C, 1)),        # FR InstanceNorm beta
            cspec((C, 27 * C)),       # edge_s1_0 conv weights (tap-major)
            cspec((C, 27 * C)),       # edge_1_2 conv weights
            cspec((C, 27 * C)),       # edge_0_3 conv weights
            bspec(2 * C),             # FR input slabs (even | odd samples)
            bspec(C),                 # edge_s1_0 input slab
        ],
        out_specs=pl.BlockSpec((1, 3 * C, L), lambda n: (n, 0, 0)),
        out_shape=jax.ShapeDtypeStruct((N, 3 * C, L), s0.dtype),
        scratch_shapes=[pltpu.VMEM((27 * C, L), jnp.float32)],   # im2col
        compiler_params=pltpu.CompilerParams(
            dimension_semantics=("parallel",),
            vmem_limit_bytes=32 * 1024 * 1024),
    )(mask, pool_mat, wfr, gfr, bfr, ws1, w12, w03, xab, xs1)

    out = out_slab[:, :, :SP].reshape(N, 3 * C, Dp, Hp, Wp)
    return out[:, :, 1:1 + Do, 1:1 + Ho, 1:1 + Wo]


# ------------------------- pure-JAX reference (check) -----------------------

def _ref_leaky(x):
    return jnp.where(x > 0, x, _NEG_SLOPE * x)


def _ref_inorm(x, gamma=None, beta=None):
    mean = jnp.mean(x, axis=(2, 3, 4), keepdims=True)
    var = jnp.mean(jnp.square(x - mean), axis=(2, 3, 4), keepdims=True)
    y = (x - mean) / jnp.sqrt(var + _EPS)
    if gamma is not None:
        y = y * gamma.reshape(1, -1, 1, 1, 1) + beta.reshape(1, -1, 1, 1, 1)
    return y


def _ref_conv(x, w, stride, padding, dilation):
    return jax.lax.conv_general_dilated(
        x, w, window_strides=(stride,) * 3, padding=[(padding, padding)] * 3,
        rhs_dilation=(dilation,) * 3,
        dimension_numbers=("NCDHW", "OIDHW", "NCDHW"))


def _ref_factorized_reduce(x, p):
    w1, w2, gamma, beta = p
    xr = _ref_leaky(x)
    o = jnp.concatenate([_ref_conv(xr, w1, 2, 0, 1),
                         _ref_conv(xr[:, :, 1:, 1:, 1:], w2, 2, 0, 1)], axis=1)
    return _ref_inorm(o, gamma, beta)


def _ref_relu_conv_bn(x, w, stride, padding, dilation):
    return _ref_inorm(_ref_conv(_ref_leaky(x), w, stride, padding, dilation))


def _ref_avg_pool3(x):
    s = jax.lax.reduce_window(x, 0.0, jax.lax.add, (1, 1, 3, 3, 3),
                              (1, 1, 1, 1, 1),
                              [(0, 0), (0, 0), (1, 1), (1, 1), (1, 1)])
    return s / 27.0


def reduction_cell_ref(params, s0, s1):
    node0 = (_ref_factorized_reduce(s0, params["edge_s0_0"])
             + _ref_relu_conv_bn(s1, params["edge_s1_0"], 2, 2, 2))
    node1 = (_ref_factorized_reduce(s0, params["edge_s0_1"])
             + _ref_avg_pool3(node0))
    node2 = node0 + _ref_relu_conv_bn(node1, params["edge_1_2"], 1, 1, 1)
    node3 = (_ref_relu_conv_bn(node0, params["edge_0_3"], 1, 1, 1)
             + _ref_avg_pool3(node2))
    return jnp.concatenate([node1, node2, node3], axis=1)


# ------------------------------- params init -------------------------------

def init_params(key, C):
    assert C % 2 == 0
    half = C // 2

    def conv_w(k, cout, cin, ks):
        fan_in = cin * ks ** 3
        return (jax.random.normal(k, (cout, cin, ks, ks, ks), jnp.float32)
                / jnp.sqrt(float(fan_in)))

    keys = jax.random.split(key, 7)
    # InstanceNorm3d affine params default-initialize to gamma=1, beta=0.
    return {
        "edge_s0_0": (conv_w(keys[0], half, C, 1), conv_w(keys[1], half, C, 1),
                      jnp.ones((C,), jnp.float32), jnp.zeros((C,), jnp.float32)),
        "edge_s1_0": conv_w(keys[2], C, C, 3),
        "edge_s0_1": (conv_w(keys[3], half, C, 1), conv_w(keys[4], half, C, 1),
                      jnp.ones((C,), jnp.float32), jnp.zeros((C,), jnp.float32)),
        "edge_1_2": conv_w(keys[5], C, C, 3),
        "edge_0_3": conv_w(keys[6], C, C, 3),
    }


# ----------------------------------- main -----------------------------------

if __name__ == "__main__":
    key = jax.random.PRNGKey(0)
    k_p, k_s0, k_s1 = jax.random.split(key, 3)

    N, C, D, H, W = 2, 4, 8, 8, 8
    params = init_params(k_p, C)
    s0 = jax.random.normal(k_s0, (N, C, D, H, W), jnp.float32)
    s1 = jax.random.normal(k_s1, (N, C, D, H, W), jnp.float32)

    out = jax.block_until_ready(jax.jit(reduction_cell)(params, s0, s1))

    expected_shape = (N, 3 * C, D // 2, H // 2, W // 2)
    assert out.shape == expected_shape, (out.shape, expected_shape)
    assert out.dtype == jnp.float32
    assert bool(jnp.all(jnp.isfinite(out)))

    # Numerics check vs a pure-JAX implementation of the PyTorch module.
    # Loose tolerance accommodates MXU default-precision f32 matmuls vs XLA's
    # conv path; real layout/indexing bugs would show up as O(1) differences.
    ref = jax.block_until_ready(jax.jit(reduction_cell_ref)(params, s0, s1))
    np.testing.assert_allclose(np.asarray(out), np.asarray(ref),
                               atol=5e-2, rtol=5e-2)
    print("KERNEL_OK")
</pallas_src>

<mosaic_0001>
module attributes {stable_mosaic.version = 11 : i64} {
  func.func @kernel(%arg0: i32, %arg1: memref<1x256xf32, #tpu.memory_space<vmem>>, %arg2: memref<4x108xf32, #tpu.memory_space<vmem>>, %arg3: memref<8x8xf32, #tpu.memory_space<vmem>>, %arg4: memref<8x1xf32, #tpu.memory_space<vmem>>, %arg5: memref<8x1xf32, #tpu.memory_space<vmem>>, %arg6: memref<4x108xf32, #tpu.memory_space<vmem>>, %arg7: memref<4x108xf32, #tpu.memory_space<vmem>>, %arg8: memref<4x108xf32, #tpu.memory_space<vmem>>, %arg9: memref<1x8x256xf32, #tpu.memory_space<vmem>>, %arg10: memref<1x4x256xf32, #tpu.memory_space<vmem>>, %arg11: memref<1x12x256xf32, #tpu.memory_space<vmem>>, %arg12: memref<108x256xf32, #tpu.memory_space<vmem>>) attributes {dimension_semantics = [#tpu.dimension_semantics<parallel>], iteration_bounds = array<i64: 2>, scalar_prefetch = 0 : i64, scratch_operands = 1 : i64, tpu.core_type = #tpu.core_type<tc>, window_params = [{pipeline_mode = #tpu.pipeline_mode<synchronous>, transform_indices = @transform_0, window_bounds = array<i64: 1, 256>}, {pipeline_mode = #tpu.pipeline_mode<synchronous>, transform_indices = @transform_1, window_bounds = array<i64: 4, 108>}, {pipeline_mode = #tpu.pipeline_mode<synchronous>, transform_indices = @transform_2, window_bounds = array<i64: 8, 8>}, {pipeline_mode = #tpu.pipeline_mode<synchronous>, transform_indices = @transform_3, window_bounds = array<i64: 8, 1>}, {pipeline_mode = #tpu.pipeline_mode<synchronous>, transform_indices = @transform_4, window_bounds = array<i64: 8, 1>}, {pipeline_mode = #tpu.pipeline_mode<synchronous>, transform_indices = @transform_5, window_bounds = array<i64: 4, 108>}, {pipeline_mode = #tpu.pipeline_mode<synchronous>, transform_indices = @transform_6, window_bounds = array<i64: 4, 108>}, {pipeline_mode = #tpu.pipeline_mode<synchronous>, transform_indices = @transform_7, window_bounds = array<i64: 4, 108>}, {transform_indices = @transform_8, window_bounds = array<i64: 1, 8, 256>}, {transform_indices = @transform_9, window_bounds = array<i64: 1, 4, 256>}, {transform_indices = @transform_10, window_bounds = array<i64: 1, 12, 256>}]} {
    %c0 = arith.constant 0 : index
    %c0_0 = arith.constant 0 : index
    %0 = vector.load %arg1[%c0, %c0_0] : memref<1x256xf32, #tpu.memory_space<vmem>>, vector<1x256xf32>
    %cst = arith.constant 5.000000e-01 : f32
    %1 = vector.broadcast %cst : f32 to vector<1x256xf32>
    %2 = arith.cmpf ogt, %0, %1 : vector<1x256xf32>
    %cst_1 = arith.constant 0.000000e+00 : f32
    %3 = vector.broadcast %cst_1 : f32 to vector<108x256xf32>
    %c0_2 = arith.constant 0 : index
    %c0_3 = arith.constant 0 : index
    %4 = vector.load %arg12[%c0_2, %c0_3] : memref<108x256xf32, #tpu.memory_space<vmem>>, vector<108x256xf32>
    tpu.vector_store %arg12[%c0_2, %c0_3], %3 {strides = array<i32>} : memref<108x256xf32, #tpu.memory_space<vmem>>, vector<108x256xf32>,
    %c0_4 = arith.constant 0 : index
    %c0_5 = arith.constant 0 : index
    %5 = vector.load %arg3[%c0_4, %c0_5] : memref<8x8xf32, #tpu.memory_space<vmem>>, vector<8x8xf32>
    %c0_6 = arith.constant 0 : index
    %c0_7 = arith.constant 0 : index
    %c0_8 = arith.constant 0 : index
    %6 = vector.load %arg9[%c0_6, %c0_7, %c0_8] : memref<1x8x256xf32, #tpu.memory_space<vmem>>, vector<1x8x256xf32>
    %7 = vector.shape_cast %6 : vector<1x8x256xf32> to vector<8x256xf32>
    %cst_9 = arith.constant 0.000000e+00 : f32
    %8 = vector.broadcast %cst_9 : f32 to vector<8x256xf32>
    %9 = arith.cmpf ogt, %7, %8 : vector<8x256xf32>
    %cst_10 = arith.constant 0.00999999977 : f32
    %10 = vector.broadcast %cst_10 : f32 to vector<8x256xf32>
    %11 = arith.mulf %10, %7 : vector<8x256xf32>
    %12 = arith.select %9, %7, %11 : vector<8x256xi1>, vector<8x256xf32>
    %cst_11 = arith.constant dense<0.000000e+00> : vector<8x256xf32>
    %13 = tpu.matmul %5, %12, %cst_11 {dimension_numbers = #tpu.dot_dimension_numbers<[1], [0], [0], [1], [0, 0, 1, 1], [], []>} : vector<8x8xf32>, vector<8x256xf32>, vector<8x256xf32> -> vector<8x256xf32>
    %c0_12 = arith.constant 0 : index
    %c0_13 = arith.constant 0 : index
    %14 = vector.load %arg4[%c0_12, %c0_13] : memref<8x1xf32, #tpu.memory_space<vmem>>, vector<8x1xf32>
    %c0_14 = arith.constant 0 : index
    %c0_15 = arith.constant 0 : index
    %15 = vector.load %arg5[%c0_14, %c0_15] : memref<8x1xf32, #tpu.memory_space<vmem>>, vector<8x1xf32>
    %cst_16 = arith.constant 0.000000e+00 : f32
    %16 = vector.shape_cast %2 : vector<1x256xi1> to vector<1x256xi1>
    %17 = vector.broadcast %16 : vector<1x256xi1> to vector<8x256xi1>
    %18 = vector.broadcast %cst_16 : f32 to vector<8x256xf32>
    %19 = arith.select %17, %13, %18 : vector<8x256xi1>, vector<8x256xf32>
    %cst_17 = arith.constant dense<0.000000e+00> : vector<8xf32>
    %20 = vector.multi_reduction <add>, %19, %cst_17 [1] : vector<8x256xf32> to vector<8xf32>
    %21 = vector.shape_cast %20 : vector<8xf32> to vector<8x1xf32>
    %cst_18 = arith.constant 1.562500e-02 : f32
    %22 = vector.broadcast %cst_18 : f32 to vector<8x1xf32>
    %23 = arith.mulf %21, %22 : vector<8x1xf32>
    %24 = arith.mulf %19, %19 : vector<8x256xf32>
    %cst_19 = arith.constant dense<0.000000e+00> : vector<8xf32>
    %25 = vector.multi_reduction <add>, %24, %cst_19 [1] : vector<8x256xf32> to vector<8xf32>
    %26 = vector.shape_cast %25 : vector<8xf32> to vector<8x1xf32>
    %cst_20 = arith.constant 1.562500e-02 : f32
    %27 = vector.broadcast %cst_20 : f32 to vector<8x1xf32>
    %28 = arith.mulf %26, %27 : vector<8x1xf32>
    %29 = arith.mulf %23, %23 : vector<8x1xf32>
    %30 = arith.subf %28, %29 : vector<8x1xf32>
    %31 = vector.broadcast %23 : vector<8x1xf32> to vector<8x256xf32>
    %32 = arith.subf %13, %31 : vector<8x256xf32>
    %cst_21 = arith.constant 9.99999974E-6 : f32
    %33 = vector.broadcast %cst_21 : f32 to vector<8x1xf32>
    %34 = arith.addf %30, %33 : vector<8x1xf32>
    %35 = math.rsqrt %34 : vector<8x1xf32>
    %36 = vector.broadcast %35 : vector<8x1xf32> to vector<8x256xf32>
    %37 = arith.mulf %32, %36 : vector<8x256xf32>
    %38 = vector.broadcast %14 : vector<8x1xf32> to vector<8x256xf32>
    %39 = arith.mulf %37, %38 : vector<8x256xf32>
    %40 = vector.broadcast %15 : vector<8x1xf32> to vector<8x256xf32>
    %41 = arith.addf %39, %40 : vector<8x256xf32>
    %42 = vector.extract_strided_slice %41 {offsets = [0, 0], sizes = [4, 256], strides = [1, 1]} : vector<8x256xf32> to vector<4x256xf32>
    %43 = vector.extract_strided_slice %41 {offsets = [4, 0], sizes = [4, 256], strides = [1, 1]} : vector<8x256xf32> to vector<4x256xf32>
    %c0_22 = arith.constant 0 : index
    %c0_23 = arith.constant 0 : index
    %c0_24 = arith.constant 0 : index
    %44 = vector.load %arg10[%c0_22, %c0_23, %c0_24] : memref<1x4x256xf32, #tpu.memory_space<vmem>>, vector<1x4x256xf32>
    %45 = vector.shape_cast %44 : vector<1x4x256xf32> to vector<4x256xf32>
    %cst_25 = arith.constant 0.000000e+00 : f32
    %46 = vector.broadcast %cst_25 : f32 to vector<4x256xf32>
    %47 = arith.cmpf ogt, %45, %46 : vector<4x256xf32>
    %cst_26 = arith.constant 0.00999999977 : f32
    %48 = vector.broadcast %cst_26 : f32 to vector<4x256xf32>
    %49 = arith.mulf %48, %45 : vector<4x256xf32>
    %50 = arith.select %47, %45, %49 : vector<4x256xi1>, vector<4x256xf32>
    %51 = vector.extract_strided_slice %50 {offsets = [0, 0], sizes = [4, 213], strides = [1, 1]} : vector<4x256xf32> to vector<4x213xf32>
    %c0_27 = arith.constant 0 : index
    %c43 = arith.constant 43 : index
    %52 = vector.load %arg12[%c0_27, %c43] : memref<108x256xf32, #tpu.memory_space<vmem>>, vector<4x213xf32>
    tpu.vector_store %arg12[%c0_27, %c43], %51 {strides = array<i32>} : memref<108x256xf32, #tpu.memory_space<vmem>>, vector<4x213xf32>,
    %53 = vector.extract_strided_slice %50 {offsets = [0, 0], sizes = [4, 214], strides = [1, 1]} : vector<4x256xf32> to vector<4x214xf32>
    %c4 = arith.constant 4 : index
    %c42 = arith.constant 42 : index
    %54 = vector.load %arg12[%c4, %c42] : memref<108x256xf32, #tpu.memory_space<vmem>>, vector<4x214xf32>
    tpu.vector_store %arg12[%c4, %c42], %53 {strides = array<i32>} : memref<108x256xf32, #tpu.memory_space<vmem>>, vector<4x214xf32>,
    %55 = vector.extract_strided_slice %50 {offsets = [0, 0], sizes = [4, 215], strides = [1, 1]} : vector<4x256xf32> to vector<4x215xf32>
    %c8 = arith.constant 8 : index
    %c41 = arith.constant 41 : index
    %56 = vector.load %arg12[%c8, %c41] : memref<108x256xf32, #tpu.memory_space<vmem>>, vector<4x215xf32>
    tpu.vector_store %arg12[%c8, %c41], %55 {strides = array<i32>} : memref<108x256xf32, #tpu.memory_space<vmem>>, vector<4x215xf32>,
    %57 = vector.extract_strided_slice %50 {offsets = [0, 0], sizes = [4, 219], strides = [1, 1]} : vector<4x256xf32> to vector<4x219xf32>
    %c12 = arith.constant 12 : index
    %c37 = arith.constant 37 : index
    %58 = vector.load %arg12[%c12, %c37] : memref<108x256xf32, #tpu.memory_space<vmem>>, vector<4x219xf32>
    tpu.vector_store %arg12[%c12, %c37], %57 {strides = array<i32>} : memref<108x256xf32, #tpu.memory_space<vmem>>, vector<4x219xf32>,
    %59 = vector.extract_strided_slice %50 {offsets = [0, 0], sizes = [4, 220], strides = [1, 1]} : vector<4x256xf32> to vector<4x220xf32>
    %c16 = arith.constant 16 : index
    %c36 = arith.constant 36 : index
    %60 = vector.load %arg12[%c16, %c36] : memref<108x256xf32, #tpu.memory_space<vmem>>, vector<4x220xf32>
    tpu.vector_store %arg12[%c16, %c36], %59 {strides = array<i32>} : memref<108x256xf32, #tpu.memory_space<vmem>>, vector<4x220xf32>,
    %61 = vector.extract_strided_slice %50 {offsets = [0, 0], sizes = [4, 221], strides = [1, 1]} : vector<4x256xf32> to vector<4x221xf32>
    %c20 = arith.constant 20 : index
    %c35 = arith.constant 35 : index
    %62 = vector.load %arg12[%c20, %c35] : memref<108x256xf32, #tpu.memory_space<vmem>>, vector<4x221xf32>
    tpu.vector_store %arg12[%c20, %c35], %61 {strides = array<i32>} : memref<108x256xf32, #tpu.memory_space<vmem>>, vector<4x221xf32>,
    %63 = vector.extract_strided_slice %50 {offsets = [0, 0], sizes = [4, 225], strides = [1, 1]} : vector<4x256xf32> to vector<4x225xf32>
    %c24 = arith.constant 24 : index
    %c31 = arith.constant 31 : index
    %64 = vector.load %arg12[%c24, %c31] : memref<108x256xf32, #tpu.memory_space<vmem>>, vector<4x225xf32>
    tpu.vector_store %arg12[%c24, %c31], %63 {strides = array<i32>} : memref<108x256xf32, #tpu.memory_space<vmem>>, vector<4x225xf32>,
    %65 = vector.extract_strided_slice %50 {offsets = [0, 0], sizes = [4, 226], strides = [1, 1]} : vector<4x256xf32> to vector<4x226xf32>
    %c28 = arith.constant 28 : index
    %c30 = arith.constant 30 : index
    %66 = vector.load %arg12[%c28, %c30] : memref<108x256xf32, #tpu.memory_space<vmem>>, vector<4x226xf32>
    tpu.vector_store %arg12[%c28, %c30], %65 {strides = array<i32>} : memref<108x256xf32, #tpu.memory_space<vmem>>, vector<4x226xf32>,
    %67 = vector.extract_strided_slice %50 {offsets = [0, 0], sizes = [4, 227], strides = [1, 1]} : vector<4x256xf32> to vector<4x227xf32>
    %c32 = arith.constant 32 : index
    %c29 = arith.constant 29 : index
    %68 = vector.load %arg12[%c32, %c29] : memref<108x256xf32, #tpu.memory_space<vmem>>, vector<4x227xf32>
    tpu.vector_store %arg12[%c32, %c29], %67 {strides = array<i32>} : memref<108x256xf32, #tpu.memory_space<vmem>>, vector<4x227xf32>,
    %69 = vector.extract_strided_slice %50 {offsets = [0, 0], sizes = [4, 249], strides = [1, 1]} : vector<4x256xf32> to vector<4x249xf32>
    %c36_28 = arith.constant 36 : index
    %c7 = arith.constant 7 : index
    %70 = vector.load %arg12[%c36_28, %c7] : memref<108x256xf32, #tpu.memory_space<vmem>>, vector<4x249xf32>
    tpu.vector_store %arg12[%c36_28, %c7], %69 {strides = array<i32>} : memref<108x256xf32, #tpu.memory_space<vmem>>, vector<4x249xf32>,
    %71 = vector.extract_strided_slice %50 {offsets = [0, 0], sizes = [4, 250], strides = [1, 1]} : vector<4x256xf32> to vector<4x250xf32>
    %c40 = arith.constant 40 : index
    %c6 = arith.constant 6 : index
    %72 = vector.load %arg12[%c40, %c6] : memref<108x256xf32, #tpu.memory_space<vmem>>, vector<4x250xf32>
    tpu.vector_store %arg12[%c40, %c6], %71 {strides = array<i32>} : memref<108x256xf32, #tpu.memory_space<vmem>>, vector<4x250xf32>,
    %73 = vector.extract_strided_slice %50 {offsets = [0, 0], sizes = [4, 251], strides = [1, 1]} : vector<4x256xf32> to vector<4x251xf32>
    %c44 = arith.constant 44 : index
    %c5 = arith.constant 5 : index
    %74 = vector.load %arg12[%c44, %c5] : memref<108x256xf32, #tpu.memory_space<vmem>>, vector<4x251xf32>
    tpu.vector_store %arg12[%c44, %c5], %73 {strides = array<i32>} : memref<108x256xf32, #tpu.memory_space<vmem>>, vector<4x251xf32>,
    %75 = vector.extract_strided_slice %50 {offsets = [0, 0], sizes = [4, 255], strides = [1, 1]} : vector<4x256xf32> to vector<4x255xf32>
    %c48 = arith.constant 48 : index
    %c1 = arith.constant 1 : index
    %76 = vector.load %arg12[%c48, %c1] : memref<108x256xf32, #tpu.memory_space<vmem>>, vector<4x255xf32>
    tpu.vector_store %arg12[%c48, %c1], %75 {strides = array<i32>} : memref<108x256xf32, #tpu.memory_space<vmem>>, vector<4x255xf32>,
    %c52 = arith.constant 52 : index
    %c0_29 = arith.constant 0 : index
    %77 = vector.load %arg12[%c52, %c0_29] : memref<108x256xf32, #tpu.memory_space<vmem>>, vector<4x256xf32>
    tpu.vector_store %arg12[%c52, %c0_29], %50 {strides = array<i32>} : memref<108x256xf32, #tpu.memory_space<vmem>>, vector<4x256xf32>,
    %78 = vector.extract_strided_slice %50 {offsets = [0, 1], sizes = [4, 255], strides = [1, 1]} : vector<4x256xf32> to vector<4x255xf32>
    %c56 = arith.constant 56 : index
    %c0_30 = arith.constant 0 : index
    %79 = vector.load %arg12[%c56, %c0_30] : memref<108x256xf32, #tpu.memory_space<vmem>>, vector<4x255xf32>
    tpu.vector_store %arg12[%c56, %c0_30], %78 {strides = array<i32>} : memref<108x256xf32, #tpu.memory_space<vmem>>, vector<4x255xf32>,
    %80 = vector.extract_strided_slice %50 {offsets = [0, 5], sizes = [4, 251], strides = [1, 1]} : vector<4x256xf32> to vector<4x251xf32>
    %c60 = arith.constant 60 : index
    %c0_31 = arith.constant 0 : index
    %81 = vector.load %arg12[%c60, %c0_31] : memref<108x256xf32, #tpu.memory_space<vmem>>, vector<4x251xf32>
    tpu.vector_store %arg12[%c60, %c0_31], %80 {strides = array<i32>} : memref<108x256xf32, #tpu.memory_space<vmem>>, vector<4x251xf32>,
    %82 = vector.extract_strided_slice %50 {offsets = [0, 6], sizes = [4, 250], strides = [1, 1]} : vector<4x256xf32> to vector<4x250xf32>
    %c64 = arith.constant 64 : index
    %c0_32 = arith.constant 0 : index
    %83 = vector.load %arg12[%c64, %c0_32] : memref<108x256xf32, #tpu.memory_space<vmem>>, vector<4x250xf32>
    tpu.vector_store %arg12[%c64, %c0_32], %82 {strides = array<i32>} : memref<108x256xf32, #tpu.memory_space<vmem>>, vector<4x250xf32>,
    %84 = vector.extract_strided_slice %50 {offsets = [0, 7], sizes = [4, 249], strides = [1, 1]} : vector<4x256xf32> to vector<4x249xf32>
    %c68 = arith.constant 68 : index
    %c0_33 = arith.constant 0 : index
    %85 = vector.load %arg12[%c68, %c0_33] : memref<108x256xf32, #tpu.memory_space<vmem>>, vector<4x249xf32>
    tpu.vector_store %arg12[%c68, %c0_33], %84 {strides = array<i32>} : memref<108x256xf32, #tpu.memory_space<vmem>>, vector<4x249xf32>,
    %86 = vector.extract_strided_slice %50 {offsets = [0, 29], sizes = [4, 227], strides = [1, 1]} : vector<4x256xf32> to vector<4x227xf32>
    %c72 = arith.constant 72 : index
    %c0_34 = arith.constant 0 : index
    %87 = vector.load %arg12[%c72, %c0_34] : memref<108x256xf32, #tpu.memory_space<vmem>>, vector<4x227xf32>
    tpu.vector_store %arg12[%c72, %c0_34], %86 {strides = array<i32>} : memref<108x256xf32, #tpu.memory_space<vmem>>, vector<4x227xf32>,
    %88 = vector.extract_strided_slice %50 {offsets = [0, 30], sizes = [4, 226], strides = [1, 1]} : vector<4x256xf32> to vector<4x226xf32>
    %c76 = arith.constant 76 : index
    %c0_35 = arith.constant 0 : index
    %89 = vector.load %arg12[%c76, %c0_35] : memref<108x256xf32, #tpu.memory_space<vmem>>, vector<4x226xf32>
    tpu.vector_store %arg12[%c76, %c0_35], %88 {strides = array<i32>} : memref<108x256xf32, #tpu.memory_space<vmem>>, vector<4x226xf32>,
    %90 = vector.extract_strided_slice %50 {offsets = [0, 31], sizes = [4, 225], strides = [1, 1]} : vector<4x256xf32> to vector<4x225xf32>
    %c80 = arith.constant 80 : index
    %c0_36 = arith.constant 0 : index
    %91 = vector.load %arg12[%c80, %c0_36] : memref<108x256xf32, #tpu.memory_space<vmem>>, vector<4x225xf32>
    tpu.vector_store %arg12[%c80, %c0_36], %90 {strides = array<i32>} : memref<108x256xf32, #tpu.memory_space<vmem>>, vector<4x225xf32>,
    %92 = vector.extract_strided_slice %50 {offsets = [0, 35], sizes = [4, 221], strides = [1, 1]} : vector<4x256xf32> to vector<4x221xf32>
    %c84 = arith.constant 84 : index
    %c0_37 = arith.constant 0 : index
    %93 = vector.load %arg12[%c84, %c0_37] : memref<108x256xf32, #tpu.memory_space<vmem>>, vector<4x221xf32>
    tpu.vector_store %arg12[%c84, %c0_37], %92 {strides = array<i32>} : memref<108x256xf32, #tpu.memory_space<vmem>>, vector<4x221xf32>,
    %94 = vector.extract_strided_slice %50 {offsets = [0, 36], sizes = [4, 220], strides = [1, 1]} : vector<4x256xf32> to vector<4x220xf32>
    %c88 = arith.constant 88 : index
    %c0_38 = arith.constant 0 : index
    %95 = vector.load %arg12[%c88, %c0_38] : memref<108x256xf32, #tpu.memory_space<vmem>>, vector<4x220xf32>
    tpu.vector_store %arg12[%c88, %c0_38], %94 {strides = array<i32>} : memref<108x256xf32, #tpu.memory_space<vmem>>, vector<4x220xf32>,
    %96 = vector.extract_strided_slice %50 {offsets = [0, 37], sizes = [4, 219], strides = [1, 1]} : vector<4x256xf32> to vector<4x219xf32>
    %c92 = arith.constant 92 : index
    %c0_39 = arith.constant 0 : index
    %97 = vector.load %arg12[%c92, %c0_39] : memref<108x256xf32, #tpu.memory_space<vmem>>, vector<4x219xf32>
    tpu.vector_store %arg12[%c92, %c0_39], %96 {strides = array<i32>} : memref<108x256xf32, #tpu.memory_space<vmem>>, vector<4x219xf32>,
    %98 = vector.extract_strided_slice %50 {offsets = [0, 41], sizes = [4, 215], strides = [1, 1]} : vector<4x256xf32> to vector<4x215xf32>
    %c96 = arith.constant 96 : index
    %c0_40 = arith.constant 0 : index
    %99 = vector.load %arg12[%c96, %c0_40] : memref<108x256xf32, #tpu.memory_space<vmem>>, vector<4x215xf32>
    tpu.vector_store %arg12[%c96, %c0_40], %98 {strides = array<i32>} : memref<108x256xf32, #tpu.memory_space<vmem>>, vector<4x215xf32>,
    %100 = vector.extract_strided_slice %50 {offsets = [0, 42], sizes = [4, 214], strides = [1, 1]} : vector<4x256xf32> to vector<4x214xf32>
    %c100 = arith.constant 100 : index
    %c0_41 = arith.constant 0 : index
    %101 = vector.load %arg12[%c100, %c0_41] : memref<108x256xf32, #tpu.memory_space<vmem>>, vector<4x214xf32>
    tpu.vector_store %arg12[%c100, %c0_41], %100 {strides = array<i32>} : memref<108x256xf32, #tpu.memory_space<vmem>>, vector<4x214xf32>,
    %102 = vector.extract_strided_slice %50 {offsets = [0, 43], sizes = [4, 213], strides = [1, 1]} : vector<4x256xf32> to vector<4x213xf32>
    %c104 = arith.constant 104 : index
    %c0_42 = arith.constant 0 : index
    %103 = vector.load %arg12[%c104, %c0_42] : memref<108x256xf32, #tpu.memory_space<vmem>>, vector<4x213xf32>
    tpu.vector_store %arg12[%c104, %c0_42], %102 {strides = array<i32>} : memref<108x256xf32, #tpu.memory_space<vmem>>, vector<4x213xf32>,
    %c0_43 = arith.constant 0 : index
    %c0_44 = arith.constant 0 : index
    %104 = vector.load %arg6[%c0_43, %c0_44] : memref<4x108xf32, #tpu.memory_space<vmem>>, vector<4x108xf32>
    %c0_45 = arith.constant 0 : index
    %c0_46 = arith.constant 0 : index
    %105 = vector.load %arg12[%c0_45, %c0_46] : memref<108x256xf32, #tpu.memory_space<vmem>>, vector<108x256xf32>
    %cst_47 = arith.constant dense<0.000000e+00> : vector<4x256xf32>
    %106 = tpu.matmul %104, %105, %cst_47 {dimension_numbers = #tpu.dot_dimension_numbers<[1], [0], [0], [1], [0, 0, 1, 1], [], []>} : vector<4x108xf32>, vector<108x256xf32>, vector<4x256xf32> -> vector<4x256xf32>
    %cst_48 = arith.constant 0.000000e+00 : f32
    %107 = vector.shape_cast %2 : vector<1x256xi1> to vector<1x256xi1>
    %108 = vector.broadcast %107 : vector<1x256xi1> to vector<4x256xi1>
    %109 = vector.broadcast %cst_48 : f32 to vector<4x256xf32>
    %110 = arith.select %108, %106, %109 : vector<4x256xi1>, vector<4x256xf32>
    %cst_49 = arith.constant dense<0.000000e+00> : vector<4xf32>
    %111 = vector.multi_reduction <add>, %110, %cst_49 [1] : vector<4x256xf32> to vector<4xf32>
    %112 = vector.shape_cast %111 : vector<4xf32> to vector<4x1xf32>
    %cst_50 = arith.constant 1.562500e-02 : f32
    %113 = vector.broadcast %cst_50 : f32 to vector<4x1xf32>
    %114 = arith.mulf %112, %113 : vector<4x1xf32>
    %115 = arith.mulf %110, %110 : vector<4x256xf32>
    %cst_51 = arith.constant dense<0.000000e+00> : vector<4xf32>
    %116 = vector.multi_reduction <add>, %115, %cst_51 [1] : vector<4x256xf32> to vector<4xf32>
    %117 = vector.shape_cast %116 : vector<4xf32> to vector<4x1xf32>
    %cst_52 = arith.constant 1.562500e-02 : f32
    %118 = vector.broadcast %cst_52 : f32 to vector<4x1xf32>
    %119 = arith.mulf %117, %118 : vector<4x1xf32>
    %120 = arith.mulf %114, %114 : vector<4x1xf32>
    %121 = arith.subf %119, %120 : vector<4x1xf32>
    %122 = vector.broadcast %114 : vector<4x1xf32> to vector<4x256xf32>
    %123 = arith.subf %106, %122 : vector<4x256xf32>
    %cst_53 = arith.constant 9.99999974E-6 : f32
    %124 = vector.broadcast %cst_53 : f32 to vector<4x1xf32>
    %125 = arith.addf %121, %124 : vector<4x1xf32>
    %126 = math.rsqrt %125 : vector<4x1xf32>
    %127 = vector.broadcast %126 : vector<4x1xf32> to vector<4x256xf32>
    %128 = arith.mulf %123, %127 : vector<4x256xf32>
    %129 = arith.addf %42, %128 : vector<4x256xf32>
    %cst_54 = arith.constant 0.000000e+00 : f32
    %130 = vector.shape_cast %2 : vector<1x256xi1> to vector<1x256xi1>
    %131 = vector.broadcast %130 : vector<1x256xi1> to vector<4x256xi1>
    %132 = vector.broadcast %cst_54 : f32 to vector<4x256xf32>
    %133 = arith.select %131, %129, %132 : vector<4x256xi1>, vector<4x256xf32>
    %134 = vector.extract_strided_slice %133 {offsets = [0, 0], sizes = [4, 213], strides = [1, 1]} : vector<4x256xf32> to vector<4x213xf32>
    %c0_55 = arith.constant 0 : index
    %c43_56 = arith.constant 43 : index
    %135 = vector.load %arg12[%c0_55, %c43_56] : memref<108x256xf32, #tpu.memory_space<vmem>>, vector<4x213xf32>
    tpu.vector_store %arg12[%c0_55, %c43_56], %134 {strides = array<i32>} : memref<108x256xf32, #tpu.memory_space<vmem>>, vector<4x213xf32>,
    %136 = vector.extract_strided_slice %133 {offsets = [0, 0], sizes = [4, 214], strides = [1, 1]} : vector<4x256xf32> to vector<4x214xf32>
    %c4_57 = arith.constant 4 : index
    %c42_58 = arith.constant 42 : index
    %137 = vector.load %arg12[%c4_57, %c42_58] : memref<108x256xf32, #tpu.memory_space<vmem>>, vector<4x214xf32>
    tpu.vector_store %arg12[%c4_57, %c42_58], %136 {strides = array<i32>} : memref<108x256xf32, #tpu.memory_space<vmem>>, vector<4x214xf32>,
    %138 = vector.extract_strided_slice %133 {offsets = [0, 0], sizes = [4, 215], strides = [1, 1]} : vector<4x256xf32> to vector<4x215xf32>
    %c8_59 = arith.constant 8 : index
    %c41_60 = arith.constant 41 : index
    %139 = vector.load %arg12[%c8_59, %c41_60] : memref<108x256xf32, #tpu.memory_space<vmem>>, vector<4x215xf32>
    tpu.vector_store %arg12[%c8_59, %c41_60], %138 {strides = array<i32>} : memref<108x256xf32, #tpu.memory_space<vmem>>, vector<4x215xf32>,
    %140 = vector.extract_strided_slice %133 {offsets = [0, 0], sizes = [4, 219], strides = [1, 1]} : vector<4x256xf32> to vector<4x219xf32>
    %c12_61 = arith.constant 12 : index
    %c37_62 = arith.constant 37 : index
    %141 = vector.load %arg12[%c12_61, %c37_62] : memref<108x256xf32, #tpu.memory_space<vmem>>, vector<4x219xf32>
    tpu.vector_store %arg12[%c12_61, %c37_62], %140 {strides = array<i32>} : memref<108x256xf32, #tpu.memory_space<vmem>>, vector<4x219xf32>,
    %142 = vector.extract_strided_slice %133 {offsets = [0, 0], sizes = [4, 220], strides = [1, 1]} : vector<4x256xf32> to vector<4x220xf32>
    %c16_63 = arith.constant 16 : index
    %c36_64 = arith.constant 36 : index
    %143 = vector.load %arg12[%c16_63, %c36_64] : memref<108x256xf32, #tpu.memory_space<vmem>>, vector<4x220xf32>
    tpu.vector_store %arg12[%c16_63, %c36_64], %142 {strides = array<i32>} : memref<108x256xf32, #tpu.memory_space<vmem>>, vector<4x220xf32>,
    %144 = vector.extract_strided_slice %133 {offsets = [0, 0], sizes = [4, 221], strides = [1, 1]} : vector<4x256xf32> to vector<4x221xf32>
    %c20_65 = arith.constant 20 : index
    %c35_66 = arith.constant 35 : index
    %145 = vector.load %arg12[%c20_65, %c35_66] : memref<108x256xf32, #tpu.memory_space<vmem>>, vector<4x221xf32>
    tpu.vector_store %arg12[%c20_65, %c35_66], %144 {strides = array<i32>} : memref<108x256xf32, #tpu.memory_space<vmem>>, vector<4x221xf32>,
    %146 = vector.extract_strided_slice %133 {offsets = [0, 0], sizes = [4, 225], strides = [1, 1]} : vector<4x256xf32> to vector<4x225xf32>
    %c24_67 = arith.constant 24 : index
    %c31_68 = arith.constant 31 : index
    %147 = vector.load %arg12[%c24_67, %c31_68] : memref<108x256xf32, #tpu.memory_space<vmem>>, vector<4x225xf32>
    tpu.vector_store %arg12[%c24_67, %c31_68], %146 {strides = array<i32>} : memref<108x256xf32, #tpu.memory_space<vmem>>, vector<4x225xf32>,
    %148 = vector.extract_strided_slice %133 {offsets = [0, 0], sizes = [4, 226], strides = [1, 1]} : vector<4x256xf32> to vector<4x226xf32>
    %c28_69 = arith.constant 28 : index
    %c30_70 = arith.constant 30 : index
    %149 = vector.load %arg12[%c28_69, %c30_70] : memref<108x256xf32, #tpu.memory_space<vmem>>, vector<4x226xf32>
    tpu.vector_store %arg12[%c28_69, %c30_70], %148 {strides = array<i32>} : memref<108x256xf32, #tpu.memory_space<vmem>>, vector<4x226xf32>,
    %150 = vector.extract_strided_slice %133 {offsets = [0, 0], sizes = [4, 227], strides = [1, 1]} : vector<4x256xf32> to vector<4x227xf32>
    %c32_71 = arith.constant 32 : index
    %c29_72 = arith.constant 29 : index
    %151 = vector.load %arg12[%c32_71, %c29_72] : memref<108x256xf32, #tpu.memory_space<vmem>>, vector<4x227xf32>
    tpu.vector_store %arg12[%c32_71, %c29_72], %150 {strides = array<i32>} : memref<108x256xf32, #tpu.memory_space<vmem>>, vector<4x227xf32>,
    %152 = vector.extract_strided_slice %133 {offsets = [0, 0], sizes = [4, 249], strides = [1, 1]} : vector<4x256xf32> to vector<4x249xf32>
    %c36_73 = arith.constant 36 : index
    %c7_74 = arith.constant 7 : index
    %153 = vector.load %arg12[%c36_73, %c7_74] : memref<108x256xf32, #tpu.memory_space<vmem>>, vector<4x249xf32>
    tpu.vector_store %arg12[%c36_73, %c7_74], %152 {strides = array<i32>} : memref<108x256xf32, #tpu.memory_space<vmem>>, vector<4x249xf32>,
    %154 = vector.extract_strided_slice %133 {offsets = [0, 0], sizes = [4, 250], strides = [1, 1]} : vector<4x256xf32> to vector<4x250xf32>
    %c40_75 = arith.constant 40 : index
    %c6_76 = arith.constant 6 : index
    %155 = vector.load %arg12[%c40_75, %c6_76] : memref<108x256xf32, #tpu.memory_space<vmem>>, vector<4x250xf32>
    tpu.vector_store %arg12[%c40_75, %c6_76], %154 {strides = array<i32>} : memref<108x256xf32, #tpu.memory_space<vmem>>, vector<4x250xf32>,
    %156 = vector.extract_strided_slice %133 {offsets = [0, 0], sizes = [4, 251], strides = [1, 1]} : vector<4x256xf32> to vector<4x251xf32>
    %c44_77 = arith.constant 44 : index
    %c5_78 = arith.constant 5 : index
    %157 = vector.load %arg12[%c44_77, %c5_78] : memref<108x256xf32, #tpu.memory_space<vmem>>, vector<4x251xf32>
    tpu.vector_store %arg12[%c44_77, %c5_78], %156 {strides = array<i32>} : memref<108x256xf32, #tpu.memory_space<vmem>>, vector<4x251xf32>,
    %158 = vector.extract_strided_slice %133 {offsets = [0, 0], sizes = [4, 255], strides = [1, 1]} : vector<4x256xf32> to vector<4x255xf32>
    %c48_79 = arith.constant 48 : index
    %c1_80 = arith.constant 1 : index
    %159 = vector.load %arg12[%c48_79, %c1_80] : memref<108x256xf32, #tpu.memory_space<vmem>>, vector<4x255xf32>
    tpu.vector_store %arg12[%c48_79, %c1_80], %158 {strides = array<i32>} : memref<108x256xf32, #tpu.memory_space<vmem>>, vector<4x255xf32>,
    %c52_81 = arith.constant 52 : index
    %c0_82 = arith.constant 0 : index
    %160 = vector.load %arg12[%c52_81, %c0_82] : memref<108x256xf32, #tpu.memory_space<vmem>>, vector<4x256xf32>
    tpu.vector_store %arg12[%c52_81, %c0_82], %133 {strides = array<i32>} : memref<108x256xf32, #tpu.memory_space<vmem>>, vector<4x256xf32>,
    %161 = vector.extract_strided_slice %133 {offsets = [0, 1], sizes = [4, 255], strides = [1, 1]} : vector<4x256xf32> to vector<4x255xf32>
    %c56_83 = arith.constant 56 : index
    %c0_84 = arith.constant 0 : index
    %162 = vector.load %arg12[%c56_83, %c0_84] : memref<108x256xf32, #tpu.memory_space<vmem>>, vector<4x255xf32>
    tpu.vector_store %arg12[%c56_83, %c0_84], %161 {strides = array<i32>} : memref<108x256xf32, #tpu.memory_space<vmem>>, vector<4x255xf32>,
    %163 = vector.extract_strided_slice %133 {offsets = [0, 5], sizes = [4, 251], strides = [1, 1]} : vector<4x256xf32> to vector<4x251xf32>
    %c60_85 = arith.constant 60 : index
    %c0_86 = arith.constant 0 : index
    %164 = vector.load %arg12[%c60_85, %c0_86] : memref<108x256xf32, #tpu.memory_space<vmem>>, vector<4x251xf32>
    tpu.vector_store %arg12[%c60_85, %c0_86], %163 {strides = array<i32>} : memref<108x256xf32, #tpu.memory_space<vmem>>, vector<4x251xf32>,
    %165 = vector.extract_strided_slice %133 {offsets = [0, 6], sizes = [4, 250], strides = [1, 1]} : vector<4x256xf32> to vector<4x250xf32>
    %c64_87 = arith.constant 64 : index
    %c0_88 = arith.constant 0 : index
    %166 = vector.load %arg12[%c64_87, %c0_88] : memref<108x256xf32, #tpu.memory_space<vmem>>, vector<4x250xf32>
    tpu.vector_store %arg12[%c64_87, %c0_88], %165 {strides = array<i32>} : memref<108x256xf32, #tpu.memory_space<vmem>>, vector<4x250xf32>,
    %167 = vector.extract_strided_slice %133 {offsets = [0, 7], sizes = [4, 249], strides = [1, 1]} : vector<4x256xf32> to vector<4x249xf32>
    %c68_89 = arith.constant 68 : index
    %c0_90 = arith.constant 0 : index
    %168 = vector.load %arg12[%c68_89, %c0_90] : memref<108x256xf32, #tpu.memory_space<vmem>>, vector<4x249xf32>
    tpu.vector_store %arg12[%c68_89, %c0_90], %167 {strides = array<i32>} : memref<108x256xf32, #tpu.memory_space<vmem>>, vector<4x249xf32>,
    %169 = vector.extract_strided_slice %133 {offsets = [0, 29], sizes = [4, 227], strides = [1, 1]} : vector<4x256xf32> to vector<4x227xf32>
    %c72_91 = arith.constant 72 : index
    %c0_92 = arith.constant 0 : index
    %170 = vector.load %arg12[%c72_91, %c0_92] : memref<108x256xf32, #tpu.memory_space<vmem>>, vector<4x227xf32>
    tpu.vector_store %arg12[%c72_91, %c0_92], %169 {strides = array<i32>} : memref<108x256xf32, #tpu.memory_space<vmem>>, vector<4x227xf32>,
    %171 = vector.extract_strided_slice %133 {offsets = [0, 30], sizes = [4, 226], strides = [1, 1]} : vector<4x256xf32> to vector<4x226xf32>
    %c76_93 = arith.constant 76 : index
    %c0_94 = arith.constant 0 : index
    %172 = vector.load %arg12[%c76_93, %c0_94] : memref<108x256xf32, #tpu.memory_space<vmem>>, vector<4x226xf32>
    tpu.vector_store %arg12[%c76_93, %c0_94], %171 {strides = array<i32>} : memref<108x256xf32, #tpu.memory_space<vmem>>, vector<4x226xf32>,
    %173 = vector.extract_strided_slice %133 {offsets = [0, 31], sizes = [4, 225], strides = [1, 1]} : vector<4x256xf32> to vector<4x225xf32>
    %c80_95 = arith.constant 80 : index
    %c0_96 = arith.constant 0 : index
    %174 = vector.load %arg12[%c80_95, %c0_96] : memref<108x256xf32, #tpu.memory_space<vmem>>, vector<4x225xf32>
    tpu.vector_store %arg12[%c80_95, %c0_96], %173 {strides = array<i32>} : memref<108x256xf32, #tpu.memory_space<vmem>>, vector<4x225xf32>,
    %175 = vector.extract_strided_slice %133 {offsets = [0, 35], sizes = [4, 221], strides = [1, 1]} : vector<4x256xf32> to vector<4x221xf32>
    %c84_97 = arith.constant 84 : index
    %c0_98 = arith.constant 0 : index
    %176 = vector.load %arg12[%c84_97, %c0_98] : memref<108x256xf32, #tpu.memory_space<vmem>>, vector<4x221xf32>
    tpu.vector_store %arg12[%c84_97, %c0_98], %175 {strides = array<i32>} : memref<108x256xf32, #tpu.memory_space<vmem>>, vector<4x221xf32>,
    %177 = vector.extract_strided_slice %133 {offsets = [0, 36], sizes = [4, 220], strides = [1, 1]} : vector<4x256xf32> to vector<4x220xf32>
    %c88_99 = arith.constant 88 : index
    %c0_100 = arith.constant 0 : index
    %178 = vector.load %arg12[%c88_99, %c0_100] : memref<108x256xf32, #tpu.memory_space<vmem>>, vector<4x220xf32>
    tpu.vector_store %arg12[%c88_99, %c0_100], %177 {strides = array<i32>} : memref<108x256xf32, #tpu.memory_space<vmem>>, vector<4x220xf32>,
    %179 = vector.extract_strided_slice %133 {offsets = [0, 37], sizes = [4, 219], strides = [1, 1]} : vector<4x256xf32> to vector<4x219xf32>
    %c92_101 = arith.constant 92 : index
    %c0_102 = arith.constant 0 : index
    %180 = vector.load %arg12[%c92_101, %c0_102] : memref<108x256xf32, #tpu.memory_space<vmem>>, vector<4x219xf32>
    tpu.vector_store %arg12[%c92_101, %c0_102], %179 {strides = array<i32>} : memref<108x256xf32, #tpu.memory_space<vmem>>, vector<4x219xf32>,
    %181 = vector.extract_strided_slice %133 {offsets = [0, 41], sizes = [4, 215], strides = [1, 1]} : vector<4x256xf32> to vector<4x215xf32>
    %c96_103 = arith.constant 96 : index
    %c0_104 = arith.constant 0 : index
    %182 = vector.load %arg12[%c96_103, %c0_104] : memref<108x256xf32, #tpu.memory_space<vmem>>, vector<4x215xf32>
    tpu.vector_store %arg12[%c96_103, %c0_104], %181 {strides = array<i32>} : memref<108x256xf32, #tpu.memory_space<vmem>>, vector<4x215xf32>,
    %183 = vector.extract_strided_slice %133 {offsets = [0, 42], sizes = [4, 214], strides = [1, 1]} : vector<4x256xf32> to vector<4x214xf32>
    %c100_105 = arith.constant 100 : index
    %c0_106 = arith.constant 0 : index
    %184 = vector.load %arg12[%c100_105, %c0_106] : memref<108x256xf32, #tpu.memory_space<vmem>>, vector<4x214xf32>
    tpu.vector_store %arg12[%c100_105, %c0_106], %183 {strides = array<i32>} : memref<108x256xf32, #tpu.memory_space<vmem>>, vector<4x214xf32>,
    %185 = vector.extract_strided_slice %133 {offsets = [0, 43], sizes = [4, 213], strides = [1, 1]} : vector<4x256xf32> to vector<4x213xf32>
    %c104_107 = arith.constant 104 : index
    %c0_108 = arith.constant 0 : index
    %186 = vector.load %arg12[%c104_107, %c0_108] : memref<108x256xf32, #tpu.memory_space<vmem>>, vector<4x213xf32>
    tpu.vector_store %arg12[%c104_107, %c0_108], %185 {strides = array<i32>} : memref<108x256xf32, #tpu.memory_space<vmem>>, vector<4x213xf32>,
    %c0_109 = arith.constant 0 : index
    %c0_110 = arith.constant 0 : index
    %187 = vector.load %arg2[%c0_109, %c0_110] : memref<4x108xf32, #tpu.memory_space<vmem>>, vector<4x108xf32>
    %c0_111 = arith.constant 0 : index
    %c0_112 = arith.constant 0 : index
    %188 = vector.load %arg12[%c0_111, %c0_112] : memref<108x256xf32, #tpu.memory_space<vmem>>, vector<108x256xf32>
    %cst_113 = arith.constant dense<0.000000e+00> : vector<4x256xf32>
    %189 = tpu.matmul %187, %188, %cst_113 {dimension_numbers = #tpu.dot_dimension_numbers<[1], [0], [0], [1], [0, 0, 1, 1], [], []>} : vector<4x108xf32>, vector<108x256xf32>, vector<4x256xf32> -> vector<4x256xf32>
    %190 = arith.addf %43, %189 : vector<4x256xf32>
    %cst_114 = arith.constant 0.000000e+00 : f32
    %191 = vector.shape_cast %2 : vector<1x256xi1> to vector<1x256xi1>
    %192 = vector.broadcast %191 : vector<1x256xi1> to vector<4x256xi1>
    %193 = vector.broadcast %cst_114 : f32 to vector<4x256xf32>
    %194 = arith.select %192, %190, %193 : vector<4x256xi1>, vector<4x256xf32>
    %cst_115 = arith.constant 0.000000e+00 : f32
    %195 = vector.broadcast %cst_115 : f32 to vector<4x256xf32>
    %196 = arith.cmpf ogt, %194, %195 : vector<4x256xf32>
    %cst_116 = arith.constant 0.00999999977 : f32
    %197 = vector.broadcast %cst_116 : f32 to vector<4x256xf32>
    %198 = arith.mulf %197, %194 : vector<4x256xf32>
    %199 = arith.select %196, %194, %198 : vector<4x256xi1>, vector<4x256xf32>
    %200 = vector.extract_strided_slice %199 {offsets = [0, 0], sizes = [4, 213], strides = [1, 1]} : vector<4x256xf32> to vector<4x213xf32>
    %c0_117 = arith.constant 0 : index
    %c43_118 = arith.constant 43 : index
    %201 = vector.load %arg12[%c0_117, %c43_118] : memref<108x256xf32, #tpu.memory_space<vmem>>, vector<4x213xf32>
    tpu.vector_store %arg12[%c0_117, %c43_118], %200 {strides = array<i32>} : memref<108x256xf32, #tpu.memory_space<vmem>>, vector<4x213xf32>,
    %202 = vector.extract_strided_slice %199 {offsets = [0, 0], sizes = [4, 214], strides = [1, 1]} : vector<4x256xf32> to vector<4x214xf32>
    %c4_119 = arith.constant 4 : index
    %c42_120 = arith.constant 42 : index
    %203 = vector.load %arg12[%c4_119, %c42_120] : memref<108x256xf32, #tpu.memory_space<vmem>>, vector<4x214xf32>
    tpu.vector_store %arg12[%c4_119, %c42_120], %202 {strides = array<i32>} : memref<108x256xf32, #tpu.memory_space<vmem>>, vector<4x214xf32>,
    %204 = vector.extract_strided_slice %199 {offsets = [0, 0], sizes = [4, 215], strides = [1, 1]} : vector<4x256xf32> to vector<4x215xf32>
    %c8_121 = arith.constant 8 : index
    %c41_122 = arith.constant 41 : index
    %205 = vector.load %arg12[%c8_121, %c41_122] : memref<108x256xf32, #tpu.memory_space<vmem>>, vector<4x215xf32>
    tpu.vector_store %arg12[%c8_121, %c41_122], %204 {strides = array<i32>} : memref<108x256xf32, #tpu.memory_space<vmem>>, vector<4x215xf32>,
    %206 = vector.extract_strided_slice %199 {offsets = [0, 0], sizes = [4, 219], strides = [1, 1]} : vector<4x256xf32> to vector<4x219xf32>
    %c12_123 = arith.constant 12 : index
    %c37_124 = arith.constant 37 : index
    %207 = vector.load %arg12[%c12_123, %c37_124] : memref<108x256xf32, #tpu.memory_space<vmem>>, vector<4x219xf32>
    tpu.vector_store %arg12[%c12_123, %c37_124], %206 {strides = array<i32>} : memref<108x256xf32, #tpu.memory_space<vmem>>, vector<4x219xf32>,
    %208 = vector.extract_strided_slice %199 {offsets = [0, 0], sizes = [4, 220], strides = [1, 1]} : vector<4x256xf32> to vector<4x220xf32>
    %c16_125 = arith.constant 16 : index
    %c36_126 = arith.constant 36 : index
    %209 = vector.load %arg12[%c16_125, %c36_126] : memref<108x256xf32, #tpu.memory_space<vmem>>, vector<4x220xf32>
    tpu.vector_store %arg12[%c16_125, %c36_126], %208 {strides = array<i32>} : memref<108x256xf32, #tpu.memory_space<vmem>>, vector<4x220xf32>,
    %210 = vector.extract_strided_slice %199 {offsets = [0, 0], sizes = [4, 221], strides = [1, 1]} : vector<4x256xf32> to vector<4x221xf32>
    %c20_127 = arith.constant 20 : index
    %c35_128 = arith.constant 35 : index
    %211 = vector.load %arg12[%c20_127, %c35_128] : memref<108x256xf32, #tpu.memory_space<vmem>>, vector<4x221xf32>
    tpu.vector_store %arg12[%c20_127, %c35_128], %210 {strides = array<i32>} : memref<108x256xf32, #tpu.memory_space<vmem>>, vector<4x221xf32>,
    %212 = vector.extract_strided_slice %199 {offsets = [0, 0], sizes = [4, 225], strides = [1, 1]} : vector<4x256xf32> to vector<4x225xf32>
    %c24_129 = arith.constant 24 : index
    %c31_130 = arith.constant 31 : index
    %213 = vector.load %arg12[%c24_129, %c31_130] : memref<108x256xf32, #tpu.memory_space<vmem>>, vector<4x225xf32>
    tpu.vector_store %arg12[%c24_129, %c31_130], %212 {strides = array<i32>} : memref<108x256xf32, #tpu.memory_space<vmem>>, vector<4x225xf32>,
    %214 = vector.extract_strided_slice %199 {offsets = [0, 0], sizes = [4, 226], strides = [1, 1]} : vector<4x256xf32> to vector<4x226xf32>
    %c28_131 = arith.constant 28 : index
    %c30_132 = arith.constant 30 : index
    %215 = vector.load %arg12[%c28_131, %c30_132] : memref<108x256xf32, #tpu.memory_space<vmem>>, vector<4x226xf32>
    tpu.vector_store %arg12[%c28_131, %c30_132], %214 {strides = array<i32>} : memref<108x256xf32, #tpu.memory_space<vmem>>, vector<4x226xf32>,
    %216 = vector.extract_strided_slice %199 {offsets = [0, 0], sizes = [4, 227], strides = [1, 1]} : vector<4x256xf32> to vector<4x227xf32>
    %c32_133 = arith.constant 32 : index
    %c29_134 = arith.constant 29 : index
    %217 = vector.load %arg12[%c32_133, %c29_134] : memref<108x256xf32, #tpu.memory_space<vmem>>, vector<4x227xf32>
    tpu.vector_store %arg12[%c32_133, %c29_134], %216 {strides = array<i32>} : memref<108x256xf32, #tpu.memory_space<vmem>>, vector<4x227xf32>,
    %218 = vector.extract_strided_slice %199 {offsets = [0, 0], sizes = [4, 249], strides = [1, 1]} : vector<4x256xf32> to vector<4x249xf32>
    %c36_135 = arith.constant 36 : index
    %c7_136 = arith.constant 7 : index
    %219 = vector.load %arg12[%c36_135, %c7_136] : memref<108x256xf32, #tpu.memory_space<vmem>>, vector<4x249xf32>
    tpu.vector_store %arg12[%c36_135, %c7_136], %218 {strides = array<i32>} : memref<108x256xf32, #tpu.memory_space<vmem>>, vector<4x249xf32>,
    %220 = vector.extract_strided_slice %199 {offsets = [0, 0], sizes = [4, 250], strides = [1, 1]} : vector<4x256xf32> to vector<4x250xf32>
    %c40_137 = arith.constant 40 : index
    %c6_138 = arith.constant 6 : index
    %221 = vector.load %arg12[%c40_137, %c6_138] : memref<108x256xf32, #tpu.memory_space<vmem>>, vector<4x250xf32>
    tpu.vector_store %arg12[%c40_137, %c6_138], %220 {strides = array<i32>} : memref<108x256xf32, #tpu.memory_space<vmem>>, vector<4x250xf32>,
    %222 = vector.extract_strided_slice %199 {offsets = [0, 0], sizes = [4, 251], strides = [1, 1]} : vector<4x256xf32> to vector<4x251xf32>
    %c44_139 = arith.constant 44 : index
    %c5_140 = arith.constant 5 : index
    %223 = vector.load %arg12[%c44_139, %c5_140] : memref<108x256xf32, #tpu.memory_space<vmem>>, vector<4x251xf32>
    tpu.vector_store %arg12[%c44_139, %c5_140], %222 {strides = array<i32>} : memref<108x256xf32, #tpu.memory_space<vmem>>, vector<4x251xf32>,
    %224 = vector.extract_strided_slice %199 {offsets = [0, 0], sizes = [4, 255], strides = [1, 1]} : vector<4x256xf32> to vector<4x255xf32>
    %c48_141 = arith.constant 48 : index
    %c1_142 = arith.constant 1 : index
    %225 = vector.load %arg12[%c48_141, %c1_142] : memref<108x256xf32, #tpu.memory_space<vmem>>, vector<4x255xf32>
    tpu.vector_store %arg12[%c48_141, %c1_142], %224 {strides = array<i32>} : memref<108x256xf32, #tpu.memory_space<vmem>>, vector<4x255xf32>,
    %c52_143 = arith.constant 52 : index
    %c0_144 = arith.constant 0 : index
    %226 = vector.load %arg12[%c52_143, %c0_144] : memref<108x256xf32, #tpu.memory_space<vmem>>, vector<4x256xf32>
    tpu.vector_store %arg12[%c52_143, %c0_144], %199 {strides = array<i32>} : memref<108x256xf32, #tpu.memory_space<vmem>>, vector<4x256xf32>,
    %227 = vector.extract_strided_slice %199 {offsets = [0, 1], sizes = [4, 255], strides = [1, 1]} : vector<4x256xf32> to vector<4x255xf32>
    %c56_145 = arith.constant 56 : index
    %c0_146 = arith.constant 0 : index
    %228 = vector.load %arg12[%c56_145, %c0_146] : memref<108x256xf32, #tpu.memory_space<vmem>>, vector<4x255xf32>
    tpu.vector_store %arg12[%c56_145, %c0_146], %227 {strides = array<i32>} : memref<108x256xf32, #tpu.memory_space<vmem>>, vector<4x255xf32>,
    %229 = vector.extract_strided_slice %199 {offsets = [0, 5], sizes = [4, 251], strides = [1, 1]} : vector<4x256xf32> to vector<4x251xf32>
    %c60_147 = arith.constant 60 : index
    %c0_148 = arith.constant 0 : index
    %230 = vector.load %arg12[%c60_147, %c0_148] : memref<108x256xf32, #tpu.memory_space<vmem>>, vector<4x251xf32>
    tpu.vector_store %arg12[%c60_147, %c0_148], %229 {strides = array<i32>} : memref<108x256xf32, #tpu.memory_space<vmem>>, vector<4x251xf32>,
    %231 = vector.extract_strided_slice %199 {offsets = [0, 6], sizes = [4, 250], strides = [1, 1]} : vector<4x256xf32> to vector<4x250xf32>
    %c64_149 = arith.constant 64 : index
    %c0_150 = arith.constant 0 : index
    %232 = vector.load %arg12[%c64_149, %c0_150] : memref<108x256xf32, #tpu.memory_space<vmem>>, vector<4x250xf32>
    tpu.vector_store %arg12[%c64_149, %c0_150], %231 {strides = array<i32>} : memref<108x256xf32, #tpu.memory_space<vmem>>, vector<4x250xf32>,
    %233 = vector.extract_strided_slice %199 {offsets = [0, 7], sizes = [4, 249], strides = [1, 1]} : vector<4x256xf32> to vector<4x249xf32>
    %c68_151 = arith.constant 68 : index
    %c0_152 = arith.constant 0 : index
    %234 = vector.load %arg12[%c68_151, %c0_152] : memref<108x256xf32, #tpu.memory_space<vmem>>, vector<4x249xf32>
    tpu.vector_store %arg12[%c68_151, %c0_152], %233 {strides = array<i32>} : memref<108x256xf32, #tpu.memory_space<vmem>>, vector<4x249xf32>,
    %235 = vector.extract_strided_slice %199 {offsets = [0, 29], sizes = [4, 227], strides = [1, 1]} : vector<4x256xf32> to vector<4x227xf32>
    %c72_153 = arith.constant 72 : index
    %c0_154 = arith.constant 0 : index
    %236 = vector.load %arg12[%c72_153, %c0_154] : memref<108x256xf32, #tpu.memory_space<vmem>>, vector<4x227xf32>
    tpu.vector_store %arg12[%c72_153, %c0_154], %235 {strides = array<i32>} : memref<108x256xf32, #tpu.memory_space<vmem>>, vector<4x227xf32>,
    %237 = vector.extract_strided_slice %199 {offsets = [0, 30], sizes = [4, 226], strides = [1, 1]} : vector<4x256xf32> to vector<4x226xf32>
    %c76_155 = arith.constant 76 : index
    %c0_156 = arith.constant 0 : index
    %238 = vector.load %arg12[%c76_155, %c0_156] : memref<108x256xf32, #tpu.memory_space<vmem>>, vector<4x226xf32>
    tpu.vector_store %arg12[%c76_155, %c0_156], %237 {strides = array<i32>} : memref<108x256xf32, #tpu.memory_space<vmem>>, vector<4x226xf32>,
    %239 = vector.extract_strided_slice %199 {offsets = [0, 31], sizes = [4, 225], strides = [1, 1]} : vector<4x256xf32> to vector<4x225xf32>
    %c80_157 = arith.constant 80 : index
    %c0_158 = arith.constant 0 : index
    %240 = vector.load %arg12[%c80_157, %c0_158] : memref<108x256xf32, #tpu.memory_space<vmem>>, vector<4x225xf32>
    tpu.vector_store %arg12[%c80_157, %c0_158], %239 {strides = array<i32>} : memref<108x256xf32, #tpu.memory_space<vmem>>, vector<4x225xf32>,
    %241 = vector.extract_strided_slice %199 {offsets = [0, 35], sizes = [4, 221], strides = [1, 1]} : vector<4x256xf32> to vector<4x221xf32>
    %c84_159 = arith.constant 84 : index
    %c0_160 = arith.constant 0 : index
    %242 = vector.load %arg12[%c84_159, %c0_160] : memref<108x256xf32, #tpu.memory_space<vmem>>, vector<4x221xf32>
    tpu.vector_store %arg12[%c84_159, %c0_160], %241 {strides = array<i32>} : memref<108x256xf32, #tpu.memory_space<vmem>>, vector<4x221xf32>,
    %243 = vector.extract_strided_slice %199 {offsets = [0, 36], sizes = [4, 220], strides = [1, 1]} : vector<4x256xf32> to vector<4x220xf32>
    %c88_161 = arith.constant 88 : index
    %c0_162 = arith.constant 0 : index
    %244 = vector.load %arg12[%c88_161, %c0_162] : memref<108x256xf32, #tpu.memory_space<vmem>>, vector<4x220xf32>
    tpu.vector_store %arg12[%c88_161, %c0_162], %243 {strides = array<i32>} : memref<108x256xf32, #tpu.memory_space<vmem>>, vector<4x220xf32>,
    %245 = vector.extract_strided_slice %199 {offsets = [0, 37], sizes = [4, 219], strides = [1, 1]} : vector<4x256xf32> to vector<4x219xf32>
    %c92_163 = arith.constant 92 : index
    %c0_164 = arith.constant 0 : index
    %246 = vector.load %arg12[%c92_163, %c0_164] : memref<108x256xf32, #tpu.memory_space<vmem>>, vector<4x219xf32>
    tpu.vector_store %arg12[%c92_163, %c0_164], %245 {strides = array<i32>} : memref<108x256xf32, #tpu.memory_space<vmem>>, vector<4x219xf32>,
    %247 = vector.extract_strided_slice %199 {offsets = [0, 41], sizes = [4, 215], strides = [1, 1]} : vector<4x256xf32> to vector<4x215xf32>
    %c96_165 = arith.constant 96 : index
    %c0_166 = arith.constant 0 : index
    %248 = vector.load %arg12[%c96_165, %c0_166] : memref<108x256xf32, #tpu.memory_space<vmem>>, vector<4x215xf32>
    tpu.vector_store %arg12[%c96_165, %c0_166], %247 {strides = array<i32>} : memref<108x256xf32, #tpu.memory_space<vmem>>, vector<4x215xf32>,
    %249 = vector.extract_strided_slice %199 {offsets = [0, 42], sizes = [4, 214], strides = [1, 1]} : vector<4x256xf32> to vector<4x214xf32>
    %c100_167 = arith.constant 100 : index
    %c0_168 = arith.constant 0 : index
    %250 = vector.load %arg12[%c100_167, %c0_168] : memref<108x256xf32, #tpu.memory_space<vmem>>, vector<4x214xf32>
    tpu.vector_store %arg12[%c100_167, %c0_168], %249 {strides = array<i32>} : memref<108x256xf32, #tpu.memory_space<vmem>>, vector<4x214xf32>,
    %251 = vector.extract_strided_slice %199 {offsets = [0, 43], sizes = [4, 213], strides = [1, 1]} : vector<4x256xf32> to vector<4x213xf32>
    %c104_169 = arith.constant 104 : index
    %c0_170 = arith.constant 0 : index
    %252 = vector.load %arg12[%c104_169, %c0_170] : memref<108x256xf32, #tpu.memory_space<vmem>>, vector<4x213xf32>
    tpu.vector_store %arg12[%c104_169, %c0_170], %251 {strides = array<i32>} : memref<108x256xf32, #tpu.memory_space<vmem>>, vector<4x213xf32>,
    %c0_171 = arith.constant 0 : index
    %c0_172 = arith.constant 0 : index
    %253 = vector.load %arg7[%c0_171, %c0_172] : memref<4x108xf32, #tpu.memory_space<vmem>>, vector<4x108xf32>
    %c0_173 = arith.constant 0 : index
    %c0_174 = arith.constant 0 : index
    %254 = vector.load %arg12[%c0_173, %c0_174] : memref<108x256xf32, #tpu.memory_space<vmem>>, vector<108x256xf32>
    %cst_175 = arith.constant dense<0.000000e+00> : vector<4x256xf32>
    %255 = tpu.matmul %253, %254, %cst_175 {dimension_numbers = #tpu.dot_dimension_numbers<[1], [0], [0], [1], [0, 0, 1, 1], [], []>} : vector<4x108xf32>, vector<108x256xf32>, vector<4x256xf32> -> vector<4x256xf32>
    %cst_176 = arith.constant 0.000000e+00 : f32
    %256 = vector.shape_cast %2 : vector<1x256xi1> to vector<1x256xi1>
    %257 = vector.broadcast %256 : vector<1x256xi1> to vector<4x256xi1>
    %258 = vector.broadcast %cst_176 : f32 to vector<4x256xf32>
    %259 = arith.select %257, %255, %258 : vector<4x256xi1>, vector<4x256xf32>
    %cst_177 = arith.constant dense<0.000000e+00> : vector<4xf32>
    %260 = vector.multi_reduction <add>, %259, %cst_177 [1] : vector<4x256xf32> to vector<4xf32>
    %261 = vector.shape_cast %260 : vector<4xf32> to vector<4x1xf32>
    %cst_178 = arith.constant 1.562500e-02 : f32
    %262 = vector.broadcast %cst_178 : f32 to vector<4x1xf32>
    %263 = arith.mulf %261, %262 : vector<4x1xf32>
    %264 = arith.mulf %259, %259 : vector<4x256xf32>
    %cst_179 = arith.constant dense<0.000000e+00> : vector<4xf32>
    %265 = vector.multi_reduction <add>, %264, %cst_179 [1] : vector<4x256xf32> to vector<4xf32>
    %266 = vector.shape_cast %265 : vector<4xf32> to vector<4x1xf32>
    %cst_180 = arith.constant 1.562500e-02 : f32
    %267 = vector.broadcast %cst_180 : f32 to vector<4x1xf32>
    %268 = arith.mulf %266, %267 : vector<4x1xf32>
    %269 = arith.mulf %263, %263 : vector<4x1xf32>
    %270 = arith.subf %268, %269 : vector<4x1xf32>
    %271 = vector.broadcast %263 : vector<4x1xf32> to vector<4x256xf32>
    %272 = arith.subf %255, %271 : vector<4x256xf32>
    %cst_181 = arith.constant 9.99999974E-6 : f32
    %273 = vector.broadcast %cst_181 : f32 to vector<4x1xf32>
    %274 = arith.addf %270, %273 : vector<4x1xf32>
    %275 = math.rsqrt %274 : vector<4x1xf32>
    %276 = vector.broadcast %275 : vector<4x1xf32> to vector<4x256xf32>
    %277 = arith.mulf %272, %276 : vector<4x256xf32>
    %278 = arith.addf %133, %277 : vector<4x256xf32>
    %cst_182 = arith.constant 0.000000e+00 : f32
    %279 = vector.shape_cast %2 : vector<1x256xi1> to vector<1x256xi1>
    %280 = vector.broadcast %279 : vector<1x256xi1> to vector<4x256xi1>
    %281 = vector.broadcast %cst_182 : f32 to vector<4x256xf32>
    %282 = arith.select %280, %278, %281 : vector<4x256xi1>, vector<4x256xf32>
    %cst_183 = arith.constant 0.000000e+00 : f32
    %283 = vector.broadcast %cst_183 : f32 to vector<4x256xf32>
    %284 = arith.cmpf ogt, %133, %283 : vector<4x256xf32>
    %cst_184 = arith.constant 0.00999999977 : f32
    %285 = vector.broadcast %cst_184 : f32 to vector<4x256xf32>
    %286 = arith.mulf %285, %133 : vector<4x256xf32>
    %287 = arith.select %284, %133, %286 : vector<4x256xi1>, vector<4x256xf32>
    %288 = vector.extract_strided_slice %287 {offsets = [0, 0], sizes = [4, 213], strides = [1, 1]} : vector<4x256xf32> to vector<4x213xf32>
    %c0_185 = arith.constant 0 : index
    %c43_186 = arith.constant 43 : index
    %289 = vector.load %arg12[%c0_185, %c43_186] : memref<108x256xf32, #tpu.memory_space<vmem>>, vector<4x213xf32>
    tpu.vector_store %arg12[%c0_185, %c43_186], %288 {strides = array<i32>} : memref<108x256xf32, #tpu.memory_space<vmem>>, vector<4x213xf32>,
    %290 = vector.extract_strided_slice %287 {offsets = [0, 0], sizes = [4, 214], strides = [1, 1]} : vector<4x256xf32> to vector<4x214xf32>
    %c4_187 = arith.constant 4 : index
    %c42_188 = arith.constant 42 : index
    %291 = vector.load %arg12[%c4_187, %c42_188] : memref<108x256xf32, #tpu.memory_space<vmem>>, vector<4x214xf32>
    tpu.vector_store %arg12[%c4_187, %c42_188], %290 {strides = array<i32>} : memref<108x256xf32, #tpu.memory_space<vmem>>, vector<4x214xf32>,
    %292 = vector.extract_strided_slice %287 {offsets = [0, 0], sizes = [4, 215], strides = [1, 1]} : vector<4x256xf32> to vector<4x215xf32>
    %c8_189 = arith.constant 8 : index
    %c41_190 = arith.constant 41 : index
    %293 = vector.load %arg12[%c8_189, %c41_190] : memref<108x256xf32, #tpu.memory_space<vmem>>, vector<4x215xf32>
    tpu.vector_store %arg12[%c8_189, %c41_190], %292 {strides = array<i32>} : memref<108x256xf32, #tpu.memory_space<vmem>>, vector<4x215xf32>,
    %294 = vector.extract_strided_slice %287 {offsets = [0, 0], sizes = [4, 219], strides = [1, 1]} : vector<4x256xf32> to vector<4x219xf32>
    %c12_191 = arith.constant 12 : index
    %c37_192 = arith.constant 37 : index
    %295 = vector.load %arg12[%c12_191, %c37_192] : memref<108x256xf32, #tpu.memory_space<vmem>>, vector<4x219xf32>
    tpu.vector_store %arg12[%c12_191, %c37_192], %294 {strides = array<i32>} : memref<108x256xf32, #tpu.memory_space<vmem>>, vector<4x219xf32>,
    %296 = vector.extract_strided_slice %287 {offsets = [0, 0], sizes = [4, 220], strides = [1, 1]} : vector<4x256xf32> to vector<4x220xf32>
    %c16_193 = arith.constant 16 : index
    %c36_194 = arith.constant 36 : index
    %297 = vector.load %arg12[%c16_193, %c36_194] : memref<108x256xf32, #tpu.memory_space<vmem>>, vector<4x220xf32>
    tpu.vector_store %arg12[%c16_193, %c36_194], %296 {strides = array<i32>} : memref<108x256xf32, #tpu.memory_space<vmem>>, vector<4x220xf32>,
    %298 = vector.extract_strided_slice %287 {offsets = [0, 0], sizes = [4, 221], strides = [1, 1]} : vector<4x256xf32> to vector<4x221xf32>
    %c20_195 = arith.constant 20 : index
    %c35_196 = arith.constant 35 : index
    %299 = vector.load %arg12[%c20_195, %c35_196] : memref<108x256xf32, #tpu.memory_space<vmem>>, vector<4x221xf32>
    tpu.vector_store %arg12[%c20_195, %c35_196], %298 {strides = array<i32>} : memref<108x256xf32, #tpu.memory_space<vmem>>, vector<4x221xf32>,
    %300 = vector.extract_strided_slice %287 {offsets = [0, 0], sizes = [4, 225], strides = [1, 1]} : vector<4x256xf32> to vector<4x225xf32>
    %c24_197 = arith.constant 24 : index
    %c31_198 = arith.constant 31 : index
    %301 = vector.load %arg12[%c24_197, %c31_198] : memref<108x256xf32, #tpu.memory_space<vmem>>, vector<4x225xf32>
    tpu.vector_store %arg12[%c24_197, %c31_198], %300 {strides = array<i32>} : memref<108x256xf32, #tpu.memory_space<vmem>>, vector<4x225xf32>,
    %302 = vector.extract_strided_slice %287 {offsets = [0, 0], sizes = [4, 226], strides = [1, 1]} : vector<4x256xf32> to vector<4x226xf32>
    %c28_199 = arith.constant 28 : index
    %c30_200 = arith.constant 30 : index
    %303 = vector.load %arg12[%c28_199, %c30_200] : memref<108x256xf32, #tpu.memory_space<vmem>>, vector<4x226xf32>
    tpu.vector_store %arg12[%c28_199, %c30_200], %302 {strides = array<i32>} : memref<108x256xf32, #tpu.memory_space<vmem>>, vector<4x226xf32>,
    %304 = vector.extract_strided_slice %287 {offsets = [0, 0], sizes = [4, 227], strides = [1, 1]} : vector<4x256xf32> to vector<4x227xf32>
    %c32_201 = arith.constant 32 : index
    %c29_202 = arith.constant 29 : index
    %305 = vector.load %arg12[%c32_201, %c29_202] : memref<108x256xf32, #tpu.memory_space<vmem>>, vector<4x227xf32>
    tpu.vector_store %arg12[%c32_201, %c29_202], %304 {strides = array<i32>} : memref<108x256xf32, #tpu.memory_space<vmem>>, vector<4x227xf32>,
    %306 = vector.extract_strided_slice %287 {offsets = [0, 0], sizes = [4, 249], strides = [1, 1]} : vector<4x256xf32> to vector<4x249xf32>
    %c36_203 = arith.constant 36 : index
    %c7_204 = arith.constant 7 : index
    %307 = vector.load %arg12[%c36_203, %c7_204] : memref<108x256xf32, #tpu.memory_space<vmem>>, vector<4x249xf32>
    tpu.vector_store %arg12[%c36_203, %c7_204], %306 {strides = array<i32>} : memref<108x256xf32, #tpu.memory_space<vmem>>, vector<4x249xf32>,
    %308 = vector.extract_strided_slice %287 {offsets = [0, 0], sizes = [4, 250], strides = [1, 1]} : vector<4x256xf32> to vector<4x250xf32>
    %c40_205 = arith.constant 40 : index
    %c6_206 = arith.constant 6 : index
    %309 = vector.load %arg12[%c40_205, %c6_206] : memref<108x256xf32, #tpu.memory_space<vmem>>, vector<4x250xf32>
    tpu.vector_store %arg12[%c40_205, %c6_206], %308 {strides = array<i32>} : memref<108x256xf32, #tpu.memory_space<vmem>>, vector<4x250xf32>,
    %310 = vector.extract_strided_slice %287 {offsets = [0, 0], sizes = [4, 251], strides = [1, 1]} : vector<4x256xf32> to vector<4x251xf32>
    %c44_207 = arith.constant 44 : index
    %c5_208 = arith.constant 5 : index
    %311 = vector.load %arg12[%c44_207, %c5_208] : memref<108x256xf32, #tpu.memory_space<vmem>>, vector<4x251xf32>
    tpu.vector_store %arg12[%c44_207, %c5_208], %310 {strides = array<i32>} : memref<108x256xf32, #tpu.memory_space<vmem>>, vector<4x251xf32>,
    %312 = vector.extract_strided_slice %287 {offsets = [0, 0], sizes = [4, 255], strides = [1, 1]} : vector<4x256xf32> to vector<4x255xf32>
    %c48_209 = arith.constant 48 : index
    %c1_210 = arith.constant 1 : index
    %313 = vector.load %arg12[%c48_209, %c1_210] : memref<108x256xf32, #tpu.memory_space<vmem>>, vector<4x255xf32>
    tpu.vector_store %arg12[%c48_209, %c1_210], %312 {strides = array<i32>} : memref<108x256xf32, #tpu.memory_space<vmem>>, vector<4x255xf32>,
    %c52_211 = arith.constant 52 : index
    %c0_212 = arith.constant 0 : index
    %314 = vector.load %arg12[%c52_211, %c0_212] : memref<108x256xf32, #tpu.memory_space<vmem>>, vector<4x256xf32>
    tpu.vector_store %arg12[%c52_211, %c0_212], %287 {strides = array<i32>} : memref<108x256xf32, #tpu.memory_space<vmem>>, vector<4x256xf32>,
    %315 = vector.extract_strided_slice %287 {offsets = [0, 1], sizes = [4, 255], strides = [1, 1]} : vector<4x256xf32> to vector<4x255xf32>
    %c56_213 = arith.constant 56 : index
    %c0_214 = arith.constant 0 : index
    %316 = vector.load %arg12[%c56_213, %c0_214] : memref<108x256xf32, #tpu.memory_space<vmem>>, vector<4x255xf32>
    tpu.vector_store %arg12[%c56_213, %c0_214], %315 {strides = array<i32>} : memref<108x256xf32, #tpu.memory_space<vmem>>, vector<4x255xf32>,
    %317 = vector.extract_strided_slice %287 {offsets = [0, 5], sizes = [4, 251], strides = [1, 1]} : vector<4x256xf32> to vector<4x251xf32>
    %c60_215 = arith.constant 60 : index
    %c0_216 = arith.constant 0 : index
    %318 = vector.load %arg12[%c60_215, %c0_216] : memref<108x256xf32, #tpu.memory_space<vmem>>, vector<4x251xf32>
    tpu.vector_store %arg12[%c60_215, %c0_216], %317 {strides = array<i32>} : memref<108x256xf32, #tpu.memory_space<vmem>>, vector<4x251xf32>,
    %319 = vector.extract_strided_slice %287 {offsets = [0, 6], sizes = [4, 250], strides = [1, 1]} : vector<4x256xf32> to vector<4x250xf32>
    %c64_217 = arith.constant 64 : index
    %c0_218 = arith.constant 0 : index
    %320 = vector.load %arg12[%c64_217, %c0_218] : memref<108x256xf32, #tpu.memory_space<vmem>>, vector<4x250xf32>
    tpu.vector_store %arg12[%c64_217, %c0_218], %319 {strides = array<i32>} : memref<108x256xf32, #tpu.memory_space<vmem>>, vector<4x250xf32>,
    %321 = vector.extract_strided_slice %287 {offsets = [0, 7], sizes = [4, 249], strides = [1, 1]} : vector<4x256xf32> to vector<4x249xf32>
    %c68_219 = arith.constant 68 : index
    %c0_220 = arith.constant 0 : index
    %322 = vector.load %arg12[%c68_219, %c0_220] : memref<108x256xf32, #tpu.memory_space<vmem>>, vector<4x249xf32>
    tpu.vector_store %arg12[%c68_219, %c0_220], %321 {strides = array<i32>} : memref<108x256xf32, #tpu.memory_space<vmem>>, vector<4x249xf32>,
    %323 = vector.extract_strided_slice %287 {offsets = [0, 29], sizes = [4, 227], strides = [1, 1]} : vector<4x256xf32> to vector<4x227xf32>
    %c72_221 = arith.constant 72 : index
    %c0_222 = arith.constant 0 : index
    %324 = vector.load %arg12[%c72_221, %c0_222] : memref<108x256xf32, #tpu.memory_space<vmem>>, vector<4x227xf32>
    tpu.vector_store %arg12[%c72_221, %c0_222], %323 {strides = array<i32>} : memref<108x256xf32, #tpu.memory_space<vmem>>, vector<4x227xf32>,
    %325 = vector.extract_strided_slice %287 {offsets = [0, 30], sizes = [4, 226], strides = [1, 1]} : vector<4x256xf32> to vector<4x226xf32>
    %c76_223 = arith.constant 76 : index
    %c0_224 = arith.constant 0 : index
    %326 = vector.load %arg12[%c76_223, %c0_224] : memref<108x256xf32, #tpu.memory_space<vmem>>, vector<4x226xf32>
    tpu.vector_store %arg12[%c76_223, %c0_224], %325 {strides = array<i32>} : memref<108x256xf32, #tpu.memory_space<vmem>>, vector<4x226xf32>,
    %327 = vector.extract_strided_slice %287 {offsets = [0, 31], sizes = [4, 225], strides = [1, 1]} : vector<4x256xf32> to vector<4x225xf32>
    %c80_225 = arith.constant 80 : index
    %c0_226 = arith.constant 0 : index
    %328 = vector.load %arg12[%c80_225, %c0_226] : memref<108x256xf32, #tpu.memory_space<vmem>>, vector<4x225xf32>
    tpu.vector_store %arg12[%c80_225, %c0_226], %327 {strides = array<i32>} : memref<108x256xf32, #tpu.memory_space<vmem>>, vector<4x225xf32>,
    %329 = vector.extract_strided_slice %287 {offsets = [0, 35], sizes = [4, 221], strides = [1, 1]} : vector<4x256xf32> to vector<4x221xf32>
    %c84_227 = arith.constant 84 : index
    %c0_228 = arith.constant 0 : index
    %330 = vector.load %arg12[%c84_227, %c0_228] : memref<108x256xf32, #tpu.memory_space<vmem>>, vector<4x221xf32>
    tpu.vector_store %arg12[%c84_227, %c0_228], %329 {strides = array<i32>} : memref<108x256xf32, #tpu.memory_space<vmem>>, vector<4x221xf32>,
    %331 = vector.extract_strided_slice %287 {offsets = [0, 36], sizes = [4, 220], strides = [1, 1]} : vector<4x256xf32> to vector<4x220xf32>
    %c88_229 = arith.constant 88 : index
    %c0_230 = arith.constant 0 : index
    %332 = vector.load %arg12[%c88_229, %c0_230] : memref<108x256xf32, #tpu.memory_space<vmem>>, vector<4x220xf32>
    tpu.vector_store %arg12[%c88_229, %c0_230], %331 {strides = array<i32>} : memref<108x256xf32, #tpu.memory_space<vmem>>, vector<4x220xf32>,
    %333 = vector.extract_strided_slice %287 {offsets = [0, 37], sizes = [4, 219], strides = [1, 1]} : vector<4x256xf32> to vector<4x219xf32>
    %c92_231 = arith.constant 92 : index
    %c0_232 = arith.constant 0 : index
    %334 = vector.load %arg12[%c92_231, %c0_232] : memref<108x256xf32, #tpu.memory_space<vmem>>, vector<4x219xf32>
    tpu.vector_store %arg12[%c92_231, %c0_232], %333 {strides = array<i32>} : memref<108x256xf32, #tpu.memory_space<vmem>>, vector<4x219xf32>,
    %335 = vector.extract_strided_slice %287 {offsets = [0, 41], sizes = [4, 215], strides = [1, 1]} : vector<4x256xf32> to vector<4x215xf32>
    %c96_233 = arith.constant 96 : index
    %c0_234 = arith.constant 0 : index
    %336 = vector.load %arg12[%c96_233, %c0_234] : memref<108x256xf32, #tpu.memory_space<vmem>>, vector<4x215xf32>
    tpu.vector_store %arg12[%c96_233, %c0_234], %335 {strides = array<i32>} : memref<108x256xf32, #tpu.memory_space<vmem>>, vector<4x215xf32>,
    %337 = vector.extract_strided_slice %287 {offsets = [0, 42], sizes = [4, 214], strides = [1, 1]} : vector<4x256xf32> to vector<4x214xf32>
    %c100_235 = arith.constant 100 : index
    %c0_236 = arith.constant 0 : index
    %338 = vector.load %arg12[%c100_235, %c0_236] : memref<108x256xf32, #tpu.memory_space<vmem>>, vector<4x214xf32>
    tpu.vector_store %arg12[%c100_235, %c0_236], %337 {strides = array<i32>} : memref<108x256xf32, #tpu.memory_space<vmem>>, vector<4x214xf32>,
    %339 = vector.extract_strided_slice %287 {offsets = [0, 43], sizes = [4, 213], strides = [1, 1]} : vector<4x256xf32> to vector<4x213xf32>
    %c104_237 = arith.constant 104 : index
    %c0_238 = arith.constant 0 : index
    %340 = vector.load %arg12[%c104_237, %c0_238] : memref<108x256xf32, #tpu.memory_space<vmem>>, vector<4x213xf32>
    tpu.vector_store %arg12[%c104_237, %c0_238], %339 {strides = array<i32>} : memref<108x256xf32, #tpu.memory_space<vmem>>, vector<4x213xf32>,
    %c0_239 = arith.constant 0 : index
    %c0_240 = arith.constant 0 : index
    %341 = vector.load %arg8[%c0_239, %c0_240] : memref<4x108xf32, #tpu.memory_space<vmem>>, vector<4x108xf32>
    %c0_241 = arith.constant 0 : index
    %c0_242 = arith.constant 0 : index
    %342 = vector.load %arg12[%c0_241, %c0_242] : memref<108x256xf32, #tpu.memory_space<vmem>>, vector<108x256xf32>
    %cst_243 = arith.constant dense<0.000000e+00> : vector<4x256xf32>
    %343 = tpu.matmul %341, %342, %cst_243 {dimension_numbers = #tpu.dot_dimension_numbers<[1], [0], [0], [1], [0, 0, 1, 1], [], []>} : vector<4x108xf32>, vector<108x256xf32>, vector<4x256xf32> -> vector<4x256xf32>
    %cst_244 = arith.constant 0.000000e+00 : f32
    %344 = vector.shape_cast %2 : vector<1x256xi1> to vector<1x256xi1>
    %345 = vector.broadcast %344 : vector<1x256xi1> to vector<4x256xi1>
    %346 = vector.broadcast %cst_244 : f32 to vector<4x256xf32>
    %347 = arith.select %345, %343, %346 : vector<4x256xi1>, vector<4x256xf32>
    %cst_245 = arith.constant dense<0.000000e+00> : vector<4xf32>
    %348 = vector.multi_reduction <add>, %347, %cst_245 [1] : vector<4x256xf32> to vector<4xf32>
    %349 = vector.shape_cast %348 : vector<4xf32> to vector<4x1xf32>
    %cst_246 = arith.constant 1.562500e-02 : f32
    %350 = vector.broadcast %cst_246 : f32 to vector<4x1xf32>
    %351 = arith.mulf %349, %350 : vector<4x1xf32>
    %352 = arith.mulf %347, %347 : vector<4x256xf32>
    %cst_247 = arith.constant dense<0.000000e+00> : vector<4xf32>
    %353 = vector.multi_reduction <add>, %352, %cst_247 [1] : vector<4x256xf32> to vector<4xf32>
    %354 = vector.shape_cast %353 : vector<4xf32> to vector<4x1xf32>
    %cst_248 = arith.constant 1.562500e-02 : f32
    %355 = vector.broadcast %cst_248 : f32 to vector<4x1xf32>
    %356 = arith.mulf %354, %355 : vector<4x1xf32>
    %357 = arith.mulf %351, %351 : vector<4x1xf32>
    %358 = arith.subf %356, %357 : vector<4x1xf32>
    %359 = vector.broadcast %351 : vector<4x1xf32> to vector<4x256xf32>
    %360 = arith.subf %343, %359 : vector<4x256xf32>
    %cst_249 = arith.constant 9.99999974E-6 : f32
    %361 = vector.broadcast %cst_249 : f32 to vector<4x1xf32>
    %362 = arith.addf %358, %361 : vector<4x1xf32>
    %363 = math.rsqrt %362 : vector<4x1xf32>
    %364 = vector.broadcast %363 : vector<4x1xf32> to vector<4x256xf32>
    %365 = arith.mulf %360, %364 : vector<4x256xf32>
    %366 = vector.extract_strided_slice %282 {offsets = [0, 0], sizes = [4, 213], strides = [1, 1]} : vector<4x256xf32> to vector<4x213xf32>
    %c0_250 = arith.constant 0 : index
    %c43_251 = arith.constant 43 : index
    %367 = vector.load %arg12[%c0_250, %c43_251] : memref<108x256xf32, #tpu.memory_space<vmem>>, vector<4x213xf32>
    tpu.vector_store %arg12[%c0_250, %c43_251], %366 {strides = array<i32>} : memref<108x256xf32, #tpu.memory_space<vmem>>, vector<4x213xf32>,
    %368 = vector.extract_strided_slice %282 {offsets = [0, 0], sizes = [4, 214], strides = [1, 1]} : vector<4x256xf32> to vector<4x214xf32>
    %c4_252 = arith.constant 4 : index
    %c42_253 = arith.constant 42 : index
    %369 = vector.load %arg12[%c4_252, %c42_253] : memref<108x256xf32, #tpu.memory_space<vmem>>, vector<4x214xf32>
    tpu.vector_store %arg12[%c4_252, %c42_253], %368 {strides = array<i32>} : memref<108x256xf32, #tpu.memory_space<vmem>>, vector<4x214xf32>,
    %370 = vector.extract_strided_slice %282 {offsets = [0, 0], sizes = [4, 215], strides = [1, 1]} : vector<4x256xf32> to vector<4x215xf32>
    %c8_254 = arith.constant 8 : index
    %c41_255 = arith.constant 41 : index
    %371 = vector.load %arg12[%c8_254, %c41_255] : memref<108x256xf32, #tpu.memory_space<vmem>>, vector<4x215xf32>
    tpu.vector_store %arg12[%c8_254, %c41_255], %370 {strides = array<i32>} : memref<108x256xf32, #tpu.memory_space<vmem>>, vector<4x215xf32>,
    %372 = vector.extract_strided_slice %282 {offsets = [0, 0], sizes = [4, 219], strides = [1, 1]} : vector<4x256xf32> to vector<4x219xf32>
    %c12_256 = arith.constant 12 : index
    %c37_257 = arith.constant 37 : index
    %373 = vector.load %arg12[%c12_256, %c37_257] : memref<108x256xf32, #tpu.memory_space<vmem>>, vector<4x219xf32>
    tpu.vector_store %arg12[%c12_256, %c37_257], %372 {strides = array<i32>} : memref<108x256xf32, #tpu.memory_space<vmem>>, vector<4x219xf32>,
    %374 = vector.extract_strided_slice %282 {offsets = [0, 0], sizes = [4, 220], strides = [1, 1]} : vector<4x256xf32> to vector<4x220xf32>
    %c16_258 = arith.constant 16 : index
    %c36_259 = arith.constant 36 : index
    %375 = vector.load %arg12[%c16_258, %c36_259] : memref<108x256xf32, #tpu.memory_space<vmem>>, vector<4x220xf32>
    tpu.vector_store %arg12[%c16_258, %c36_259], %374 {strides = array<i32>} : memref<108x256xf32, #tpu.memory_space<vmem>>, vector<4x220xf32>,
    %376 = vector.extract_strided_slice %282 {offsets = [0, 0], sizes = [4, 221], strides = [1, 1]} : vector<4x256xf32> to vector<4x221xf32>
    %c20_260 = arith.constant 20 : index
    %c35_261 = arith.constant 35 : index
    %377 = vector.load %arg12[%c20_260, %c35_261] : memref<108x256xf32, #tpu.memory_space<vmem>>, vector<4x221xf32>
    tpu.vector_store %arg12[%c20_260, %c35_261], %376 {strides = array<i32>} : memref<108x256xf32, #tpu.memory_space<vmem>>, vector<4x221xf32>,
    %378 = vector.extract_strided_slice %282 {offsets = [0, 0], sizes = [4, 225], strides = [1, 1]} : vector<4x256xf32> to vector<4x225xf32>
    %c24_262 = arith.constant 24 : index
    %c31_263 = arith.constant 31 : index
    %379 = vector.load %arg12[%c24_262, %c31_263] : memref<108x256xf32, #tpu.memory_space<vmem>>, vector<4x225xf32>
    tpu.vector_store %arg12[%c24_262, %c31_263], %378 {strides = array<i32>} : memref<108x256xf32, #tpu.memory_space<vmem>>, vector<4x225xf32>,
    %380 = vector.extract_strided_slice %282 {offsets = [0, 0], sizes = [4, 226], strides = [1, 1]} : vector<4x256xf32> to vector<4x226xf32>
    %c28_264 = arith.constant 28 : index
    %c30_265 = arith.constant 30 : index
    %381 = vector.load %arg12[%c28_264, %c30_265] : memref<108x256xf32, #tpu.memory_space<vmem>>, vector<4x226xf32>
    tpu.vector_store %arg12[%c28_264, %c30_265], %380 {strides = array<i32>} : memref<108x256xf32, #tpu.memory_space<vmem>>, vector<4x226xf32>,
    %382 = vector.extract_strided_slice %282 {offsets = [0, 0], sizes = [4, 227], strides = [1, 1]} : vector<4x256xf32> to vector<4x227xf32>
    %c32_266 = arith.constant 32 : index
    %c29_267 = arith.constant 29 : index
    %383 = vector.load %arg12[%c32_266, %c29_267] : memref<108x256xf32, #tpu.memory_space<vmem>>, vector<4x227xf32>
    tpu.vector_store %arg12[%c32_266, %c29_267], %382 {strides = array<i32>} : memref<108x256xf32, #tpu.memory_space<vmem>>, vector<4x227xf32>,
    %384 = vector.extract_strided_slice %282 {offsets = [0, 0], sizes = [4, 249], strides = [1, 1]} : vector<4x256xf32> to vector<4x249xf32>
    %c36_268 = arith.constant 36 : index
    %c7_269 = arith.constant 7 : index
    %385 = vector.load %arg12[%c36_268, %c7_269] : memref<108x256xf32, #tpu.memory_space<vmem>>, vector<4x249xf32>
    tpu.vector_store %arg12[%c36_268, %c7_269], %384 {strides = array<i32>} : memref<108x256xf32, #tpu.memory_space<vmem>>, vector<4x249xf32>,
    %386 = vector.extract_strided_slice %282 {offsets = [0, 0], sizes = [4, 250], strides = [1, 1]} : vector<4x256xf32> to vector<4x250xf32>
    %c40_270 = arith.constant 40 : index
    %c6_271 = arith.constant 6 : index
    %387 = vector.load %arg12[%c40_270, %c6_271] : memref<108x256xf32, #tpu.memory_space<vmem>>, vector<4x250xf32>
    tpu.vector_store %arg12[%c40_270, %c6_271], %386 {strides = array<i32>} : memref<108x256xf32, #tpu.memory_space<vmem>>, vector<4x250xf32>,
    %388 = vector.extract_strided_slice %282 {offsets = [0, 0], sizes = [4, 251], strides = [1, 1]} : vector<4x256xf32> to vector<4x251xf32>
    %c44_272 = arith.constant 44 : index
    %c5_273 = arith.constant 5 : index
    %389 = vector.load %arg12[%c44_272, %c5_273] : memref<108x256xf32, #tpu.memory_space<vmem>>, vector<4x251xf32>
    tpu.vector_store %arg12[%c44_272, %c5_273], %388 {strides = array<i32>} : memref<108x256xf32, #tpu.memory_space<vmem>>, vector<4x251xf32>,
    %390 = vector.extract_strided_slice %282 {offsets = [0, 0], sizes = [4, 255], strides = [1, 1]} : vector<4x256xf32> to vector<4x255xf32>
    %c48_274 = arith.constant 48 : index
    %c1_275 = arith.constant 1 : index
    %391 = vector.load %arg12[%c48_274, %c1_275] : memref<108x256xf32, #tpu.memory_space<vmem>>, vector<4x255xf32>
    tpu.vector_store %arg12[%c48_274, %c1_275], %390 {strides = array<i32>} : memref<108x256xf32, #tpu.memory_space<vmem>>, vector<4x255xf32>,
    %c52_276 = arith.constant 52 : index
    %c0_277 = arith.constant 0 : index
    %392 = vector.load %arg12[%c52_276, %c0_277] : memref<108x256xf32, #tpu.memory_space<vmem>>, vector<4x256xf32>
    tpu.vector_store %arg12[%c52_276, %c0_277], %282 {strides = array<i32>} : memref<108x256xf32, #tpu.memory_space<vmem>>, vector<4x256xf32>,
    %393 = vector.extract_strided_slice %282 {offsets = [0, 1], sizes = [4, 255], strides = [1, 1]} : vector<4x256xf32> to vector<4x255xf32>
    %c56_278 = arith.constant 56 : index
    %c0_279 = arith.constant 0 : index
    %394 = vector.load %arg12[%c56_278, %c0_279] : memref<108x256xf32, #tpu.memory_space<vmem>>, vector<4x255xf32>
    tpu.vector_store %arg12[%c56_278, %c0_279], %393 {strides = array<i32>} : memref<108x256xf32, #tpu.memory_space<vmem>>, vector<4x255xf32>,
    %395 = vector.extract_strided_slice %282 {offsets = [0, 5], sizes = [4, 251], strides = [1, 1]} : vector<4x256xf32> to vector<4x251xf32>
    %c60_280 = arith.constant 60 : index
    %c0_281 = arith.constant 0 : index
    %396 = vector.load %arg12[%c60_280, %c0_281] : memref<108x256xf32, #tpu.memory_space<vmem>>, vector<4x251xf32>
    tpu.vector_store %arg12[%c60_280, %c0_281], %395 {strides = array<i32>} : memref<108x256xf32, #tpu.memory_space<vmem>>, vector<4x251xf32>,
    %397 = vector.extract_strided_slice %282 {offsets = [0, 6], sizes = [4, 250], strides = [1, 1]} : vector<4x256xf32> to vector<4x250xf32>
    %c64_282 = arith.constant 64 : index
    %c0_283 = arith.constant 0 : index
    %398 = vector.load %arg12[%c64_282, %c0_283] : memref<108x256xf32, #tpu.memory_space<vmem>>, vector<4x250xf32>
    tpu.vector_store %arg12[%c64_282, %c0_283], %397 {strides = array<i32>} : memref<108x256xf32, #tpu.memory_space<vmem>>, vector<4x250xf32>,
    %399 = vector.extract_strided_slice %282 {offsets = [0, 7], sizes = [4, 249], strides = [1, 1]} : vector<4x256xf32> to vector<4x249xf32>
    %c68_284 = arith.constant 68 : index
    %c0_285 = arith.constant 0 : index
    %400 = vector.load %arg12[%c68_284, %c0_285] : memref<108x256xf32, #tpu.memory_space<vmem>>, vector<4x249xf32>
    tpu.vector_store %arg12[%c68_284, %c0_285], %399 {strides = array<i32>} : memref<108x256xf32, #tpu.memory_space<vmem>>, vector<4x249xf32>,
    %401 = vector.extract_strided_slice %282 {offsets = [0, 29], sizes = [4, 227], strides = [1, 1]} : vector<4x256xf32> to vector<4x227xf32>
    %c72_286 = arith.constant 72 : index
    %c0_287 = arith.constant 0 : index
    %402 = vector.load %arg12[%c72_286, %c0_287] : memref<108x256xf32, #tpu.memory_space<vmem>>, vector<4x227xf32>
    tpu.vector_store %arg12[%c72_286, %c0_287], %401 {strides = array<i32>} : memref<108x256xf32, #tpu.memory_space<vmem>>, vector<4x227xf32>,
    %403 = vector.extract_strided_slice %282 {offsets = [0, 30], sizes = [4, 226], strides = [1, 1]} : vector<4x256xf32> to vector<4x226xf32>
    %c76_288 = arith.constant 76 : index
    %c0_289 = arith.constant 0 : index
    %404 = vector.load %arg12[%c76_288, %c0_289] : memref<108x256xf32, #tpu.memory_space<vmem>>, vector<4x226xf32>
    tpu.vector_store %arg12[%c76_288, %c0_289], %403 {strides = array<i32>} : memref<108x256xf32, #tpu.memory_space<vmem>>, vector<4x226xf32>,
    %405 = vector.extract_strided_slice %282 {offsets = [0, 31], sizes = [4, 225], strides = [1, 1]} : vector<4x256xf32> to vector<4x225xf32>
    %c80_290 = arith.constant 80 : index
    %c0_291 = arith.constant 0 : index
    %406 = vector.load %arg12[%c80_290, %c0_291] : memref<108x256xf32, #tpu.memory_space<vmem>>, vector<4x225xf32>
    tpu.vector_store %arg12[%c80_290, %c0_291], %405 {strides = array<i32>} : memref<108x256xf32, #tpu.memory_space<vmem>>, vector<4x225xf32>,
    %407 = vector.extract_strided_slice %282 {offsets = [0, 35], sizes = [4, 221], strides = [1, 1]} : vector<4x256xf32> to vector<4x221xf32>
    %c84_292 = arith.constant 84 : index
    %c0_293 = arith.constant 0 : index
    %408 = vector.load %arg12[%c84_292, %c0_293] : memref<108x256xf32, #tpu.memory_space<vmem>>, vector<4x221xf32>
    tpu.vector_store %arg12[%c84_292, %c0_293], %407 {strides = array<i32>} : memref<108x256xf32, #tpu.memory_space<vmem>>, vector<4x221xf32>,
    %409 = vector.extract_strided_slice %282 {offsets = [0, 36], sizes = [4, 220], strides = [1, 1]} : vector<4x256xf32> to vector<4x220xf32>
    %c88_294 = arith.constant 88 : index
    %c0_295 = arith.constant 0 : index
    %410 = vector.load %arg12[%c88_294, %c0_295] : memref<108x256xf32, #tpu.memory_space<vmem>>, vector<4x220xf32>
    tpu.vector_store %arg12[%c88_294, %c0_295], %409 {strides = array<i32>} : memref<108x256xf32, #tpu.memory_space<vmem>>, vector<4x220xf32>,
    %411 = vector.extract_strided_slice %282 {offsets = [0, 37], sizes = [4, 219], strides = [1, 1]} : vector<4x256xf32> to vector<4x219xf32>
    %c92_296 = arith.constant 92 : index
    %c0_297 = arith.constant 0 : index
    %412 = vector.load %arg12[%c92_296, %c0_297] : memref<108x256xf32, #tpu.memory_space<vmem>>, vector<4x219xf32>
    tpu.vector_store %arg12[%c92_296, %c0_297], %411 {strides = array<i32>} : memref<108x256xf32, #tpu.memory_space<vmem>>, vector<4x219xf32>,
    %413 = vector.extract_strided_slice %282 {offsets = [0, 41], sizes = [4, 215], strides = [1, 1]} : vector<4x256xf32> to vector<4x215xf32>
    %c96_298 = arith.constant 96 : index
    %c0_299 = arith.constant 0 : index
    %414 = vector.load %arg12[%c96_298, %c0_299] : memref<108x256xf32, #tpu.memory_space<vmem>>, vector<4x215xf32>
    tpu.vector_store %arg12[%c96_298, %c0_299], %413 {strides = array<i32>} : memref<108x256xf32, #tpu.memory_space<vmem>>, vector<4x215xf32>,
    %415 = vector.extract_strided_slice %282 {offsets = [0, 42], sizes = [4, 214], strides = [1, 1]} : vector<4x256xf32> to vector<4x214xf32>
    %c100_300 = arith.constant 100 : index
    %c0_301 = arith.constant 0 : index
    %416 = vector.load %arg12[%c100_300, %c0_301] : memref<108x256xf32, #tpu.memory_space<vmem>>, vector<4x214xf32>
    tpu.vector_store %arg12[%c100_300, %c0_301], %415 {strides = array<i32>} : memref<108x256xf32, #tpu.memory_space<vmem>>, vector<4x214xf32>,
    %417 = vector.extract_strided_slice %282 {offsets = [0, 43], sizes = [4, 213], strides = [1, 1]} : vector<4x256xf32> to vector<4x213xf32>
    %c104_302 = arith.constant 104 : index
    %c0_303 = arith.constant 0 : index
    %418 = vector.load %arg12[%c104_302, %c0_303] : memref<108x256xf32, #tpu.memory_space<vmem>>, vector<4x213xf32>
    tpu.vector_store %arg12[%c104_302, %c0_303], %417 {strides = array<i32>} : memref<108x256xf32, #tpu.memory_space<vmem>>, vector<4x213xf32>,
    %c0_304 = arith.constant 0 : index
    %c0_305 = arith.constant 0 : index
    %419 = vector.load %arg2[%c0_304, %c0_305] : memref<4x108xf32, #tpu.memory_space<vmem>>, vector<4x108xf32>
    %c0_306 = arith.constant 0 : index
    %c0_307 = arith.constant 0 : index
    %420 = vector.load %arg12[%c0_306, %c0_307] : memref<108x256xf32, #tpu.memory_space<vmem>>, vector<108x256xf32>
    %cst_308 = arith.constant dense<0.000000e+00> : vector<4x256xf32>
    %421 = tpu.matmul %419, %420, %cst_308 {dimension_numbers = #tpu.dot_dimension_numbers<[1], [0], [0], [1], [0, 0, 1, 1], [], []>} : vector<4x108xf32>, vector<108x256xf32>, vector<4x256xf32> -> vector<4x256xf32>
    %422 = arith.addf %365, %421 : vector<4x256xf32>
    %cst_309 = arith.constant 0.000000e+00 : f32
    %423 = vector.shape_cast %2 : vector<1x256xi1> to vector<1x256xi1>
    %424 = vector.broadcast %423 : vector<1x256xi1> to vector<4x256xi1>
    %425 = vector.broadcast %cst_309 : f32 to vector<4x256xf32>
    %426 = arith.select %424, %422, %425 : vector<4x256xi1>, vector<4x256xf32>
    %c0_310 = arith.constant 0 : index
    %c0_311 = arith.constant 0 : index
    %c0_312 = arith.constant 0 : index
    %427 = vector.load %arg11[%c0_310, %c0_311, %c0_312] : memref<1x12x256xf32, #tpu.memory_space<vmem>>, vector<1x4x256xf32>
    %428 = vector.shape_cast %427 : vector<1x4x256xf32> to vector<4x256xf32>
    %429 = vector.shape_cast %194 : vector<4x256xf32> to vector<1x4x256xf32>
    tpu.vector_store %arg11[%c0_310, %c0_311, %c0_312], %429 {strides = array<i32>} : memref<1x12x256xf32, #tpu.memory_space<vmem>>, vector<1x4x256xf32>,
    %c0_313 = arith.constant 0 : index
    %c4_314 = arith.constant 4 : index
    %c0_315 = arith.constant 0 : index
    %430 = vector.load %arg11[%c0_313, %c4_314, %c0_315] : memref<1x12x256xf32, #tpu.memory_space<vmem>>, vector<1x4x256xf32>
    %431 = vector.shape_cast %430 : vector<1x4x256xf32> to vector<4x256xf32>
    %432 = vector.shape_cast %282 : vector<4x256xf32> to vector<1x4x256xf32>
    tpu.vector_store %arg11[%c0_313, %c4_314, %c0_315], %432 {strides = array<i32>} : memref<1x12x256xf32, #tpu.memory_space<vmem>>, vector<1x4x256xf32>,
    %c0_316 = arith.constant 0 : index
    %c8_317 = arith.constant 8 : index
    %c0_318 = arith.constant 0 : index
    %433 = vector.load %arg11[%c0_316, %c8_317, %c0_318] : memref<1x12x256xf32, #tpu.memory_space<vmem>>, vector<1x4x256xf32>
    %434 = vector.shape_cast %433 : vector<1x4x256xf32> to vector<4x256xf32>
    %435 = vector.shape_cast %426 : vector<4x256xf32> to vector<1x4x256xf32>
    tpu.vector_store %arg11[%c0_316, %c8_317, %c0_318], %435 {strides = array<i32>} : memref<1x12x256xf32, #tpu.memory_space<vmem>>, vector<1x4x256xf32>,
    return
  }
  func.func @transform_0(%arg0: i32) -> (i32, i32) {
    %c0_i32 = arith.constant 0 : i32
    %c0_i32_0 = arith.constant 0 : i32
    %c0_i32_1 = arith.constant 0 : i32
    return %c0_i32, %c0_i32_0 : i32, i32
  }
  func.func @transform_1(%arg0: i32) -> (i32, i32) {
    %c0_i32 = arith.constant 0 : i32
    %c0_i32_0 = arith.constant 0 : i32
    %c0_i32_1 = arith.constant 0 : i32
    return %c0_i32, %c0_i32_0 : i32, i32
  }
  func.func @transform_2(%arg0: i32) -> (i32, i32) {
    %c0_i32 = arith.constant 0 : i32
    %c0_i32_0 = arith.constant 0 : i32
    %c0_i32_1 = arith.constant 0 : i32
    return %c0_i32, %c0_i32_0 : i32, i32
  }
  func.func @transform_3(%arg0: i32) -> (i32, i32) {
    %c0_i32 = arith.constant 0 : i32
    %c0_i32_0 = arith.constant 0 : i32
    %c0_i32_1 = arith.constant 0 : i32
    return %c0_i32, %c0_i32_0 : i32, i32
  }
  func.func @transform_4(%arg0: i32) -> (i32, i32) {
    %c0_i32 = arith.constant 0 : i32
    %c0_i32_0 = arith.constant 0 : i32
    %c0_i32_1 = arith.constant 0 : i32
    return %c0_i32, %c0_i32_0 : i32, i32
  }
  func.func @transform_5(%arg0: i32) -> (i32, i32) {
    %c0_i32 = arith.constant 0 : i32
    %c0_i32_0 = arith.constant 0 : i32
    %c0_i32_1 = arith.constant 0 : i32
    return %c0_i32, %c0_i32_0 : i32, i32
  }
  func.func @transform_6(%arg0: i32) -> (i32, i32) {
    %c0_i32 = arith.constant 0 : i32
    %c0_i32_0 = arith.constant 0 : i32
    %c0_i32_1 = arith.constant 0 : i32
    return %c0_i32, %c0_i32_0 : i32, i32
  }
  func.func @transform_7(%arg0: i32) -> (i32, i32) {
    %c0_i32 = arith.constant 0 : i32
    %c0_i32_0 = arith.constant 0 : i32
    %c0_i32_1 = arith.constant 0 : i32
    return %c0_i32, %c0_i32_0 : i32, i32
  }
  func.func @transform_8(%arg0: i32) -> (i32, i32, i32) {
    %c0_i32 = arith.constant 0 : i32
    %c0_i32_0 = arith.constant 0 : i32
    %c0_i32_1 = arith.constant 0 : i32
    return %arg0, %c0_i32, %c0_i32_0 : i32, i32, i32
  }
  func.func @transform_9(%arg0: i32) -> (i32, i32, i32) {
    %c0_i32 = arith.constant 0 : i32
    %c0_i32_0 = arith.constant 0 : i32
    %c0_i32_1 = arith.constant 0 : i32
    return %arg0, %c0_i32, %c0_i32_0 : i32, i32, i32
  }
  func.func @transform_10(%arg0: i32) -> (i32, i32, i32) {
    %c0_i32 = arith.constant 0 : i32
    %c0_i32_0 = arith.constant 0 : i32
    %c0_i32_1 = arith.constant 0 : i32
    return %arg0, %c0_i32, %c0_i32_0 : i32, i32, i32
  }
}

</mosaic_0001>

<bundles_post_ra>
// kernel: reduction_cell.1
= control target key start
LH: loop header
LB: loop body
LE: loop exit
PB: predicated region body
PF: predicated region fallthrough
CT: control target
= control target key end

     0   :  { %s2704_s13 = smov 0   ;;  %s3606_s0 = inlined_call_operand.vmem [shape: f32[1,256], index: 0, kind: input, shape index: {}]   ;;  %s3607_s1 = inlined_call_operand.vmem [shape: f32[4,108], index: 1, kind: input, shape index: {}]   ;;  %s3608_s2 = inlined_call_operand.vmem [shape: f32[8,8], index: 2, kind: input, shape index: {}]   ;;  %s3609_s3 = inlined_call_operand.vmem [shape: f32[8,1], index: 3, kind: input, shape index: {}]   ;;  %s3610_s4 = inlined_call_operand.vmem [shape: f32[8,1], index: 4, kind: input, shape index: {}]   ;;  %s3611_s5 = inlined_call_operand.vmem [shape: f32[4,108], index: 5, kind: input, shape index: {}]   ;;  %s3612_s6 = inlined_call_operand.vmem [shape: f32[4,108], index: 6, kind: input, shape index: {}]   ;;  %s3613_s7 = inlined_call_operand.vmem [shape: f32[4,108], index: 7, kind: input, shape index: {}]   ;;  %s3614_s8 = inlined_call_operand.vmem [shape: f32[2,8,256], index: 8, kind: input, shape index: {}]   ;;  %s3615_s9 = inlined_call_operand.vmem [shape: f32[2,4,256], index: 9, kind: input, shape index: {}]   ;;  %s3616_s10 = inlined_call_operand.vmem [shape: f32[2,12,256], index: 10, kind: output, shape index: {}]  }
   0x1   :  { %3718 = sst [smem:[#allocation4_spill]] %s3606_s0 }
   0x2   :  { %3719 = sst [smem:[#allocation5_spill]] %s3607_s1 }
   0x3   :  { %3720 = sst [smem:[#allocation6_spill]] %s3608_s2 }
   0x4   :  { %3721 = sst [smem:[#allocation7_spill]] %s3609_s3 }
   0x5   :  { %3722 = sst [smem:[#allocation8_spill]] %s3610_s4 }
   0x6   :  { %3723 = sst [smem:[#allocation9_spill]] %s3611_s5 }
   0x7   :  { %3724 = sst [smem:[#allocation10_spill]] %s3614_s8 }
   0x8   :  { %3725 = sst [smem:[#allocation11_spill]] %s3615_s9 }
   0x9   :  { %3726 = sst [smem:[#allocation12_spill]] %s3616_s10 }
   0xa LB: > { %3727 = sst [smem:[#allocation3_spill]] %s2619_s13  ;;  %s2535_s14 = sadd.s32 4294967295, %s2619_s13   ;;  %s2619_s13 = sphi %s2704_s13, %s20_s13  }
   0xb   : > { %p2539_p0 = scmp.ge.s32.totalorder %s2619_s13, 1  ;;  %p322_p1 = scmp.lt.s32.totalorder %s2619_s13, 3 }
   0xd   : > { %p323_p2 = pnand %p2539_p0, %p322_p1 }
   0xe   : > { %p2714_p3 = scmp.lt.s32.totalorder (!%p323_p2), %s2535_s14, 1  ;;  %s3729_s9 = sld [smem:[#allocation11_spill]] (!%p323_p2) }
   0xf   : > { %326 = sbr.rel (%p323_p2) target bundleno = 2079 (0x81f), region = 60  ;;  %s3711_s20 = smov (!%p323_p2), 87  }
  0x10   : > { %s3715_s21 = smov (!%p323_p2), 85   ;;  %s3730_s8 = sld [smem:[#allocation10_spill]] (!%p323_p2) }
  0x11   : > { %s3617_s26 = smov (!%p323_p2), 86   ;;  %s3709_s27 = smov (!%p323_p2), 92  }
  0x12   : > { %s3731_s2 = sld [smem:[#allocation6_spill]] (!%p323_p2)  ;;  %s3635_s30 = smov (!%p323_p2), 91  }
  0x13   : > { %s3707_s11 = smov (!%p323_p2), 97   ;;  %s3633_s12 = smov (!%p323_p2), 93  }
  0x14   : > { %v2621_v0 = vmov 0.0   ;;  %s3961_s14 = smov (!%p2714_p3, %s2535_s14), 1  ;;  %vm419_vm3 = vcmask 64512   ;;  %s3689_s15 = smov 99   ;;  %v2645_v13 = vmov 0   ;;  %vm3639_vm4 = vcmask 703492  }
  0x15   : > { %487 = vmatprep.mubr.f32.mxu0 %v2621_v0  ;;  %382 = vst [vmem:[#allocation2] sm:$0xff] %v2621_v0  ;;  %383 = vst [vmem:[#allocation2 + $0x8] sm:$0xff] %v2621_v0  ;;  %941 = vmatprep.mubr.f32.mxu1 %v2621_v0  ;;  %s2565_s16 = sshll.u32 %s3961_s14, 3  ;;  %s2564_s22 = sshll.u32 %s3961_s14, 4  ;;  %vm3694_vm5 = vcmask 711680   ;;  %vm3693_vm6 = vcmask 707584  }
  0x16   : > { %384 = vst [vmem:[#allocation2 + $0x10] sm:$0xff] %v2621_v0  ;;  %385 = vst [vmem:[#allocation2 + $0x18] sm:$0xff] %v2621_v0  ;;  %s374_s19 = scalar_lea.vmem %s3729_s9, %s2565_s16  ;;  %s369_s25 = scalar_lea.vmem %s3730_s8, %s2564_s22  ;;  %2603 = vset.pattern.permute.xlu1 %v2645_v13  ;;  %2604 = vset.pattern.permute.xlu0 %v2645_v13  ;;  %vm830_vm7 = vcmask 695296   ;;  %vm3697_vm8 = vcmask 691200   ;;  %vm3700_vm9 = vcmask 752640   ;;  %vm3699_vm10 = vcmask 748544  }
  0x17   : > { %386 = vst [vmem:[#allocation2 + $0x20] sm:$0xff] %v2621_v0  ;;  %387 = vst [vmem:[#allocation2 + $0x28] sm:$0xff] %v2621_v0  ;;  %v541_v1 = vld [vmem:[%s374_s19] sm:$0xff]  ;;  %v412_v5 = vld [vmem:[%s369_s25 + $0x8] sm:$0xff]  ;;  %s3631_s16 = smov 98   ;;  %s3679_s17 = smov 122  }
  0x18   : > { %388 = vst [vmem:[#allocation2 + $0x30] sm:$0xff] %v2621_v0  ;;  %389 = vst [vmem:[#allocation2 + $0x38] sm:$0xff] %v2621_v0  ;;  %vm542_vm0 = vcmp.gt.f32.partialorder %v541_v1, 0.0  ;;  %v543_v2 = vmul.f32 0.01, %v541_v1  ;;  %v411_v6 = vld [vmem:[%s369_s25] sm:$0xff] }
  0x19   : > { %390 = vst [vmem:[#allocation2 + $0x40] sm:$0xff] %v2621_v0  ;;  %391 = vst [vmem:[#allocation2 + $0x48] sm:$0xff] %v2621_v0  ;;  %vm414_vm1 = vcmp.gt.f32.partialorder %v412_v5, 0.0  ;;  %v416_v7 = vmul.f32 0.01, %v412_v5  ;;  %vm413_vm2 = vcmp.gt.f32.partialorder %v411_v6, 0.0 }
  0x1a   : > { %392 = vst [vmem:[#allocation2 + $0x50] sm:$0xff] %v2621_v0  ;;  %393 = vst [vmem:[#allocation2 + $0x58] sm:$0xff] %v2621_v0  ;;  %v2758_v3 = vsel %vm542_vm0, %v541_v1, %v543_v2  ;;  %v415_v8 = vmul.f32 0.01, %v411_v6  ;;  %v410_v12 = vld [vmem:[%s3731_s2] sm:$0xff]  ;;  %s3625_s18 = smov 121  }
  0x1b   : > { %394 = vst [vmem:[#allocation2 + $0x60] sm:$0xff] %v2621_v0  ;;  %395 = vst [vmem:[#allocation2 + $0x68] sm:$0xff] %v2621_v0  ;;  %804 = vrot.lane.b32.xlu1 %v2758_v3, %s3711_s20  ;;  %826 = vrot.lane.b32.xlu0 %v2758_v3, %s3715_s21  ;;  %v2766_v4 = vcombine.low %v2758_v3, %v2758_v3  ;;  %v2780_v9 = vcombine.high %v2758_v3, %v2758_v3  ;;  %s3677_s19 = smov 127   ;;  %s3621_s22 = smov 123   ;;  %vm3642_vm11 = vcmask 703488   ;;  %vm3637_vm12 = vcmask 744452  }
  0x1c   : > { %396 = vst [vmem:[#allocation2 + $0x70] sm:$0xff] %v2621_v0  ;;  %397 = vst [vmem:[#allocation2 + $0x78] sm:$0xff] %v2621_v0  ;;  %v418_v10 = vsel %vm414_vm1, %v412_v5, %v416_v7  ;;  %v417_v11 = vsel %vm413_vm2, %v411_v6, %v415_v8  ;;  %s3685_s23 = smov 1   ;;  %s3681_s24 = smov 6   ;;  %vm3638_vm13 = vcmask 744448   ;;  %vm3695_vm14 = vcmask 1043456  }
  0x1d   : > { %398 = vst [vmem:[#allocation2 + $0x80] sm:$0xff] %v2621_v0  ;;  %399 = vst [vmem:[#allocation2 + $0x88] sm:$0xff] %v2621_v0  ;;  %453 = vmatprep.subr.mxu0 %v418_v10  ;;  %s3619_s25 = smov 5   ;;  %s3683_s28 = smov 29   ;;  %vm3657_vm15 = vcmask 789504   ;;  %vm3663_vm0 = vcmask 793600  }
  0x1e   : > { %400 = vst [vmem:[#allocation2 + $0x90] sm:$0xff] %v2621_v0  ;;  %401 = vst [vmem:[#allocation2 + $0x98] sm:$0xff] %v2621_v0  ;;  %454 = vmatpush1.msra.mxu0 %v417_v11  ;;  %s3623_s29 = smov 7   ;;  %s3732_s3 = sld [smem:[#allocation7_spill]]  ;;  %vm3640_vm1 = vcmask 760836   ;;  %vm3641_vm2 = vcmask 760832  }
  0x1f   : > { %402 = vst [vmem:[#allocation2 + $0xa0] sm:$0xff] %v2621_v0  ;;  %403 = vst [vmem:[#allocation2 + $0xa8] sm:$0xff] %v2621_v0  ;;  %817 = vrot.lane.b32.xlu1 %v2758_v3, %s3617_s26  ;;  %782 = vrot.lane.b32.xlu0 %v2758_v3, %s3709_s27  ;;  %s3733_s0 = sld [smem:[#allocation4_spill]]  ;;  %s3797_s2 = smov 31  }
  0x20   : > { %404 = vst [vmem:[#allocation2 + $0xb0] sm:$0xff] %v2621_v0  ;;  %405 = vst [vmem:[#allocation2 + $0xb8] sm:$0xff] %v2621_v0  ;;  %2546 = vmatmul.mubr.msk.f32.vlgmr.msra.gmra.mxu0 %vm419_vm3, %v410_v12  ;;  %vm3643_vm3 = vcmask 805888   ;;  %s3734_s5 = sld [smem:[#allocation9_spill]]  ;;  %s3801_s8 = smov 42  }
  0x21   : > { %406 = vst [vmem:[#allocation2 + $0xc0] sm:$0xff] %v2621_v0  ;;  %407 = vst [vmem:[#allocation2 + $0xc8] sm:$0xff] %v2621_v0  ;;  %1320 = vmatprep.mubr.f32.mxu0 %v2621_v0  ;;  %s3735_s4 = sld [smem:[#allocation8_spill]]  ;;  %s3802_s9 = smov 85  }
  0x22   : > { %408 = vst [vmem:[#allocation2 + $0xd0] sm:$0xf] %v2621_v0  ;;  %409 = vst [vmem:[#allocation2 + $0xd8] sm:$0xf] %v2621_v0  ;;  %s3786_s1 = sld [smem:[#allocation5_spill]] }
  0x23   : > { %693 = vst [vmem:[#allocation2 + $0x68] sm:$0xf0] %v2758_v3  ;;  %692 = vst [vmem:[#allocation2 + $0x60] sm:$0xf0] %v2766_v4  ;;  %806 = vrot.lane.b32.xlu1 %v2780_v9, %s3711_s20  ;;  %828 = vrot.lane.b32.xlu0 %v2780_v9, %s3715_s21  ;;  %s3787_s10 = sld [smem:[#allocation12_spill]] }
  0x24   : > { %v494_v14 = vld [vmem:[%s3732_s3] sm:$0xff]  ;;  %s3798_s3 = smov 36  }
  0x27   : > { %784 = vrot.lane.b32.xlu1 %v2780_v9, %s3709_s27  ;;  %815 = vrot.lane.b32.xlu0 %v2766_v4, %s3617_s26  ;;  %s3687_s26 = smov 31  }
  0x2b   : > { %795 = vrot.lane.b32.xlu1 %v2758_v3, %s3635_s30  ;;  %793 = vrot.lane.b32.xlu0 %v2766_v4, %s3635_s30  ;;  %s3736_s30 = smov 91  }
  0x2f   : > { %762 = vrot.lane.b32.xlu1 %v2780_v9, %s3707_s11  ;;  %760 = vrot.lane.b32.xlu0 %v2758_v3, %s3707_s11 }
  0x33   : > { %773 = vrot.lane.b32.xlu1 %v2758_v3, %s3633_s12  ;;  %771 = vrot.lane.b32.xlu0 %v2766_v4, %s3633_s12  ;;  %s3737_s12 = smov 93  }
  0x37   : > { %740 = vrot.lane.b32.xlu1 %v2780_v9, %s3689_s15  ;;  %738 = vrot.lane.b32.xlu0 %v2758_v3, %s3689_s15 }
  0x3b   : > { %751 = vrot.lane.b32.xlu1 %v2758_v3, %s3631_s16  ;;  %749 = vrot.lane.b32.xlu0 %v2766_v4, %s3631_s16  ;;  %s3701_s16 = smov 42  }
  0x3f   : > { %718 = vrot.lane.b32.xlu1 %v2780_v9, %s3679_s17  ;;  %716 = vrot.lane.b32.xlu0 %v2758_v3, %s3679_s17 }
  0x43   : > { %729 = vrot.lane.b32.xlu1 %v2758_v3, %s3625_s18  ;;  %727 = vrot.lane.b32.xlu0 %v2766_v4, %s3625_s18  ;;  %s3705_s18 = smov 41  }
  0x47   : > { %696 = vrot.lane.b32.xlu1 %v2780_v9, %s3677_s19  ;;  %694 = vrot.lane.b32.xlu0 %v2758_v3, %s3677_s19 }
  0x4b   : > { %707 = vrot.lane.b32.xlu1 %v2758_v3, %s3621_s22  ;;  %705 = vrot.lane.b32.xlu0 %v2766_v4, %s3621_s22  ;;  %s3691_s22 = smov 36  }
  0x4f   : > { %682 = vrot.lane.b32.xlu1 %v2780_v9, %s3685_s23  ;;  %680 = vrot.lane.b32.xlu0 %v2758_v3, %s3685_s23 }
  0x53   : > { %660 = vrot.lane.b32.xlu1 %v2780_v9, %s3681_s24  ;;  %658 = vrot.lane.b32.xlu0 %v2758_v3, %s3681_s24 }
  0x57   : > { %671 = vrot.lane.b32.xlu1 %v2758_v3, %s3619_s25  ;;  %669 = vrot.lane.b32.xlu0 %v2766_v4, %s3619_s25  ;;  %s3627_s25 = smov 30  }
  0x5b   : > { %638 = vrot.lane.b32.xlu1 %v2780_v9, %s3683_s28  ;;  %636 = vrot.lane.b32.xlu0 %v2758_v3, %s3683_s28 }
  0x5f   : > { %649 = vrot.lane.b32.xlu1 %v2758_v3, %s3623_s29  ;;  %647 = vrot.lane.b32.xlu0 %v2766_v4, %s3623_s29  ;;  %s3629_s29 = smov 35  }
  0x63   : > { %616 = vrot.lane.b32.xlu1 %v2780_v9, %s3687_s26  ;;  %614 = vrot.lane.b32.xlu0 %v2758_v3, %s3687_s26 }
  0x67   : > { %627 = vrot.lane.b32.xlu1 %v2758_v3, %s3627_s25  ;;  %625 = vrot.lane.b32.xlu0 %v2766_v4, %s3627_s25  ;;  %s3713_s25 = smov 37  }
  0x6b   : > { %594 = vrot.lane.b32.xlu1 %v2780_v9, %s3691_s22  ;;  %592 = vrot.lane.b32.xlu0 %v2758_v3, %s3691_s22 }
  0x6f   : > { %605 = vrot.lane.b32.xlu1 %v2758_v3, %s3629_s29  ;;  %603 = vrot.lane.b32.xlu0 %v2766_v4, %s3629_s29  ;;  %s3703_s29 = smov 43  }
  0x73   : > { %572 = vrot.lane.b32.xlu1 %v2780_v9, %s3705_s18  ;;  %570 = vrot.lane.b32.xlu0 %v2758_v3, %s3705_s18 }
  0x77   : > { %583 = vrot.lane.b32.xlu1 %v2758_v3, %s3713_s25  ;;  %581 = vrot.lane.b32.xlu0 %v2766_v4, %s3713_s25 }
  0x7b   : > { %549 = vrot.lane.b32.xlu1 %v2780_v9, %s3703_s29  ;;  %547 = vrot.lane.b32.xlu0 %v2758_v3, %s3703_s29 }
  0x7f   : > { %561 = vrot.lane.b32.xlu1 %v2758_v3, %s3701_s16  ;;  %559 = vrot.lane.b32.xlu0 %v2766_v4, %s3701_s16 }
  0x83   : > { %529 = vperm.xlu1 %2603, %v494_v14  }
  0x8d   : > { %v805_v15 = vpop.permute.xlu1 %804  ;;  %v827_v16 = vpop.permute.xlu0 %826 }
  0x91   : > { %v818_v17 = vpop.permute.xlu1 %817  ;;  %v783_v18 = vpop.permute.xlu0 %782 }
  0x92   : > { %825 = vst.msk [vmem:[#allocation2 + $0xc8] sm:$0xf0] %vm3639_vm4, %v818_v17  ;;  %vm3645_vm4 = vcmask 801792  }
  0x95   : > { %v807_v19 = vpop.permute.xlu1 %806  ;;  %v829_v20 = vpop.permute.xlu0 %828 }
  0x96   : > { %v809_v21 = vsel %vm3694_vm5, %v805_v15, %v807_v19  ;;  %814 = vst.msk [vmem:[#allocation2 + $0xc8] sm:$0xf] %vm3693_vm6, %v807_v19  ;;  %v831_v22 = vsel %vm830_vm7, %v827_v16, %v829_v20 }
  0x97   : > { %836 = vst.msk [vmem:[#allocation2 + $0xd8] sm:$0xf] %vm3697_vm8, %v829_v20  ;;  %812 = vst [vmem:[#allocation2 + $0xc0] sm:$0xf] %v809_v21 }
  0x98   : > { %834 = vst [vmem:[#allocation2 + $0xd0] sm:$0xf] %v831_v22 }
  0x99   : > { %v785_v23 = vpop.permute.xlu1 %784  ;;  %v816_v24 = vpop.permute.xlu0 %815 }
  0x9a   : > { %v787_v25 = vsel %vm3700_vm9, %v783_v18, %v785_v23  ;;  %792 = vst.msk [vmem:[#allocation2 + $0xb8] sm:$0xf] %vm3699_vm10, %v785_v23  ;;  %v820_v26 = vsel %vm3642_vm11, %v816_v24, %v818_v17  ;;  %vm3648_vm11 = vcmask 990212   ;;  %v497_v24 = vlaneseq }
  0x9b   : > { %790 = vst [vmem:[#allocation2 + $0xb0] sm:$0xf] %v787_v25  ;;  %823 = vst [vmem:[#allocation2 + $0xc0] sm:$0xf0] %v820_v26 }
  0x9d   : > { %v796_v27 = vpop.permute.xlu1 %795  ;;  %v794_v28 = vpop.permute.xlu0 %793  ;;  %v863_v32 = vld [vmem:[#allocation2 + $0xc8] sm:$0xff] }
  0x9e   : > { %v865_v29 = vld [vmem:[#allocation2 + $0xd8] sm:$0xf]  ;;  %803 = vst.msk [vmem:[#allocation2 + $0xb8] sm:$0xf0] %vm3637_vm12, %v796_v27  ;;  %v798_v30 = vsel %vm3638_vm13, %v794_v28, %v796_v27  ;;  %vm3656_vm12 = vcmask 809984   ;;  %vm3644_vm13 = vcmask 801796  }
  0x9f   : > { %2547 = vmatprep.subr.msk.mxu1 %vm3695_vm14, %v865_v29  ;;  %v864_v31 = vld [vmem:[#allocation2 + $0xd0] sm:$0xf]  ;;  %801 = vst [vmem:[#allocation2 + $0xb0] sm:$0xf0] %v798_v30  ;;  %v380_v28 = vld [vmem:[%s3733_s0] sm:$0x3] }
  0xa0   : > { %2548 = vmatpush1.msk.msra.mxu1 %vm3695_vm14, %v864_v31  ;;  %v498_v30 = vshrl.u32 %v497_v24, 7  ;;  %s3796_s0 = smov 29  }
  0xa1   : > { %883 = vmatprep.subr.mxu1 %v863_v32  ;;  %v763_v33 = vpop.permute.xlu1 %762  ;;  %v761_v34 = vpop.permute.xlu0 %760 }
  0xa2   : > { %770 = vst.msk [vmem:[#allocation2 + $0xa8] sm:$0xf] %vm3657_vm15, %v763_v33  ;;  %v765_v35 = vsel %vm3663_vm0, %v761_v34, %v763_v33  ;;  %v862_v36 = vld [vmem:[#allocation2 + $0xc0] sm:$0xff]  ;;  %vm3661_vm15 = vcmask 1047612   ;;  %vm3667_vm0 = vcmask 293888  }
  0xa3   : > { %768 = vst [vmem:[#allocation2 + $0xa0] sm:$0xf] %v765_v35  ;;  %884 = vmatpush1.msra.mxu1 %v862_v36  ;;  %v499_v35 = vsub.s32 0, %v498_v30 }
  0xa5   : > { %v774_v37 = vpop.permute.xlu1 %773  ;;  %v772_v38 = vpop.permute.xlu0 %771  ;;  %v861_v39 = vld [vmem:[#allocation2 + $0xb8] sm:$0xff] }
  0xa6   : > { %781 = vst.msk [vmem:[#allocation2 + $0xa8] sm:$0xf0] %vm3640_vm1, %v774_v37  ;;  %v776_v40 = vsel %vm3641_vm2, %v772_v38, %v774_v37  ;;  %885 = vmatprep.subr.mxu1 %v861_v39  ;;  %v860_v41 = vld [vmem:[#allocation2 + $0xb0] sm:$0xff]  ;;  %vm3646_vm1 = vcmask 994304   ;;  %vm3647_vm2 = vcmask 998400   ;;  %v503_v38 = vsub.s32 1, %v498_v30 }
  0xa7   : > { %779 = vst [vmem:[#allocation2 + $0xa0] sm:$0xf0] %v776_v40  ;;  %886 = vmatpush1.msra.mxu1 %v860_v41 }
  0xa9   : > { %v741_v42 = vpop.permute.xlu1 %740  ;;  %v739_v43 = vpop.permute.xlu0 %738 }
  0xaa   : > { %748 = vst.msk [vmem:[#allocation2 + $0x98] sm:$0xf] %vm3643_vm3, %v741_v42  ;;  %v743_v44 = vsel %vm3656_vm12, %v739_v43, %v741_v42  ;;  %vm3649_vm3 = vcmask 990208   ;;  %vm3660_vm12 = vcmask 56320  }
  0xab   : > { %746 = vst [vmem:[#allocation2 + $0x90] sm:$0xf] %v743_v44 }
  0xad   : > { %v752_v45 = vpop.permute.xlu1 %751  ;;  %v750_v46 = vpop.permute.xlu0 %749  ;;  %v859_v47 = vld [vmem:[#allocation2 + $0xa8] sm:$0xff] }
  0xae   : > { %759 = vst.msk [vmem:[#allocation2 + $0x98] sm:$0xf0] %vm3644_vm13, %v752_v45  ;;  %v754_v48 = vsel %vm3645_vm4, %v750_v46, %v752_v45  ;;  %887 = vmatprep.subr.mxu1 %v859_v47  ;;  %v858_v49 = vld [vmem:[#allocation2 + $0xa0] sm:$0xff]  ;;  %vm3650_vm13 = vcmask 1035264   ;;  %vm3651_vm4 = vcmask 1039360  }
  0xaf   : > { %757 = vst [vmem:[#allocation2 + $0x90] sm:$0xf0] %v754_v48  ;;  %888 = vmatpush1.msra.mxu1 %v858_v49 }
  0xb1   : > { %v719_v50 = vpop.permute.xlu1 %718  ;;  %v717_v51 = vpop.permute.xlu0 %716 }
  0xb2   : > { %726 = vst.msk [vmem:[#allocation2 + $0x88] sm:$0xf] %vm3646_vm1, %v719_v50  ;;  %v721_v52 = vsel %vm3647_vm2, %v717_v51, %v719_v50  ;;  %vm3652_vm1 = vcmask 1006596   ;;  %vm3653_vm2 = vcmask 1006592  }
  0xb3   : > { %724 = vst [vmem:[#allocation2 + $0x80] sm:$0xf] %v721_v52 }
  0xb5   : > { %v730_v53 = vpop.permute.xlu1 %729  ;;  %v728_v54 = vpop.permute.xlu0 %727  ;;  %v857_v55 = vld [vmem:[#allocation2 + $0x98] sm:$0xff] }
  0xb6   : > { %737 = vst.msk [vmem:[#allocation2 + $0x88] sm:$0xf0] %vm3648_vm11, %v730_v53  ;;  %v732_v56 = vsel %vm3649_vm3, %v728_v54, %v730_v53  ;;  %889 = vmatprep.subr.mxu1 %v857_v55  ;;  %v856_v57 = vld [vmem:[#allocation2 + $0x90] sm:$0xff]  ;;  %vm3654_vm11 = vcmask 7168   ;;  %vm3696_vm3 = vcmask 1043464  }
  0xb7   : > { %735 = vst [vmem:[#allocation2 + $0x80] sm:$0xf0] %v732_v56  ;;  %890 = vmatpush1.msra.mxu1 %v856_v57 }
  0xb9   : > { %v697_v58 = vpop.permute.xlu1 %696  ;;  %v695_v59 = vpop.permute.xlu0 %694 }
  0xba   : > { %704 = vst.msk [vmem:[#allocation2 + $0x78] sm:$0xf] %vm3650_vm13, %v697_v58  ;;  %v699_v60 = vsel %vm3651_vm4, %v695_v59, %v697_v58  ;;  %vm3655_vm13 = vcmask 48128   ;;  %vm3698_vm4 = vcmask 1043504  }
  0xbb   : > { %702 = vst [vmem:[#allocation2 + $0x70] sm:$0xf] %v699_v60 }
  0xbd   : > { %v708_v61 = vpop.permute.xlu1 %707  ;;  %v706_v62 = vpop.permute.xlu0 %705  ;;  %v855_v63 = vld [vmem:[#allocation2 + $0x88] sm:$0xff] }
  0xbe   : > { %715 = vst.msk [vmem:[#allocation2 + $0x78] sm:$0xf0] %vm3652_vm1, %v708_v61  ;;  %v710_v1 = vsel %vm3653_vm2, %v706_v62, %v708_v61  ;;  %891 = vmatprep.subr.mxu1 %v855_v63  ;;  %v854_v2 = vld [vmem:[#allocation2 + $0x80] sm:$0xff]  ;;  %vm3658_vm1 = vcmask 39936   ;;  %vm3659_vm2 = vcmask 1047596  }
  0xbf   : > { %713 = vst [vmem:[#allocation2 + $0x70] sm:$0xf0] %v710_v1  ;;  %892 = vmatpush1.msra.mxu1 %v854_v2 }
  0xc1   : > { %v683_v3 = vpop.permute.xlu1 %682  ;;  %v681_v4 = vpop.permute.xlu0 %680 }
  0xc2   : > { %v685_v5 = vsel %vm3654_vm11, %v681_v4, %v683_v3  ;;  %689 = vst.msk [vmem:[#allocation2 + $0x60] sm:$0xf] %vm3696_vm3, %v681_v4  ;;  %vm3662_vm11 = vcmask 236544  }
  0xc3   : > { %690 = vst [vmem:[#allocation2 + $0x68] sm:$0xf] %v685_v5 }
  0xc5   : > { %v661_v6 = vpop.permute.xlu1 %660  ;;  %v659_v7 = vpop.permute.xlu0 %658  ;;  %v853_v8 = vld [vmem:[#allocation2 + $0x78] sm:$0xff] }
  0xc6   : > { %v663_v9 = vsel %vm3655_vm13, %v659_v7, %v661_v6  ;;  %667 = vst.msk [vmem:[#allocation2 + $0x50] sm:$0xf] %vm3698_vm4, %v659_v7  ;;  %893 = vmatprep.subr.mxu1 %v853_v8  ;;  %v852_v10 = vld [vmem:[#allocation2 + $0x70] sm:$0xff]  ;;  %vm3675_vm13 = vcmask 1043688  }
  0xc7   : > { %668 = vst [vmem:[#allocation2 + $0x58] sm:$0xf] %v663_v9  ;;  %894 = vmatpush1.msra.mxu1 %v852_v10  ;;  %v837_v10 = vld [vmem:[%s3734_s5] sm:$0xf]  ;;  %s3800_s5 = smov 43  }
  0xc9   : > { %v672_v11 = vpop.permute.xlu1 %671  ;;  %v670_v12 = vpop.permute.xlu0 %669  ;;  %v850_v16 = vld [vmem:[#allocation2 + $0x60] sm:$0xff] }
  0xca   : > { %v674_v14 = vsel %vm3658_vm1, %v670_v12, %v672_v11  ;;  %678 = vst.msk [vmem:[#allocation2 + $0x50] sm:$0xf0] %vm3659_vm2, %v670_v12  ;;  %v851_v15 = vld [vmem:[#allocation2 + $0x68] sm:$0xff]  ;;  %vm3664_vm1 = vcmask 252928   ;;  %vm3669_vm2 = vcmask 1043704  }
  0xcb   : > { %679 = vst [vmem:[#allocation2 + $0x58] sm:$0xf0] %v674_v14  ;;  %895 = vmatprep.subr.mxu1 %v851_v15 }
  0xcc   : > { %896 = vmatpush1.msra.mxu1 %v850_v16 }
  0xcd   : > { %v639_v17 = vpop.permute.xlu1 %638  ;;  %v637_v18 = vpop.permute.xlu0 %636 }
  0xce   : > { %v641_v19 = vsel %vm3662_vm11, %v637_v18, %v639_v17  ;;  %645 = vst.msk [vmem:[#allocation2 + $0x40] sm:$0xf] %vm3675_vm13, %v637_v18  ;;  %vm381_vm11 = vcmp.gt.f32.partialorder %v380_v28, 0.5  ;;  %vm567_vm13 = vcmask 1047892  }
  0xcf   : > { %646 = vst [vmem:[#allocation2 + $0x48] sm:$0xf] %v641_v19  ;;  %v496_v37 = vsel %vm381_vm11, 1, %v2645_v13 }
  0xd0   : > { %v2935_v42 = vrot.slane %v496_v37, %v499_v35  ;;  %v2937_v43 = vrot.slane %v496_v37, %v503_v38 }
  0xd1   : > { %v650_v20 = vpop.permute.xlu1 %649  ;;  %v648_v21 = vpop.permute.xlu0 %647  ;;  %v848_v25 = vld [vmem:[#allocation2 + $0x50] sm:$0xff] }
  0xd2   : > { %v652_v22 = vsel %vm3660_vm12, %v648_v21, %v650_v20  ;;  %656 = vst.msk [vmem:[#allocation2 + $0x40] sm:$0xf0] %vm3661_vm15, %v648_v21  ;;  %v849_v23 = vld [vmem:[#allocation2 + $0x58] sm:$0xff]  ;;  %vm3665_vm12 = vcmask 244736   ;;  %vm3666_vm15 = vcmask 1047796   ;;  %vm505_vm11 = vcmp.eq.s32.totalorder %v2935_v42, 1 }
  0xd3   : > { %657 = vst [vmem:[#allocation2 + $0x48] sm:$0xf0] %v652_v22  ;;  %897 = vmatprep.subr.mxu1 %v849_v23 }
  0xd4   : > { %898 = vmatpush1.msra.mxu1 %v848_v25  ;;  %v495_v25 = vld [vmem:[%s3735_s4] sm:$0xff]  ;;  %s3799_s4 = smov 41  }
  0xd5   : > { %v617_v26 = vpop.permute.xlu1 %616  ;;  %v615_v27 = vpop.permute.xlu0 %614 }
  0xd6   : > { %v619_v29 = vsel %vm3664_vm1, %v615_v27, %v617_v26  ;;  %623 = vst.msk [vmem:[#allocation2 + $0x30] sm:$0xf] %vm3669_vm2, %v615_v27  ;;  %vm3668_vm1 = vcmask 1043744   ;;  %vm506_vm2 = vcmp.eq.s32.totalorder %v2937_v43, 1 }
  0xd7   : > { %624 = vst [vmem:[#allocation2 + $0x38] sm:$0xf] %v619_v29 }
  0xd9   : > { %v628_v31 = vpop.permute.xlu1 %627  ;;  %v626_v32 = vpop.permute.xlu0 %625  ;;  %v846_v36 = vld [vmem:[#allocation2 + $0x40] sm:$0xff] }
  0xda   : > { %v630_v33 = vsel %vm3665_vm12, %v626_v32, %v628_v31  ;;  %634 = vst.msk [vmem:[#allocation2 + $0x30] sm:$0xf0] %vm3666_vm15, %v626_v32  ;;  %v847_v34 = vld [vmem:[#allocation2 + $0x48] sm:$0xff]  ;;  %vm3670_vm12 = vcmask 285696   ;;  %vm3671_vm15 = vcmask 1047836  }
  0xdb   : > { %635 = vst [vmem:[#allocation2 + $0x38] sm:$0xf0] %v630_v33  ;;  %899 = vmatprep.subr.mxu1 %v847_v34 }
  0xdc   : > { %900 = vmatpush1.msra.mxu1 %v846_v36 }
  0xdd   : > { %v595_v39 = vpop.permute.xlu1 %594  ;;  %v593_v40 = vpop.permute.xlu0 %592 }
  0xde   : > { %v597_v41 = vsel %vm3667_vm0, %v593_v40, %v595_v39  ;;  %601 = vst.msk [vmem:[#allocation2 + $0x20] sm:$0xf] %vm3668_vm1, %v593_v40  ;;  %vm3672_vm0 = vcmask 334848   ;;  %vm3673_vm1 = vcmask 1043784  }
  0xdf   : > { %602 = vst [vmem:[#allocation2 + $0x28] sm:$0xf] %v597_v41 }
  0xe0   : > { %v2943_v48 = vpop.f32.mrf.mxu0 }
  0xe1   : > { %v606_v44 = vpop.permute.xlu1 %605  ;;  %v604_v45 = vpop.permute.xlu0 %603  ;;  %v844_v47 = vld [vmem:[#allocation2 + $0x30] sm:$0xff]  ;;  %v507_v51 = vsel %vm505_vm11, %v2943_v48, 0.0 }
  0xe2   : > { %v608_v46 = vsel %vm3670_vm12, %v604_v45, %v606_v44  ;;  %612 = vst.msk [vmem:[#allocation2 + $0x20] sm:$0xf0] %vm3671_vm15, %v604_v45  ;;  %v845_v13 = vld [vmem:[#allocation2 + $0x38] sm:$0xff]  ;;  %v513_v53 = vmul.f32 %v507_v51, %v507_v51  ;;  %v2950_v54 = vpop.f32.mrf.mxu0  ;;  %vm3674_vm12 = vcmask 302080   ;;  %vm3676_vm15 = vcmask 1047852  }
  0xe3   : > { %613 = vst [vmem:[#allocation2 + $0x28] sm:$0xf0] %v608_v46  ;;  %901 = vmatprep.subr.mxu1 %v845_v13  ;;  %v508_v55 = vsel %vm506_vm2, %v2950_v54, 0.0 }
  0xe4   : > { %902 = vmatpush1.msra.mxu1 %v844_v47  ;;  %v514_v56 = vmul.f32 %v508_v55, %v508_v55  ;;  %v509_v57 = vadd.f32 %v508_v55, %v507_v51 }
  0xe5   : > { %v573_v49 = vpop.permute.xlu1 %572  ;;  %v571_v50 = vpop.permute.xlu0 %570 }
  0xe6   : > { %v575_v52 = vsel %vm3672_vm0, %v571_v50, %v573_v49  ;;  %579 = vst.msk [vmem:[#allocation2 + $0x10] sm:$0xf] %vm3673_vm1, %v571_v50  ;;  %510 = vadd.xlane.f32.xlu0 %v509_v57  ;;  %v515_v62 = vadd.f32 %v514_v56, %v513_v53  ;;  %vm551_vm0 = vcmask 351232   ;;  %vm555_vm1 = vcmask 1043800  }
  0xe7   : > { %580 = vst [vmem:[#allocation2 + $0x18] sm:$0xf] %v575_v52 }
  0xe8   : > { %516 = vadd.xlane.f32.xlu1 %v515_v62 }
  0xe9   : > { %v584_v58 = vpop.permute.xlu1 %583  ;;  %v582_v59 = vpop.permute.xlu0 %581  ;;  %v842_v63 = vld [vmem:[#allocation2 + $0x20] sm:$0xff] }
  0xea   : > { %v586_v60 = vsel %vm3674_vm12, %v582_v59, %v584_v58  ;;  %590 = vst.msk [vmem:[#allocation2 + $0x10] sm:$0xf0] %vm3676_vm15, %v582_v59  ;;  %v843_v61 = vld [vmem:[#allocation2 + $0x28] sm:$0xff]  ;;  %vm563_vm12 = vcmask 343040   ;;  %vm866_vm15 = vcmask 883712  }
  0xeb   : > { %591 = vst [vmem:[#allocation2 + $0x18] sm:$0xf0] %v586_v60  ;;  %903 = vmatprep.subr.mxu1 %v843_v61 }
  0xec   : > { %904 = vmatpush1.msra.mxu1 %v842_v63 }
  0xed   : > { %v550_v1 = vpop.permute.xlu1 %549  ;;  %v548_v2 = vpop.permute.xlu0 %547 }
  0xee   : > { %v552_v3 = vsel %vm551_vm0, %v548_v2, %v550_v1  ;;  %556 = vst.msk [vmem:[#allocation2] sm:$0xf] %vm555_vm1, %v548_v2 }
  0xef   : > { %557 = vst [vmem:[#allocation2 + $0x8] sm:$0xf] %v552_v3 }
  0xf1   : > { %v562_v4 = vpop.permute.xlu1 %561  ;;  %v560_v5 = vpop.permute.xlu0 %559  ;;  %v840_v8 = vld [vmem:[#allocation2 + $0x10] sm:$0xff] }
  0xf2   : > { %v564_v6 = vsel %vm563_vm12, %v560_v5, %v562_v4  ;;  %568 = vst.msk [vmem:[#allocation2] sm:$0xf0] %vm567_vm13, %v560_v5  ;;  %v841_v7 = vld [vmem:[#allocation2 + $0x18] sm:$0xff] }
  0xf3   : > { %569 = vst [vmem:[#allocation2 + $0x8] sm:$0xf0] %v564_v6  ;;  %905 = vmatprep.subr.mxu1 %v841_v7 }
  0xf4   : > { %906 = vmatpush1.msra.mxu1 %v840_v8 }
  0xf9   : > { %v838_v11 = vld [vmem:[#allocation2] sm:$0xff] }
  0xfa   : > { %v839_v9 = vld [vmem:[#allocation2 + $0x8] sm:$0xff] }
  0xfb   : > { %907 = vmatprep.subr.mxu1 %v839_v9 }
  0xfc   : > { %908 = vmatpush1.msra.mxu1 %v838_v11 }
  0xfd   : > { %2549 = vmatmul.mubr.msk.f32.vlgmr.msra.gmra.mxu1 %vm866_vm15, %v837_v10 }
  0xfe   : > { %1685 = vmatprep.mubr.f32.mxu1 %v2621_v0  ;;  %v530_v26 = vpop.permute.xlu1 %529 }
 0x16f   : > { %v511_v27 = vpop.xlane.xlu0 %510 }
 0x170   : > { %v512_v28 = vmul.f32 0.015625, %v511_v27 }
 0x171   : > { %v517_v29 = vpop.xlane.xlu1 %516 }
 0x172   : > { %v518_v30 = vmul.f32 0.015625, %v517_v29  ;;  %v519_v31 = vmul.f32 %v512_v28, %v512_v28  ;;  %v521_v41 = vsub.f32 %v2943_v48, %v512_v28  ;;  %v522_v44 = vsub.f32 %v2950_v54, %v512_v28 }
 0x174   : > { %v520_v32 = vsub.f32 %v518_v30, %v519_v31 }
 0x176   : > { %v523_v33 = vadd.f32 1e-05, %v520_v32 }
 0x178   : > { %2605 = vrsqrt.f32 %v523_v33 }
 0x185   : > { %v2606_v45 = vpop.eup %2605 }
 0x186   : > { %v525_v46 = vmul.f32 %v2606_v45, %v521_v41  ;;  %v526_v13 = vmul.f32 %v2606_v45, %v522_v44 }
 0x188   : > { %v532_v51 = vmul.f32 %v530_v26, %v525_v46  ;;  %v533_v52 = vmul.f32 %v530_v26, %v526_v13 }
 0x1bd   : > { %v943_v12 = vpop.f32.mrf.mxu1 }
 0x1be   : > { %v948_v14 = vsel %vm505_vm11, %v943_v12, 0.0 }
 0x1bf   : > { %v945_v15 = vpop.f32.mrf.mxu1  ;;  %v956_v17 = vmul.f32 %v948_v14, %v948_v14  ;;  %v950_v19 = vsel %vm3695_vm14, %v948_v14, 0.0 }
 0x1c0   : > { %v949_v16 = vsel %vm506_vm2, %v945_v15, 0.0 }
 0x1c1   : > { %v957_v18 = vmul.f32 %v949_v16, %v949_v16  ;;  %v951_v20 = vsel %vm3695_vm14, %v949_v16, 0.0  ;;  %v958_v23 = vsel %vm3695_vm14, %v956_v17, 0.0 }
 0x1c2   : > { %v952_v21 = vadd.f32 %v951_v20, %v950_v19 }
 0x1c3   : > { %v959_v22 = vsel %vm3695_vm14, %v957_v18, 0.0 }
 0x1c4   : > { %953 = vadd.xlane.f32.xlu0 %v952_v21  ;;  %v960_v24 = vadd.f32 %v959_v22, %v958_v23 }
 0x1c8   : > { %961 = vadd.xlane.f32.xlu0 %v960_v24 }
 0x1de   : > { %536 = vperm.xlu0 %2604, %v495_v25  }
 0x24d   : > { %v954_v34 = vpop.xlane.xlu0 %953 }
 0x24e   : > { %v955_v35 = vmul.f32 0.015625, %v954_v34 }
 0x250   : > { %v964_v37 = vmul.f32 %v955_v35, %v955_v35  ;;  %v966_v49 = vsub.f32 %v943_v12, %v955_v35  ;;  %v967_v50 = vsub.f32 %v945_v15, %v955_v35 }
 0x251   : > { %v962_v36 = vpop.xlane.xlu0 %961 }
 0x252   : > { %v963_v38 = vmul.f32 0.015625, %v962_v36 }
 0x254   : > { %v965_v39 = vsub.f32 %v963_v38, %v964_v37 }
 0x256   : > { %v968_v40 = vadd.f32 1e-05, %v965_v39 }
 0x258   : > { %2607 = vrsqrt.f32 %v968_v40 }
 0x259   : > { %v537_v47 = vpop.permute.xlu0 %536 }
 0x25a   : > { %v2979_v57 = vadd.f32 %v537_v47, %v532_v51  ;;  %v2981_v58 = vadd.f32 %v537_v47, %v533_v52 }
 0x265   : > { %v2608_v53 = vpop.eup %2607 }
 0x266   : > { %v970_v55 = vmul.f32 %v2608_v53, %v966_v49  ;;  %v971_v56 = vmul.f32 %v2608_v53, %v967_v50 }
 0x268   : > { %v972_v59 = vadd.f32 %v970_v55, %v2979_v57  ;;  %v973_v48 = vadd.f32 %v971_v56, %v2981_v58 }
 0x26a   : > { %v2987_v54 = vsel %vm505_vm11, %v972_v59, 0.0  ;;  %v2991_v60 = vsel %vm506_vm2, %v973_v48, 0.0 }
 0x26b   : > { %1155 = vrot.lane.b32.xlu0 %v2987_v54, %s3707_s11  ;;  %1209 = vrot.lane.b32.xlu1 %v2987_v54, %s3715_s21  ;;  %v987_v61 = vrot.slane %v2987_v54, 4  ;;  %v988_v62 = vrot.slane %v2991_v60, 4 }
 0x26d   : > { %1099 = vst [vmem:[#allocation2 + $0x60] sm:$0xf0] %v987_v61  ;;  %1100 = vst [vmem:[#allocation2 + $0x68] sm:$0xf0] %v988_v62 }
 0x26f   : > { %1137 = vrot.lane.b32.xlu0 %v2987_v54, %s3689_s15  ;;  %1211 = vrot.lane.b32.xlu1 %v2991_v60, %s3715_s21 }
 0x273   : > { %1119 = vrot.lane.b32.xlu0 %v2987_v54, %s3679_s17  ;;  %1191 = vrot.lane.b32.xlu1 %v2987_v54, %s3711_s20 }
 0x277   : > { %1101 = vrot.lane.b32.xlu0 %v2987_v54, %s3677_s19  ;;  %1193 = vrot.lane.b32.xlu1 %v2991_v60, %s3711_s20 }
 0x27b   : > { %1088 = vrot.lane.b32.xlu0 %v2987_v54, %s3685_s23  ;;  %1173 = vrot.lane.b32.xlu1 %v2987_v54, %s3709_s27 }
 0x27f   : > { %1070 = vrot.lane.b32.xlu0 %v2987_v54, %s3681_s24  ;;  %1175 = vrot.lane.b32.xlu1 %v2991_v60, %s3709_s27  ;;  %s3789_s27 = smov 92  }
 0x283   : > { %1052 = vrot.lane.b32.xlu0 %v2987_v54, %s3683_s28  ;;  %1157 = vrot.lane.b32.xlu1 %v2991_v60, %s3707_s11  ;;  %s3790_s11 = smov 97  }
 0x287   : > { %1034 = vrot.lane.b32.xlu0 %v2987_v54, %s3687_s26  ;;  %1139 = vrot.lane.b32.xlu1 %v2991_v60, %s3689_s15  ;;  %s3744_s15 = smov 30  }
 0x28b   : > { %1016 = vrot.lane.b32.xlu0 %v2987_v54, %s3691_s22  ;;  %1121 = vrot.lane.b32.xlu1 %v2991_v60, %s3679_s17  ;;  %s3739_s17 = smov 121  }
 0x28f   : > { %998 = vrot.lane.b32.xlu0 %v2987_v54, %s3705_s18  ;;  %1103 = vrot.lane.b32.xlu1 %v2991_v60, %s3677_s19  ;;  %s3738_s19 = smov 98  }
 0x293   : > { %978 = vrot.lane.b32.xlu0 %v2987_v54, %s3703_s29  ;;  %1090 = vrot.lane.b32.xlu1 %v2991_v60, %s3685_s23  ;;  %s3742_s23 = smov 7  }
 0x297   : > { %1072 = vrot.lane.b32.xlu1 %v2991_v60, %s3681_s24  ;;  %1182 = vrot.lane.b32.xlu0 %v987_v61, %s3736_s30  ;;  %s3740_s24 = smov 123  }
 0x29b   : > { %1054 = vrot.lane.b32.xlu1 %v2991_v60, %s3683_s28  ;;  %1164 = vrot.lane.b32.xlu0 %v987_v61, %s3737_s12  ;;  %s3741_s28 = smov 5  }
 0x29f   : > { %1036 = vrot.lane.b32.xlu1 %v2991_v60, %s3687_s26  ;;  %1146 = vrot.lane.b32.xlu0 %v987_v61, %s3738_s19  ;;  %s3743_s26 = smov 86  }
 0x2a3   : > { %1018 = vrot.lane.b32.xlu1 %v2991_v60, %s3691_s22  ;;  %1128 = vrot.lane.b32.xlu0 %v987_v61, %s3739_s17  ;;  %s3745_s22 = smov 35  }
 0x2a7   : > { %1000 = vrot.lane.b32.xlu1 %v2991_v60, %s3705_s18  ;;  %1110 = vrot.lane.b32.xlu0 %v987_v61, %s3740_s24  ;;  %s2566_s18 = sshll.u32 %s3961_s14, 5  ;;  %s3788_s14 = smov 87  }
 0x2a8   : > { %s3155_s20 = scalar_lea.vmem %s3787_s10, %s2566_s18  ;;  %s3792_s18 = smov 122  }
 0x2a9   : > { %s3845_s10 = smov 37  }
 0x2ab   : > { %980 = vrot.lane.b32.xlu1 %v2991_v60, %s3703_s29  ;;  %1079 = vrot.lane.b32.xlu0 %v987_v61, %s3741_s28  ;;  %s3793_s29 = smov 127  }
 0x2af   : > { %1061 = vrot.lane.b32.xlu0 %v987_v61, %s3742_s23  ;;  %1200 = vrot.lane.b32.xlu1 %v987_v61, %s3743_s26 }
 0x2b3   : > { %1043 = vrot.lane.b32.xlu0 %v987_v61, %s3744_s15  ;;  %1202 = vrot.lane.b32.xlu1 %v988_v62, %s3743_s26 }
 0x2b7   : > { %1025 = vrot.lane.b32.xlu0 %v987_v61, %s3745_s22  ;;  %1184 = vrot.lane.b32.xlu1 %v988_v62, %s3736_s30 }
 0x2bb   : > { %1007 = vrot.lane.b32.xlu0 %v987_v61, %s3713_s25  ;;  %1166 = vrot.lane.b32.xlu1 %v988_v62, %s3737_s12 }
 0x2bf   : > { %989 = vrot.lane.b32.xlu0 %v987_v61, %s3701_s16  ;;  %1148 = vrot.lane.b32.xlu1 %v988_v62, %s3738_s19 }
 0x2c3   : > { %1130 = vrot.lane.b32.xlu1 %v988_v62, %s3739_s17 }
 0x2c7   : > { %1112 = vrot.lane.b32.xlu1 %v988_v62, %s3740_s24 }
 0x2cb   : > { %1081 = vrot.lane.b32.xlu1 %v988_v62, %s3741_s28 }
 0x2cf   : > { %1063 = vrot.lane.b32.xlu1 %v988_v62, %s3742_s23 }
 0x2d3   : > { %1045 = vrot.lane.b32.xlu1 %v988_v62, %s3744_s15 }
 0x2d7   : > { %1027 = vrot.lane.b32.xlu1 %v988_v62, %s3745_s22 }
 0x2db   : > { %1009 = vrot.lane.b32.xlu1 %v988_v62, %s3713_s25 }
 0x2dd   : > { %v1156_v63 = vpop.permute.xlu0 %1155  ;;  %v1210_v1 = vpop.permute.xlu1 %1209 }
 0x2df   : > { %991 = vrot.lane.b32.xlu1 %v988_v62, %s3701_s16  ;;  %s3791_s16 = smov 99  }
 0x2e1   : > { %v1138_v2 = vpop.permute.xlu0 %1137  ;;  %v1212_v3 = vpop.permute.xlu1 %1211 }
 0x2e2   : > { %v1213_v4 = vsel %vm830_vm7, %v1210_v1, %v1212_v3  ;;  %1217 = vst.msk [vmem:[#allocation2 + $0xd8] sm:$0xf] %vm3697_vm8, %v1212_v3  ;;  %vm3750_vm8 = vcmask 809984  }
 0x2e3   : > { %1216 = vst [vmem:[#allocation2 + $0xd0] sm:$0xf] %v1213_v4 }
 0x2e5   : > { %v1120_v5 = vpop.permute.xlu0 %1119  ;;  %v1192_v6 = vpop.permute.xlu1 %1191 }
 0x2e9   : > { %v1102_v7 = vpop.permute.xlu0 %1101  ;;  %v1194_v8 = vpop.permute.xlu1 %1193  ;;  %v1246_v9 = vld [vmem:[#allocation2 + $0xd8] sm:$0xf] }
 0x2ea   : > { %v1195_v10 = vsel %vm3694_vm5, %v1192_v6, %v1194_v8  ;;  %1199 = vst.msk [vmem:[#allocation2 + $0xc8] sm:$0xf] %vm3693_vm6, %v1194_v8  ;;  %2550 = vmatprep.subr.msk.mxu0 %vm3695_vm14, %v1246_v9  ;;  %v1245_v11 = vld [vmem:[#allocation2 + $0xd0] sm:$0xf]  ;;  %vm3746_vm6 = vcmask 1043688   ;;  %vm3747_vm5 = vcmask 793600  }
 0x2eb   : > { %1198 = vst [vmem:[#allocation2 + $0xc0] sm:$0xf] %v1195_v10  ;;  %2551 = vmatpush1.msk.msra.mxu0 %vm3695_vm14, %v1245_v11  ;;  %vm3748_vm14 = vcmask 789504  }
 0x2ed   : > { %v1089_v12 = vpop.permute.xlu0 %1088  ;;  %v1174_v14 = vpop.permute.xlu1 %1173 }
 0x2ee   : > { %1095 = vst.msk [vmem:[#allocation2 + $0x60] sm:$0xf] %vm3696_vm3, %v1089_v12  ;;  %vm3749_vm3 = vcmask 1043704  }
 0x2f1   : > { %v1071_v15 = vpop.permute.xlu0 %1070  ;;  %v1176_v16 = vpop.permute.xlu1 %1175 }
 0x2f2   : > { %1077 = vst.msk [vmem:[#allocation2 + $0x50] sm:$0xf] %vm3698_vm4, %v1071_v15  ;;  %v1177_v17 = vsel %vm3700_vm9, %v1174_v14, %v1176_v16  ;;  %vm3751_vm4 = vcmask 805888   ;;  %vm3753_vm9 = vcmask 998400  }
 0x2f3   : > { %1181 = vst.msk [vmem:[#allocation2 + $0xb8] sm:$0xf] %vm3699_vm10, %v1176_v16  ;;  %1180 = vst [vmem:[#allocation2 + $0xb0] sm:$0xf] %v1177_v17  ;;  %vm3752_vm10 = vcmask 1043744  }
 0x2f5   : > { %v1053_v18 = vpop.permute.xlu0 %1052  ;;  %v1158_v19 = vpop.permute.xlu1 %1157 }
 0x2f6   : > { %1059 = vst.msk [vmem:[#allocation2 + $0x40] sm:$0xf] %vm3746_vm6, %v1053_v18  ;;  %v1159_v20 = vsel %vm3747_vm5, %v1156_v63, %v1158_v19  ;;  %vm3754_vm6 = vcmask 994304   ;;  %vm3755_vm5 = vcmask 1043784  }
 0x2f7   : > { %1163 = vst.msk [vmem:[#allocation2 + $0xa8] sm:$0xf] %vm3748_vm14, %v1158_v19  ;;  %1162 = vst [vmem:[#allocation2 + $0xa0] sm:$0xf] %v1159_v20  ;;  %vm3756_vm14 = vcmask 1039360  }
 0x2f9   : > { %v1035_v21 = vpop.permute.xlu0 %1034  ;;  %v1140_v22 = vpop.permute.xlu1 %1139 }
 0x2fa   : > { %1041 = vst.msk [vmem:[#allocation2 + $0x30] sm:$0xf] %vm3749_vm3, %v1035_v21  ;;  %v1141_v23 = vsel %vm3750_vm8, %v1138_v2, %v1140_v22  ;;  %vm3757_vm3 = vcmask 1035264   ;;  %vm3759_vm8 = vcmask 48128  }
 0x2fb   : > { %1145 = vst.msk [vmem:[#allocation2 + $0x98] sm:$0xf] %vm3751_vm4, %v1140_v22  ;;  %1144 = vst [vmem:[#allocation2 + $0x90] sm:$0xf] %v1141_v23  ;;  %vm3758_vm4 = vcmask 7168  }
 0x2fd   : > { %v1017_v24 = vpop.permute.xlu0 %1016  ;;  %v1122_v25 = vpop.permute.xlu1 %1121 }
 0x2fe   : > { %1023 = vst.msk [vmem:[#allocation2 + $0x20] sm:$0xf] %vm3752_vm10, %v1017_v24  ;;  %v1123_v26 = vsel %vm3753_vm9, %v1120_v5, %v1122_v25  ;;  %vm3760_vm9 = vcmask 236544   ;;  %vm3761_vm10 = vcmask 252928  }
 0x2ff   : > { %1127 = vst.msk [vmem:[#allocation2 + $0x88] sm:$0xf] %vm3754_vm6, %v1122_v25  ;;  %1126 = vst [vmem:[#allocation2 + $0x80] sm:$0xf] %v1123_v26  ;;  %vm3762_vm6 = vcmask 293888  }
 0x301   : > { %v999_v27 = vpop.permute.xlu0 %998  ;;  %v1104_v28 = vpop.permute.xlu1 %1103 }
 0x302   : > { %1005 = vst.msk [vmem:[#allocation2 + $0x10] sm:$0xf] %vm3755_vm5, %v999_v27  ;;  %v1105_v29 = vsel %vm3756_vm14, %v1102_v7, %v1104_v28  ;;  %vm3763_vm5 = vcmask 334848   ;;  %vm3764_vm14 = vcmask 1047596  }
 0x303   : > { %1109 = vst.msk [vmem:[#allocation2 + $0x78] sm:$0xf] %vm3757_vm3, %v1104_v28  ;;  %1108 = vst [vmem:[#allocation2 + $0x70] sm:$0xf] %v1105_v29  ;;  %vm3765_vm3 = vcmask 1047612   ;;  %v1231_v29 = vld [vmem:[#allocation2 + $0x60] sm:$0xff] }
 0x305   : > { %v979_v30 = vpop.permute.xlu0 %978  ;;  %v1091_v31 = vpop.permute.xlu1 %1090 }
 0x306   : > { %985 = vst.msk [vmem:[#allocation2] sm:$0xf] %vm555_vm1, %v979_v30  ;;  %v1092_v32 = vsel %vm3758_vm4, %v1089_v12, %v1091_v31  ;;  %vm3766_vm4 = vcmask 1047796  }
 0x307   : > { %1096 = vst [vmem:[#allocation2 + $0x68] sm:$0xf] %v1092_v32 }
 0x309   : > { %v1073_v33 = vpop.permute.xlu1 %1072  ;;  %v1183_v34 = vpop.permute.xlu0 %1182 }
 0x30a   : > { %v1074_v35 = vsel %vm3759_vm8, %v1071_v15, %v1073_v33  ;;  %vm3767_vm8 = vcmask 703488  }
 0x30b   : > { %1078 = vst [vmem:[#allocation2 + $0x58] sm:$0xf] %v1074_v35 }
 0x30d   : > { %v1055_v36 = vpop.permute.xlu1 %1054  ;;  %v1165_v37 = vpop.permute.xlu0 %1164 }
 0x30e   : > { %v1056_v38 = vsel %vm3760_vm9, %v1053_v18, %v1055_v36  ;;  %vm3768_vm9 = vcmask 703492   ;;  %v1232_v28 = vld [vmem:[#allocation2 + $0x68] sm:$0xff] }
 0x30f   : > { %1060 = vst [vmem:[#allocation2 + $0x48] sm:$0xf] %v1056_v38 }
 0x311   : > { %v1037_v39 = vpop.permute.xlu1 %1036  ;;  %v1147_v40 = vpop.permute.xlu0 %1146 }
 0x312   : > { %v1038_v41 = vsel %vm3761_vm10, %v1035_v21, %v1037_v39  ;;  %vm3769_vm10 = vcmask 1047836  }
 0x313   : > { %1042 = vst [vmem:[#allocation2 + $0x38] sm:$0xf] %v1038_v41 }
 0x315   : > { %v1019_v44 = vpop.permute.xlu1 %1018  ;;  %v1129_v45 = vpop.permute.xlu0 %1128 }
 0x316   : > { %v1020_v46 = vsel %vm3762_vm6, %v1017_v24, %v1019_v44  ;;  %vm3770_vm6 = vcmask 744448  }
 0x317   : > { %1024 = vst [vmem:[#allocation2 + $0x28] sm:$0xf] %v1020_v46 }
 0x319   : > { %v1001_v13 = vpop.permute.xlu1 %1000  ;;  %v1111_v47 = vpop.permute.xlu0 %1110 }
 0x31a   : > { %v1002_v49 = vsel %vm3763_vm5, %v999_v27, %v1001_v13  ;;  %vm3771_vm5 = vcmask 744452  }
 0x31b   : > { %1006 = vst [vmem:[#allocation2 + $0x18] sm:$0xf] %v1002_v49 }
 0x31d   : > { %v981_v50 = vpop.permute.xlu1 %980  ;;  %v1080_v51 = vpop.permute.xlu0 %1079 }
 0x31e   : > { %v982_v52 = vsel %vm551_vm0, %v979_v30, %v981_v50  ;;  %1086 = vst.msk [vmem:[#allocation2 + $0x50] sm:$0xf0] %vm3764_vm14, %v1080_v51  ;;  %vm3772_vm14 = vcmask 1047852  }
 0x31f   : > { %986 = vst [vmem:[#allocation2 + $0x8] sm:$0xf] %v982_v52 }
 0x321   : > { %v1062_v53 = vpop.permute.xlu0 %1061  ;;  %v1201_v55 = vpop.permute.xlu1 %1200 }
 0x322   : > { %1068 = vst.msk [vmem:[#allocation2 + $0x40] sm:$0xf0] %vm3765_vm3, %v1062_v53  ;;  %vm3773_vm3 = vcmask 760832  }
 0x325   : > { %v3107_v56 = vpop.permute.xlu0 %1043  ;;  %v1203_v59 = vpop.permute.xlu1 %1202  ;;  %v1229_v33 = vld [vmem:[#allocation2 + $0x50] sm:$0xff] }
 0x326   : > { %1050 = vst.msk [vmem:[#allocation2 + $0x30] sm:$0xf0] %vm3766_vm4, %v3107_v56  ;;  %v1204_v48 = vsel %vm3767_vm8, %v1201_v55, %v1203_v59  ;;  %vm3774_vm4 = vcmask 760836   ;;  %vm3775_vm8 = vcmask 801792  }
 0x327   : > { %1208 = vst.msk [vmem:[#allocation2 + $0xc8] sm:$0xf0] %vm3768_vm9, %v1203_v59  ;;  %1207 = vst [vmem:[#allocation2 + $0xc0] sm:$0xf0] %v1204_v48  ;;  %vm3776_vm9 = vcmask 801796  }
 0x329   : > { %v3113_v61 = vpop.permute.xlu0 %1025  ;;  %v1185_v62 = vpop.permute.xlu1 %1184 }
 0x32a   : > { %1032 = vst.msk [vmem:[#allocation2 + $0x20] sm:$0xf0] %vm3769_vm10, %v3113_v61  ;;  %v1186_v63 = vsel %vm3770_vm6, %v1183_v34, %v1185_v62  ;;  %vm3777_vm10 = vcmask 990208   ;;  %vm3778_vm6 = vcmask 990212  }
 0x32b   : > { %1190 = vst.msk [vmem:[#allocation2 + $0xb8] sm:$0xf0] %vm3771_vm5, %v1185_v62  ;;  %1189 = vst [vmem:[#allocation2 + $0xb0] sm:$0xf0] %v1186_v63  ;;  %vm3779_vm5 = vcmask 1006592  }
 0x32d   : > { %v3119_v1 = vpop.permute.xlu0 %1007  ;;  %v1167_v2 = vpop.permute.xlu1 %1166  ;;  %v1225_v41 = vld [vmem:[#allocation2 + $0x30] sm:$0xff] }
 0x32e   : > { %v1244_v3 = vld [vmem:[#allocation2 + $0xc8] sm:$0xff]  ;;  %1014 = vst.msk [vmem:[#allocation2 + $0x10] sm:$0xf0] %vm3772_vm14, %v3119_v1  ;;  %v1168_v4 = vsel %vm3773_vm3, %v1165_v37, %v1167_v2  ;;  %v1243_v5 = vld [vmem:[#allocation2 + $0xc0] sm:$0xff]  ;;  %vm3780_vm14 = vcmask 1006596   ;;  %vm3781_vm3 = vcmask 39936  }
 0x32f   : > { %1172 = vst.msk [vmem:[#allocation2 + $0xa8] sm:$0xf0] %vm3774_vm4, %v1167_v2  ;;  %1262 = vmatprep.subr.mxu0 %v1244_v3  ;;  %1171 = vst [vmem:[#allocation2 + $0xa0] sm:$0xf0] %v1168_v4  ;;  %vm3782_vm4 = vcmask 56320   ;;  %v1227_v37 = vld [vmem:[#allocation2 + $0x40] sm:$0xff] }
 0x330   : > { %1263 = vmatpush1.msra.mxu0 %v1243_v5 }
 0x331   : > { %v3125_v6 = vpop.permute.xlu0 %989  ;;  %v1149_v7 = vpop.permute.xlu1 %1148  ;;  %v1223_v13 = vld [vmem:[#allocation2 + $0x20] sm:$0xff] }
 0x332   : > { %v1242_v8 = vld [vmem:[#allocation2 + $0xb8] sm:$0xff]  ;;  %996 = vst.msk [vmem:[#allocation2] sm:$0xf0] %vm567_vm13, %v3125_v6  ;;  %v1150_v9 = vsel %vm3775_vm8, %v1147_v40, %v1149_v7  ;;  %v1241_v10 = vld [vmem:[#allocation2 + $0xb0] sm:$0xff]  ;;  %vm3783_vm8 = vcmask 244736  }
 0x333   : > { %1154 = vst.msk [vmem:[#allocation2 + $0x98] sm:$0xf0] %vm3776_vm9, %v1149_v7  ;;  %1264 = vmatprep.subr.mxu0 %v1242_v8  ;;  %1153 = vst [vmem:[#allocation2 + $0x90] sm:$0xf0] %v1150_v9  ;;  %vm3784_vm9 = vcmask 285696  }
 0x334   : > { %1265 = vmatpush1.msra.mxu0 %v1241_v10  ;;  %v1722_v7 = vmul.f32 0.01, %v2987_v54  ;;  %v1723_v8 = vmul.f32 0.01, %v2991_v60 }
 0x335   : > { %v1131_v11 = vpop.permute.xlu1 %1130  ;;  %v1221_v49 = vld [vmem:[#allocation2 + $0x10] sm:$0xff] }
 0x336   : > { %v1240_v12 = vld [vmem:[#allocation2 + $0xa8] sm:$0xff]  ;;  %v1132_v14 = vsel %vm3777_vm10, %v1129_v45, %v1131_v11  ;;  %1136 = vst.msk [vmem:[#allocation2 + $0x88] sm:$0xf0] %vm3778_vm6, %v1131_v11  ;;  %v1239_v15 = vld [vmem:[#allocation2 + $0xa0] sm:$0xff]  ;;  %vm3785_vm10 = vcmask 302080  }
 0x337   : > { %1266 = vmatprep.subr.mxu0 %v1240_v12  ;;  %1135 = vst [vmem:[#allocation2 + $0x80] sm:$0xf0] %v1132_v14 }
 0x338   : > { %1267 = vmatpush1.msra.mxu0 %v1239_v15 }
 0x339   : > { %v1113_v16 = vpop.permute.xlu1 %1112  ;;  %v1219_v52 = vld [vmem:[#allocation2] sm:$0xff] }
 0x33a   : > { %v1238_v17 = vld [vmem:[#allocation2 + $0x98] sm:$0xff]  ;;  %v1114_v18 = vsel %vm3779_vm5, %v1111_v47, %v1113_v16  ;;  %1118 = vst.msk [vmem:[#allocation2 + $0x78] sm:$0xf0] %vm3780_vm14, %v1113_v16  ;;  %v1237_v19 = vld [vmem:[#allocation2 + $0x90] sm:$0xff]  ;;  %vm1720_vm14 = vcmp.gt.f32.partialorder %v2987_v54, 0.0 }
 0x33b   : > { %1268 = vmatprep.subr.mxu0 %v1238_v17  ;;  %1117 = vst [vmem:[#allocation2 + $0x70] sm:$0xf0] %v1114_v18  ;;  %v3221_v9 = vsel %vm1720_vm14, %v2987_v54, %v1722_v7  ;;  %vm3809_vm14 = vcmask 801792  }
 0x33c   : > { %1269 = vmatpush1.msra.mxu0 %v1237_v19  ;;  %v3244_v15 = vrot.slane %v3221_v9, 4 }
 0x33d   : > { %v1082_v20 = vpop.permute.xlu1 %1081  ;;  %v1236_v21 = vld [vmem:[#allocation2 + $0x88] sm:$0xff] }
 0x33e   : > { %v1083_v22 = vsel %vm3781_vm3, %v1080_v51, %v1082_v20  ;;  %1270 = vmatprep.subr.mxu0 %v1236_v21  ;;  %v1235_v23 = vld [vmem:[#allocation2 + $0x80] sm:$0xff]  ;;  %vm1721_vm3 = vcmp.gt.f32.partialorder %v2991_v60, 0.0 }
 0x33f   : > { %1087 = vst [vmem:[#allocation2 + $0x58] sm:$0xf0] %v1083_v22  ;;  %1271 = vmatpush1.msra.mxu0 %v1235_v23  ;;  %v1218_v51 = vld [vmem:[%s3786_s1] sm:$0xf]  ;;  %v3226_v10 = vsel %vm1721_vm3, %v2991_v60, %v1723_v8  ;;  %vm3810_vm3 = vcmask 801796  }
 0x340   : > { %v3239_v12 = vrot.slane %v3226_v10, 4 }
 0x341   : > { %v1064_v24 = vpop.permute.xlu1 %1063  ;;  %v1234_v25 = vld [vmem:[#allocation2 + $0x78] sm:$0xff] }
 0x342   : > { %v1065_v26 = vsel %vm3782_vm4, %v1062_v53, %v1064_v24  ;;  %1272 = vmatprep.subr.mxu0 %v1234_v25  ;;  %v1233_v27 = vld [vmem:[#allocation2 + $0x70] sm:$0xff]  ;;  %vm3803_vm4 = vcmask 703488  }
 0x343   : > { %1069 = vst [vmem:[#allocation2 + $0x48] sm:$0xf0] %v1065_v26  ;;  %1273 = vmatpush1.msra.mxu0 %v1233_v27 }
 0x344   : > { %1274 = vmatprep.subr.mxu0 %v1232_v28 }
 0x345   : > { %v1046_v30 = vpop.permute.xlu1 %1045  ;;  %1275 = vmatpush1.msra.mxu0 %v1231_v29 }
 0x346   : > { %v1047_v31 = vsel %vm3783_vm8, %v3107_v56, %v1046_v30  ;;  %v1230_v32 = vld [vmem:[#allocation2 + $0x58] sm:$0xff]  ;;  %vm3804_vm8 = vcmask 703492  }
 0x347   : > { %1051 = vst [vmem:[#allocation2 + $0x38] sm:$0xf0] %v1047_v31  ;;  %1276 = vmatprep.subr.mxu0 %v1230_v32 }
 0x348   : > { %1277 = vmatpush1.msra.mxu0 %v1229_v33 }
 0x349   : > { %v1028_v34 = vpop.permute.xlu1 %1027 }
 0x34a   : > { %v1029_v35 = vsel %vm3784_vm9, %v3113_v61, %v1028_v34  ;;  %v1228_v36 = vld [vmem:[#allocation2 + $0x48] sm:$0xff]  ;;  %vm3805_vm9 = vcmask 744448  }
 0x34b   : > { %1033 = vst [vmem:[#allocation2 + $0x28] sm:$0xf0] %v1029_v35  ;;  %1278 = vmatprep.subr.mxu0 %v1228_v36 }
 0x34c   : > { %1279 = vmatpush1.msra.mxu0 %v1227_v37 }
 0x34d   : > { %v1010_v38 = vpop.permute.xlu1 %1009 }
 0x34e   : > { %v1011_v39 = vsel %vm3785_vm10, %v3119_v1, %v1010_v38  ;;  %v1226_v40 = vld [vmem:[#allocation2 + $0x38] sm:$0xff]  ;;  %vm3806_vm10 = vcmask 744452  }
 0x34f   : > { %1015 = vst [vmem:[#allocation2 + $0x18] sm:$0xf0] %v1011_v39  ;;  %1280 = vmatprep.subr.mxu0 %v1226_v40 }
 0x350   : > { %1281 = vmatpush1.msra.mxu0 %v1225_v41 }
 0x351   : > { %v992_v44 = vpop.permute.xlu1 %991 }
 0x352   : > { %v993_v45 = vsel %vm563_vm12, %v3125_v6, %v992_v44  ;;  %v1224_v46 = vld [vmem:[#allocation2 + $0x28] sm:$0xff] }
 0x353   : > { %997 = vst [vmem:[#allocation2 + $0x8] sm:$0xf0] %v993_v45  ;;  %1282 = vmatprep.subr.mxu0 %v1224_v46 }
 0x354   : > { %1283 = vmatpush1.msra.mxu0 %v1223_v13 }
 0x356   : > { %v1222_v47 = vld [vmem:[#allocation2 + $0x18] sm:$0xff] }
 0x357   : > { %1284 = vmatprep.subr.mxu0 %v1222_v47 }
 0x358   : > { %1285 = vmatpush1.msra.mxu0 %v1221_v49 }
 0x35a   : > { %v1220_v50 = vld [vmem:[#allocation2 + $0x8] sm:$0xff] }
 0x35b   : > { %1286 = vmatprep.subr.mxu0 %v1220_v50 }
 0x35c   : > { %1287 = vmatpush1.msra.mxu0 %v1219_v52 }
 0x35d   : > { %2552 = vmatmul.mubr.msk.f32.vlgmr.msra.gmra.mxu0 %vm866_vm15, %v1218_v51 }
 0x35e   : > { %2070 = vmatprep.mubr.f32.mxu0 %v2621_v0 }
 0x41d   : > { %v1322_v53 = vpop.f32.mrf.mxu0 }
 0x41e   : > { %v1329_v55 = vrot.slane %v1322_v53, 4 }
 0x41f   : > { %v1324_v56 = vpop.f32.mrf.mxu0 }
 0x420   : > { %v1333_v59 = vadd.f32 %v1329_v55, %v2979_v57  ;;  %v1330_v48 = vrot.slane %v1324_v56, 4 }
 0x422   : > { %v1335_v61 = vsel %vm505_vm11, %v1333_v59, 0.0  ;;  %v1334_v62 = vadd.f32 %v1330_v48, %v2981_v58 }
 0x423   : > { %vm1337_vm6 = vcmp.gt.f32.partialorder %v1335_v61, 0.0  ;;  %v1339_v63 = vmul.f32 0.01, %v1335_v61  ;;  %v2458_v1 = vrot.slane %v1335_v61, 4 }
 0x424   : > { %v1336_v2 = vsel %vm506_vm2, %v1334_v62, 0.0 }
 0x425   : > { %v1341_v57 = vsel %vm1337_vm6, %v1335_v61, %v1339_v63  ;;  %2462 = vst [vmem:[%s3155_s20] sm:$0xf] %v2458_v1  ;;  %vm1338_vm5 = vcmp.gt.f32.partialorder %v1336_v2, 0.0  ;;  %v1340_v3 = vmul.f32 0.01, %v1336_v2  ;;  %v2459_v4 = vrot.slane %v1336_v2, 4 }
 0x426   : > { %1464 = vst [vmem:[#allocation2 + $0x60] sm:$0xf0] %v1341_v57  ;;  %1565 = vrot.lane.b32.xlu0 %v1341_v57, %s3743_s26  ;;  %v1345_v58 = vrot.slane %v1341_v57, 4  ;;  %vm3807_vm6 = vcmask 760832  }
 0x427   : > { %v1342_v5 = vsel %vm1338_vm5, %v1336_v2, %v1340_v3  ;;  %2463 = vst [vmem:[%s3155_s20 + $0x8] sm:$0xf] %v2459_v4  ;;  %vm3808_vm5 = vcmask 760836  }
 0x428   : > { %1465 = vst [vmem:[#allocation2 + $0x68] sm:$0xf0] %v1342_v5  ;;  %1567 = vrot.lane.b32.xlu1 %v1342_v5, %s3743_s26  ;;  %v1346_v6 = vrot.slane %v1342_v5, 4 }
 0x42a   : > { %1547 = vrot.lane.b32.xlu0 %v1341_v57, %s3736_s30 }
 0x42c   : > { %1549 = vrot.lane.b32.xlu1 %v1342_v5, %s3736_s30 }
 0x42e   : > { %1529 = vrot.lane.b32.xlu0 %v1341_v57, %s3737_s12 }
 0x430   : > { %1531 = vrot.lane.b32.xlu1 %v1342_v5, %s3737_s12 }
 0x432   : > { %1511 = vrot.lane.b32.xlu0 %v1341_v57, %s3738_s19 }
 0x434   : > { %1513 = vrot.lane.b32.xlu1 %v1342_v5, %s3738_s19 }
 0x436   : > { %1493 = vrot.lane.b32.xlu0 %v1341_v57, %s3739_s17 }
 0x438   : > { %1495 = vrot.lane.b32.xlu1 %v1342_v5, %s3739_s17 }
 0x43a   : > { %1475 = vrot.lane.b32.xlu0 %v1341_v57, %s3740_s24 }
 0x43c   : > { %1477 = vrot.lane.b32.xlu1 %v1342_v5, %s3740_s24 }
 0x43e   : > { %1446 = vrot.lane.b32.xlu0 %v1341_v57, %s3741_s28 }
 0x440   : > { %1448 = vrot.lane.b32.xlu1 %v1342_v5, %s3741_s28 }
 0x442   : > { %1428 = vrot.lane.b32.xlu0 %v1341_v57, %s3742_s23 }
 0x444   : > { %1430 = vrot.lane.b32.xlu1 %v1342_v5, %s3742_s23 }
 0x446   : > { %1410 = vrot.lane.b32.xlu0 %v1341_v57, %s3744_s15 }
 0x448   : > { %1412 = vrot.lane.b32.xlu1 %v1342_v5, %s3744_s15 }
 0x44a   : > { %1392 = vrot.lane.b32.xlu0 %v1341_v57, %s3745_s22 }
 0x44c   : > { %1394 = vrot.lane.b32.xlu1 %v1342_v5, %s3745_s22 }
 0x44e   : > { %1374 = vrot.lane.b32.xlu0 %v1341_v57, %s3713_s25 }
 0x450   : > { %1376 = vrot.lane.b32.xlu1 %v1342_v5, %s3713_s25  ;;  %s3794_s25 = smov 1  }
 0x452   : > { %1574 = vrot.lane.b32.xlu0 %v1345_v58, %s3715_s21 }
 0x454   : > { %1576 = vrot.lane.b32.xlu1 %v1346_v6, %s3715_s21  ;;  %s3795_s21 = smov 6  }
 0x456   : > { %1556 = vrot.lane.b32.xlu0 %v1345_v58, %s3788_s14 }
 0x458   : > { %1558 = vrot.lane.b32.xlu1 %v1346_v6, %s3788_s14 }
 0x45a   : > { %1538 = vrot.lane.b32.xlu0 %v1345_v58, %s3789_s27 }
 0x45c   : > { %1540 = vrot.lane.b32.xlu1 %v1346_v6, %s3789_s27 }
 0x45e   : > { %1520 = vrot.lane.b32.xlu0 %v1345_v58, %s3790_s11 }
 0x460   : > { %1522 = vrot.lane.b32.xlu1 %v1346_v6, %s3790_s11 }
 0x462   : > { %1502 = vrot.lane.b32.xlu0 %v1345_v58, %s3791_s16 }
 0x464   : > { %1504 = vrot.lane.b32.xlu1 %v1346_v6, %s3791_s16 }
 0x466   : > { %1484 = vrot.lane.b32.xlu0 %v1345_v58, %s3792_s18 }
 0x468   : > { %1486 = vrot.lane.b32.xlu1 %v1346_v6, %s3792_s18 }
 0x46a   : > { %1466 = vrot.lane.b32.xlu0 %v1345_v58, %s3793_s29 }
 0x46c   : > { %1468 = vrot.lane.b32.xlu1 %v1346_v6, %s3793_s29 }
 0x46e   : > { %1455 = vrot.lane.b32.xlu0 %v1345_v58, %s3794_s25 }
 0x470   : > { %1457 = vrot.lane.b32.xlu1 %v1346_v6, %s3794_s25 }
 0x472   : > { %1437 = vrot.lane.b32.xlu0 %v1345_v58, %s3795_s21 }
 0x474   : > { %1439 = vrot.lane.b32.xlu1 %v1346_v6, %s3795_s21 }
 0x476   : > { %1419 = vrot.lane.b32.xlu0 %v1345_v58, %s3796_s0 }
 0x478   : > { %1421 = vrot.lane.b32.xlu1 %v1346_v6, %s3796_s0 }
 0x47a   : > { %1401 = vrot.lane.b32.xlu0 %v1345_v58, %s3797_s2 }
 0x47c   : > { %1403 = vrot.lane.b32.xlu1 %v1346_v6, %s3797_s2 }
 0x47e   : > { %1383 = vrot.lane.b32.xlu0 %v1345_v58, %s3798_s3 }
 0x480   : > { %1385 = vrot.lane.b32.xlu1 %v1346_v6, %s3798_s3 }
 0x482   : > { %1365 = vrot.lane.b32.xlu0 %v1345_v58, %s3799_s4 }
 0x484   : > { %1367 = vrot.lane.b32.xlu1 %v1346_v6, %s3799_s4 }
 0x486   : > { %1347 = vrot.lane.b32.xlu0 %v1345_v58, %s3800_s5 }
 0x488   : > { %1349 = vrot.lane.b32.xlu1 %v1346_v6, %s3800_s5 }
 0x48a   : > { %1356 = vrot.lane.b32.xlu0 %v1341_v57, %s3801_s8 }
 0x48c   : > { %1358 = vrot.lane.b32.xlu1 %v1342_v5, %s3801_s8 }
 0x48e   : > { %1959 = vrot.lane.b32.xlu0 %v3221_v9, %s3802_s9 }
 0x490   : > { %1961 = vrot.lane.b32.xlu1 %v3226_v10, %s3802_s9 }
 0x492   : > { %1923 = vrot.lane.b32.xlu0 %v3221_v9, %s3789_s27 }
 0x494   : > { %1941 = vrot.lane.b32.xlu1 %v3221_v9, %s3788_s14 }
 0x496   : > { %1925 = vrot.lane.b32.xlu0 %v3226_v10, %s3789_s27 }
 0x498   : > { %v1566_v11 = vpop.permute.xlu0 %1565  ;;  %1943 = vrot.lane.b32.xlu1 %v3226_v10, %s3788_s14 }
 0x49a   : > { %1934 = vrot.lane.b32.xlu0 %v3239_v12, %s3736_s30  ;;  %v1568_v14 = vpop.permute.xlu1 %1567 }
 0x49b   : > { %v1569_v16 = vsel %vm3803_vm4, %v1566_v11, %v1568_v14  ;;  %1573 = vst.msk [vmem:[#allocation2 + $0xc8] sm:$0xf0] %vm3804_vm8, %v1568_v14  ;;  %vm3811_vm4 = vcmask 990208   ;;  %vm3812_vm8 = vcmask 990212  }
 0x49c   : > { %1572 = vst [vmem:[#allocation2 + $0xc0] sm:$0xf0] %v1569_v16  ;;  %v1548_v17 = vpop.permute.xlu0 %1547  ;;  %1950 = vrot.lane.b32.xlu1 %v3244_v15, %s3743_s26 }
 0x49e   : > { %1905 = vrot.lane.b32.xlu0 %v3221_v9, %s3790_s11  ;;  %v1550_v18 = vpop.permute.xlu1 %1549 }
 0x49f   : > { %v1551_v19 = vsel %vm3805_vm9, %v1548_v17, %v1550_v18  ;;  %1555 = vst.msk [vmem:[#allocation2 + $0xb8] sm:$0xf0] %vm3806_vm10, %v1550_v18  ;;  %vm3813_vm9 = vcmask 1006592   ;;  %vm3814_vm10 = vcmask 1006596  }
 0x4a0   : > { %1554 = vst [vmem:[#allocation2 + $0xb0] sm:$0xf0] %v1551_v19  ;;  %v1530_v20 = vpop.permute.xlu0 %1529  ;;  %1952 = vrot.lane.b32.xlu1 %v3239_v12, %s3743_s26 }
 0x4a2   : > { %1907 = vrot.lane.b32.xlu0 %v3226_v10, %s3790_s11  ;;  %v1532_v21 = vpop.permute.xlu1 %1531 }
 0x4a3   : > { %v1533_v22 = vsel %vm3807_vm6, %v1530_v20, %v1532_v21  ;;  %1537 = vst.msk [vmem:[#allocation2 + $0xa8] sm:$0xf0] %vm3808_vm5, %v1532_v21  ;;  %vm3815_vm6 = vcmask 1047596   ;;  %vm3816_vm5 = vcmask 39936  }
 0x4a4   : > { %1536 = vst [vmem:[#allocation2 + $0xa0] sm:$0xf0] %v1533_v22  ;;  %v1512_v23 = vpop.permute.xlu0 %1511  ;;  %1932 = vrot.lane.b32.xlu1 %v3244_v15, %s3736_s30 }
 0x4a6   : > { %1914 = vrot.lane.b32.xlu0 %v3244_v15, %s3737_s12  ;;  %v1514_v24 = vpop.permute.xlu1 %1513 }
 0x4a7   : > { %v1515_v25 = vsel %vm3809_vm14, %v1512_v23, %v1514_v24  ;;  %1519 = vst.msk [vmem:[#allocation2 + $0x98] sm:$0xf0] %vm3810_vm3, %v1514_v24  ;;  %vm3817_vm14 = vcmask 1047612   ;;  %vm3818_vm3 = vcmask 56320  }
 0x4a8   : > { %1518 = vst [vmem:[#allocation2 + $0x90] sm:$0xf0] %v1515_v25  ;;  %v1494_v26 = vpop.permute.xlu0 %1493  ;;  %1916 = vrot.lane.b32.xlu1 %v3239_v12, %s3737_s12 }
 0x4aa   : > { %1887 = vrot.lane.b32.xlu0 %v3221_v9, %s3791_s16  ;;  %v1496_v27 = vpop.permute.xlu1 %1495 }
 0x4ab   : > { %v1497_v28 = vsel %vm3811_vm4, %v1494_v26, %v1496_v27  ;;  %1501 = vst.msk [vmem:[#allocation2 + $0x88] sm:$0xf0] %vm3812_vm8, %v1496_v27  ;;  %vm3819_vm4 = vcmask 1047796   ;;  %vm3820_vm8 = vcmask 244736  }
 0x4ac   : > { %1500 = vst [vmem:[#allocation2 + $0x80] sm:$0xf0] %v1497_v28  ;;  %v1476_v29 = vpop.permute.xlu0 %1475  ;;  %1889 = vrot.lane.b32.xlu1 %v3226_v10, %s3791_s16 }
 0x4ae   : > { %1896 = vrot.lane.b32.xlu0 %v3244_v15, %s3738_s19  ;;  %v1478_v30 = vpop.permute.xlu1 %1477 }
 0x4af   : > { %v1479_v31 = vsel %vm3813_vm9, %v1476_v29, %v1478_v30  ;;  %1483 = vst.msk [vmem:[#allocation2 + $0x78] sm:$0xf0] %vm3814_vm10, %v1478_v30  ;;  %vm3821_vm9 = vcmask 1047836   ;;  %vm3822_vm10 = vcmask 285696  }
 0x4b0   : > { %1482 = vst [vmem:[#allocation2 + $0x70] sm:$0xf0] %v1479_v31  ;;  %v1447_v32 = vpop.permute.xlu0 %1446  ;;  %1898 = vrot.lane.b32.xlu1 %v3239_v12, %s3738_s19 }
 0x4b1   : > { %1453 = vst.msk [vmem:[#allocation2 + $0x50] sm:$0xf0] %vm3815_vm6, %v1447_v32  ;;  %vm3823_vm6 = vcmask 1047852  }
 0x4b2   : > { %1869 = vrot.lane.b32.xlu0 %v3221_v9, %s3792_s18  ;;  %v1449_v33 = vpop.permute.xlu1 %1448 }
 0x4b3   : > { %v1450_v34 = vsel %vm3816_vm5, %v1447_v32, %v1449_v33  ;;  %vm3824_vm5 = vcmask 302080  }
 0x4b4   : > { %1454 = vst [vmem:[#allocation2 + $0x58] sm:$0xf0] %v1450_v34  ;;  %v1429_v35 = vpop.permute.xlu0 %1428  ;;  %1871 = vrot.lane.b32.xlu1 %v3226_v10, %s3792_s18 }
 0x4b5   : > { %1435 = vst.msk [vmem:[#allocation2 + $0x40] sm:$0xf0] %vm3817_vm14, %v1429_v35  ;;  %vm3825_vm14 = vcmask 691200  }
 0x4b6   : > { %1878 = vrot.lane.b32.xlu0 %v3244_v15, %s3739_s17  ;;  %v1431_v36 = vpop.permute.xlu1 %1430 }
 0x4b7   : > { %v1432_v37 = vsel %vm3818_vm3, %v1429_v35, %v1431_v36  ;;  %vm3826_vm3 = vcmask 711680  }
 0x4b8   : > { %1436 = vst [vmem:[#allocation2 + $0x48] sm:$0xf0] %v1432_v37  ;;  %v1411_v38 = vpop.permute.xlu0 %1410  ;;  %1880 = vrot.lane.b32.xlu1 %v3239_v12, %s3739_s17 }
 0x4b9   : > { %1417 = vst.msk [vmem:[#allocation2 + $0x30] sm:$0xf0] %vm3819_vm4, %v1411_v38  ;;  %vm3827_vm4 = vcmask 707584  }
 0x4ba   : > { %1851 = vrot.lane.b32.xlu0 %v3221_v9, %s3793_s29  ;;  %v1413_v39 = vpop.permute.xlu1 %1412 }
 0x4bb   : > { %v1414_v40 = vsel %vm3820_vm8, %v1411_v38, %v1413_v39  ;;  %vm3828_vm8 = vcmask 752640  }
 0x4bc   : > { %1418 = vst [vmem:[#allocation2 + $0x38] sm:$0xf0] %v1414_v40  ;;  %v1393_v41 = vpop.permute.xlu0 %1392  ;;  %1853 = vrot.lane.b32.xlu1 %v3226_v10, %s3793_s29 }
 0x4bd   : > { %1399 = vst.msk [vmem:[#allocation2 + $0x20] sm:$0xf0] %vm3821_vm9, %v1393_v41  ;;  %vm3829_vm9 = vcmask 748544  }
 0x4be   : > { %1860 = vrot.lane.b32.xlu0 %v3244_v15, %s3740_s24  ;;  %v1395_v44 = vpop.permute.xlu1 %1394 }
 0x4bf   : > { %v1396_v45 = vsel %vm3822_vm10, %v1393_v41, %v1395_v44  ;;  %vm3830_vm10 = vcmask 1043456  }
 0x4c0   : > { %1400 = vst [vmem:[#allocation2 + $0x28] sm:$0xf0] %v1396_v45  ;;  %v1375_v46 = vpop.permute.xlu0 %1374  ;;  %1862 = vrot.lane.b32.xlu1 %v3239_v12, %s3740_s24 }
 0x4c1   : > { %1381 = vst.msk [vmem:[#allocation2 + $0x10] sm:$0xf0] %vm3823_vm6, %v1375_v46  ;;  %vm3831_vm6 = vmmov %vm3830_vm10 }
 0x4c2   : > { %1838 = vrot.lane.b32.xlu0 %v3221_v9, %s3794_s25  ;;  %v1377_v13 = vpop.permute.xlu1 %1376 }
 0x4c3   : > { %v1378_v47 = vsel %vm3824_vm5, %v1375_v46, %v1377_v13  ;;  %vm3832_vm5 = vcmask 793600  }
 0x4c4   : > { %1382 = vst [vmem:[#allocation2 + $0x18] sm:$0xf0] %v1378_v47  ;;  %v1575_v49 = vpop.permute.xlu0 %1574  ;;  %1840 = vrot.lane.b32.xlu1 %v3226_v10, %s3794_s25 }
 0x4c6   : > { %1820 = vrot.lane.b32.xlu0 %v3221_v9, %s3795_s21  ;;  %v1577_v50 = vpop.permute.xlu1 %1576 }
 0x4c7   : > { %v1578_v51 = vsel %vm830_vm7, %v1575_v49, %v1577_v50  ;;  %1582 = vst.msk [vmem:[#allocation2 + $0xd8] sm:$0xf] %vm3825_vm14, %v1577_v50  ;;  %vm3833_vm14 = vcmask 789504  }
 0x4c8   : > { %1581 = vst [vmem:[#allocation2 + $0xd0] sm:$0xf] %v1578_v51  ;;  %v1557_v52 = vpop.permute.xlu0 %1556  ;;  %1822 = vrot.lane.b32.xlu1 %v3226_v10, %s3795_s21 }
 0x4ca   : > { %1829 = vrot.lane.b32.xlu0 %v3244_v15, %s3741_s28  ;;  %v1559_v53 = vpop.permute.xlu1 %1558 }
 0x4cb   : > { %v1560_v55 = vsel %vm3826_vm3, %v1557_v52, %v1559_v53  ;;  %1564 = vst.msk [vmem:[#allocation2 + $0xc8] sm:$0xf] %vm3827_vm4, %v1559_v53  ;;  %vm3834_vm3 = vcmask 809984   ;;  %vm3835_vm4 = vcmask 805888  }
 0x4cc   : > { %1563 = vst [vmem:[#allocation2 + $0xc0] sm:$0xf] %v1560_v55  ;;  %v1539_v56 = vpop.permute.xlu0 %1538  ;;  %1831 = vrot.lane.b32.xlu1 %v3239_v12, %s3741_s28 }
 0x4ce   : > { %1802 = vrot.lane.b32.xlu0 %v3221_v9, %s3796_s0  ;;  %v1541_v59 = vpop.permute.xlu1 %1540  ;;  %v1611_v48 = vld [vmem:[#allocation2 + $0xd8] sm:$0xf] }
 0x4cf   : > { %v1542_v61 = vsel %vm3828_vm8, %v1539_v56, %v1541_v59  ;;  %1546 = vst.msk [vmem:[#allocation2 + $0xb8] sm:$0xf] %vm3829_vm9, %v1541_v59  ;;  %2553 = vmatprep.subr.msk.mxu1 %vm3830_vm10, %v1611_v48  ;;  %v1610_v62 = vld [vmem:[#allocation2 + $0xd0] sm:$0xf]  ;;  %vm3836_vm8 = vcmask 998400   ;;  %vm3837_vm9 = vcmask 994304  }
 0x4d0   : > { %1545 = vst [vmem:[#allocation2 + $0xb0] sm:$0xf] %v1542_v61  ;;  %v1521_v63 = vpop.permute.xlu0 %1520  ;;  %1804 = vrot.lane.b32.xlu1 %v3226_v10, %s3796_s0  ;;  %2554 = vmatpush1.msk.msra.mxu1 %vm3831_vm6, %v1610_v62  ;;  %vm3838_vm10 = vcmask 1039360   ;;  %vm3839_vm6 = vcmask 1035264  }
 0x4d2   : > { %1811 = vrot.lane.b32.xlu0 %v3244_v15, %s3742_s23  ;;  %v1523_v1 = vpop.permute.xlu1 %1522  ;;  %v1609_v2 = vld [vmem:[#allocation2 + $0xc8] sm:$0xff] }
 0x4d3   : > { %v1524_v57 = vsel %vm3832_vm5, %v1521_v63, %v1523_v1  ;;  %1528 = vst.msk [vmem:[#allocation2 + $0xa8] sm:$0xf] %vm3833_vm14, %v1523_v1  ;;  %1627 = vmatprep.subr.mxu1 %v1609_v2  ;;  %v1608_v3 = vld [vmem:[#allocation2 + $0xc0] sm:$0xff]  ;;  %vm3840_vm5 = vcmask 1043464   ;;  %vm3841_vm14 = vcmask 7168  }
 0x4d4   : > { %1527 = vst [vmem:[#allocation2 + $0xa0] sm:$0xf] %v1524_v57  ;;  %v1503_v4 = vpop.permute.xlu0 %1502  ;;  %1813 = vrot.lane.b32.xlu1 %v3239_v12, %s3742_s23  ;;  %1628 = vmatpush1.msra.mxu1 %v1608_v3 }
 0x4d6   : > { %1784 = vrot.lane.b32.xlu0 %v3221_v9, %s3797_s2  ;;  %v1505_v5 = vpop.permute.xlu1 %1504  ;;  %v1607_v58 = vld [vmem:[#allocation2 + $0xb8] sm:$0xff] }
 0x4d7   : > { %v1506_v6 = vsel %vm3834_vm3, %v1503_v4, %v1505_v5  ;;  %1510 = vst.msk [vmem:[#allocation2 + $0x98] sm:$0xf] %vm3835_vm4, %v1505_v5  ;;  %1629 = vmatprep.subr.mxu1 %v1607_v58  ;;  %v1606_v7 = vld [vmem:[#allocation2 + $0xb0] sm:$0xff]  ;;  %vm3842_vm3 = vcmask 1043504   ;;  %vm3843_vm4 = vcmask 48128  }
 0x4d8   : > { %1509 = vst [vmem:[#allocation2 + $0x90] sm:$0xf] %v1506_v6  ;;  %v1485_v8 = vpop.permute.xlu0 %1484  ;;  %1786 = vrot.lane.b32.xlu1 %v3226_v10, %s3797_s2  ;;  %1630 = vmatpush1.msra.mxu1 %v1606_v7  ;;  %v1583_v58 = vld [vmem:[%s3612_s6] sm:$0xf] }
 0x4da   : > { %1793 = vrot.lane.b32.xlu0 %v3244_v15, %s3744_s15  ;;  %v1487_v11 = vpop.permute.xlu1 %1486  ;;  %v1605_v14 = vld [vmem:[#allocation2 + $0xa8] sm:$0xff] }
 0x4db   : > { %v1488_v16 = vsel %vm3836_vm8, %v1485_v8, %v1487_v11  ;;  %1492 = vst.msk [vmem:[#allocation2 + $0x88] sm:$0xf] %vm3837_vm9, %v1487_v11  ;;  %1631 = vmatprep.subr.mxu1 %v1605_v14  ;;  %v1604_v17 = vld [vmem:[#allocation2 + $0xa0] sm:$0xff]  ;;  %vm3844_vm8 = vcmask 1043688   ;;  %vm3846_vm9 = vcmask 236544  }
 0x4dc   : > { %1491 = vst [vmem:[#allocation2 + $0x80] sm:$0xf] %v1488_v16  ;;  %v1467_v18 = vpop.permute.xlu0 %1466  ;;  %1795 = vrot.lane.b32.xlu1 %v3239_v12, %s3744_s15  ;;  %1632 = vmatpush1.msra.mxu1 %v1604_v17 }
 0x4de   : > { %1766 = vrot.lane.b32.xlu0 %v3221_v9, %s3798_s3  ;;  %v1469_v19 = vpop.permute.xlu1 %1468  ;;  %v1603_v20 = vld [vmem:[#allocation2 + $0x98] sm:$0xff] }
 0x4df   : > { %v1470_v21 = vsel %vm3838_vm10, %v1467_v18, %v1469_v19  ;;  %1474 = vst.msk [vmem:[#allocation2 + $0x78] sm:$0xf] %vm3839_vm6, %v1469_v19  ;;  %1633 = vmatprep.subr.mxu1 %v1603_v20  ;;  %v1602_v22 = vld [vmem:[#allocation2 + $0x90] sm:$0xff]  ;;  %vm3847_vm10 = vcmask 1043704   ;;  %vm3848_vm6 = vcmask 252928  }
 0x4e0   : > { %1473 = vst [vmem:[#allocation2 + $0x70] sm:$0xf] %v1470_v21  ;;  %v1456_v23 = vpop.permute.xlu0 %1455  ;;  %1768 = vrot.lane.b32.xlu1 %v3226_v10, %s3798_s3  ;;  %1634 = vmatpush1.msra.mxu1 %v1602_v22 }
 0x4e1   : > { %1462 = vst.msk [vmem:[#allocation2 + $0x60] sm:$0xf] %vm3840_vm5, %v1456_v23  ;;  %vm3849_vm5 = vcmask 1043744  }
 0x4e2   : > { %1775 = vrot.lane.b32.xlu0 %v3244_v15, %s3745_s22  ;;  %v1458_v24 = vpop.permute.xlu1 %1457  ;;  %v1601_v25 = vld [vmem:[#allocation2 + $0x88] sm:$0xff] }
 0x4e3   : > { %v1459_v26 = vsel %vm3841_vm14, %v1456_v23, %v1458_v24  ;;  %1635 = vmatprep.subr.mxu1 %v1601_v25  ;;  %v1600_v27 = vld [vmem:[#allocation2 + $0x80] sm:$0xff]  ;;  %vm3850_vm14 = vcmask 293888  }
 0x4e4   : > { %1463 = vst [vmem:[#allocation2 + $0x68] sm:$0xf] %v1459_v26  ;;  %v1438_v28 = vpop.permute.xlu0 %1437  ;;  %1777 = vrot.lane.b32.xlu1 %v3239_v12, %s3745_s22  ;;  %1636 = vmatpush1.msra.mxu1 %v1600_v27 }
 0x4e5   : > { %1444 = vst.msk [vmem:[#allocation2 + $0x50] sm:$0xf] %vm3842_vm3, %v1438_v28  ;;  %vm3851_vm3 = vcmask 1043784  }
 0x4e6   : > { %1748 = vrot.lane.b32.xlu0 %v3221_v9, %s3799_s4  ;;  %v1440_v29 = vpop.permute.xlu1 %1439  ;;  %v1599_v30 = vld [vmem:[#allocation2 + $0x78] sm:$0xff] }
 0x4e7   : > { %v1441_v31 = vsel %vm3843_vm4, %v1438_v28, %v1440_v29  ;;  %1637 = vmatprep.subr.mxu1 %v1599_v30  ;;  %v1598_v32 = vld [vmem:[#allocation2 + $0x70] sm:$0xff]  ;;  %vm3852_vm4 = vcmask 334848  }
 0x4e8   : > { %1445 = vst [vmem:[#allocation2 + $0x58] sm:$0xf] %v1441_v31  ;;  %v1420_v33 = vpop.permute.xlu0 %1419  ;;  %1750 = vrot.lane.b32.xlu1 %v3226_v10, %s3799_s4  ;;  %1638 = vmatpush1.msra.mxu1 %v1598_v32  ;;  %v1596_v34 = vld [vmem:[#allocation2 + $0x60] sm:$0xff] }
 0x4e9   : > { %1426 = vst.msk [vmem:[#allocation2 + $0x40] sm:$0xf] %vm3844_vm8, %v1420_v33  ;;  %1849 = vst [vmem:[#allocation2 + $0x60] sm:$0xf0] %v3244_v15  ;;  %vm3853_vm8 = vcmask 691200  }
 0x4ea   : > { %1757 = vrot.lane.b32.xlu0 %v3244_v15, %s3845_s10  ;;  %v1422_v35 = vpop.permute.xlu1 %1421 }
 0x4eb   : > { %v1423_v36 = vsel %vm3846_vm9, %v1420_v33, %v1422_v35  ;;  %v1597_v37 = vld [vmem:[#allocation2 + $0x68] sm:$0xff]  ;;  %vm3854_vm9 = vcmask 752640  }
 0x4ec   : > { %1427 = vst [vmem:[#allocation2 + $0x48] sm:$0xf] %v1423_v36  ;;  %v1402_v38 = vpop.permute.xlu0 %1401  ;;  %1759 = vrot.lane.b32.xlu1 %v3239_v12, %s3845_s10  ;;  %1639 = vmatprep.subr.mxu1 %v1597_v37  ;;  %1850 = vst [vmem:[#allocation2 + $0x68] sm:$0xf0] %v3239_v12  ;;  %v1594_v45 = vld [vmem:[#allocation2 + $0x50] sm:$0xff] }
 0x4ed   : > { %1408 = vst.msk [vmem:[#allocation2 + $0x30] sm:$0xf] %vm3847_vm10, %v1402_v38  ;;  %1640 = vmatpush1.msra.mxu1 %v1596_v34  ;;  %vm3855_vm10 = vcmask 748544  }
 0x4ee   : > { %1728 = vrot.lane.b32.xlu0 %v3221_v9, %s3800_s5  ;;  %v1404_v39 = vpop.permute.xlu1 %1403 }
 0x4ef   : > { %v1405_v40 = vsel %vm3848_vm6, %v1402_v38, %v1404_v39  ;;  %v1595_v41 = vld [vmem:[#allocation2 + $0x58] sm:$0xff]  ;;  %vm3856_vm6 = vcmask 711680  }
 0x4f0   : > { %1409 = vst [vmem:[#allocation2 + $0x38] sm:$0xf] %v1405_v40  ;;  %v1384_v44 = vpop.permute.xlu0 %1383  ;;  %1730 = vrot.lane.b32.xlu1 %v3226_v10, %s3800_s5  ;;  %1641 = vmatprep.subr.mxu1 %v1595_v41  ;;  %v1592_v49 = vld [vmem:[#allocation2 + $0x40] sm:$0xff] }
 0x4f1   : > { %1390 = vst.msk [vmem:[#allocation2 + $0x20] sm:$0xf] %vm3849_vm5, %v1384_v44  ;;  %1642 = vmatpush1.msra.mxu1 %v1594_v45  ;;  %vm3857_vm5 = vcmask 707584  }
 0x4f2   : > { %1739 = vrot.lane.b32.xlu0 %v3244_v15, %s3801_s8  ;;  %v1386_v46 = vpop.permute.xlu1 %1385 }
 0x4f3   : > { %v1387_v9 = vsel %vm3850_vm14, %v1384_v44, %v1386_v46  ;;  %v1593_v13 = vld [vmem:[#allocation2 + $0x48] sm:$0xff]  ;;  %vm3858_vm14 = vcmask 1043456  }
 0x4f4   : > { %1391 = vst [vmem:[#allocation2 + $0x28] sm:$0xf] %v1387_v9  ;;  %v1366_v47 = vpop.permute.xlu0 %1365  ;;  %1741 = vrot.lane.b32.xlu1 %v3239_v12, %s3801_s8  ;;  %1643 = vmatprep.subr.mxu1 %v1593_v13  ;;  %v1590_v52 = vld [vmem:[#allocation2 + $0x30] sm:$0xff] }
 0x4f5   : > { %1372 = vst.msk [vmem:[#allocation2 + $0x10] sm:$0xf] %vm3851_vm3, %v1366_v47  ;;  %1644 = vmatpush1.msra.mxu1 %v1592_v49  ;;  %vm3859_vm3 = vmmov %vm3858_vm14 }
 0x4f6   : > { %v1368_v10 = vpop.permute.xlu1 %1367 }
 0x4f7   : > { %v1369_v50 = vsel %vm3852_vm4, %v1366_v47, %v1368_v10  ;;  %v1591_v51 = vld [vmem:[#allocation2 + $0x38] sm:$0xff]  ;;  %vm3860_vm4 = vcmask 744452  }
 0x4f8   : > { %1373 = vst [vmem:[#allocation2 + $0x18] sm:$0xf] %v1369_v50  ;;  %v1348_v15 = vpop.permute.xlu0 %1347  ;;  %1645 = vmatprep.subr.mxu1 %v1591_v51  ;;  %v1588_v59 = vld [vmem:[#allocation2 + $0x20] sm:$0xff] }
 0x4f9   : > { %1354 = vst.msk [vmem:[#allocation2] sm:$0xf] %vm555_vm1, %v1348_v15  ;;  %1646 = vmatpush1.msra.mxu1 %v1590_v52 }
 0x4fa   : > { %v1350_v53 = vpop.permute.xlu1 %1349 }
 0x4fb   : > { %v1351_v55 = vsel %vm551_vm0, %v1348_v15, %v1350_v53  ;;  %v1589_v12 = vld [vmem:[#allocation2 + $0x28] sm:$0xff] }
 0x4fc   : > { %1355 = vst [vmem:[#allocation2 + $0x8] sm:$0xf] %v1351_v55  ;;  %v1357_v56 = vpop.permute.xlu0 %1356  ;;  %1647 = vmatprep.subr.mxu1 %v1589_v12  ;;  %v1586_v1 = vld [vmem:[#allocation2 + $0x10] sm:$0xff] }
 0x4fd   : > { %1363 = vst.msk [vmem:[#allocation2] sm:$0xf0] %vm567_vm13, %v1357_v56  ;;  %1648 = vmatpush1.msra.mxu1 %v1588_v59 }
 0x4fe   : > { %v1359_v48 = vpop.permute.xlu1 %1358 }
 0x4ff   : > { %v1360_v61 = vsel %vm563_vm12, %v1357_v56, %v1359_v48  ;;  %v1587_v62 = vld [vmem:[#allocation2 + $0x18] sm:$0xff] }
 0x500   : > { %1364 = vst [vmem:[#allocation2 + $0x8] sm:$0xf0] %v1360_v61  ;;  %v1960_v63 = vpop.permute.xlu0 %1959  ;;  %1649 = vmatprep.subr.mxu1 %v1587_v62 }
 0x501   : > { %1650 = vmatpush1.msra.mxu1 %v1586_v1 }
 0x502   : > { %v1962_v2 = vpop.permute.xlu1 %1961 }
 0x503   : > { %v1963_v57 = vsel %vm830_vm7, %v1960_v63, %v1962_v2  ;;  %1967 = vst.msk [vmem:[#allocation2 + $0xd8] sm:$0xf] %vm3853_vm8, %v1962_v2  ;;  %vm3861_vm8 = vcmask 703488  }
 0x504   : > { %1966 = vst [vmem:[#allocation2 + $0xd0] sm:$0xf] %v1963_v57  ;;  %v1924_v3 = vpop.permute.xlu0 %1923  ;;  %v1584_v7 = vld [vmem:[#allocation2] sm:$0xff] }
 0x506   : > { %v1942_v4 = vpop.permute.xlu1 %1941 }
 0x507   : > { %v1585_v5 = vld [vmem:[#allocation2 + $0x8] sm:$0xff] }
 0x508   : > { %v1926_v6 = vpop.permute.xlu0 %1925  ;;  %1651 = vmatprep.subr.mxu1 %v1585_v5 }
 0x509   : > { %v1927_v8 = vsel %vm3854_vm9, %v1924_v3, %v1926_v6  ;;  %1931 = vst.msk [vmem:[#allocation2 + $0xb8] sm:$0xf] %vm3855_vm10, %v1926_v6  ;;  %1652 = vmatpush1.msra.mxu1 %v1584_v7  ;;  %vm3862_vm9 = vcmask 703492   ;;  %vm3863_vm10 = vcmask 793600  }
 0x50a   : > { %1930 = vst [vmem:[#allocation2 + $0xb0] sm:$0xf] %v1927_v8  ;;  %2555 = vmatmul.mubr.msk.f32.vlgmr.msra.gmra.mxu1 %vm866_vm15, %v1583_v58  ;;  %v1944_v11 = vpop.permute.xlu1 %1943  ;;  %v1996_v14 = vld [vmem:[#allocation2 + $0xd8] sm:$0xf] }
 0x50b   : > { %v1945_v16 = vsel %vm3856_vm6, %v1942_v4, %v1944_v11  ;;  %1949 = vst.msk [vmem:[#allocation2 + $0xc8] sm:$0xf] %vm3857_vm5, %v1944_v11  ;;  %2556 = vmatprep.subr.msk.mxu0 %vm3858_vm14, %v1996_v14  ;;  %v1995_v17 = vld [vmem:[#allocation2 + $0xd0] sm:$0xf]  ;;  %2445 = vmatprep.mubr.f32.mxu1 %v2621_v0  ;;  %vm3864_vm6 = vcmask 789504   ;;  %vm3865_vm5 = vcmask 744448  }
 0x50c   : > { %1948 = vst [vmem:[#allocation2 + $0xc0] sm:$0xf] %v1945_v16  ;;  %v1935_v18 = vpop.permute.xlu0 %1934  ;;  %2557 = vmatpush1.msk.msra.mxu0 %vm3859_vm3, %v1995_v17  ;;  %vm3866_vm14 = vcmask 760832   ;;  %vm3867_vm3 = vcmask 760836  }
 0x50d   : > { %1940 = vst.msk [vmem:[#allocation2 + $0xb8] sm:$0xf0] %vm3860_vm4, %v1935_v18  ;;  %vm3868_vm4 = vcmask 809984  }
 0x50e   : > { %v1951_v19 = vpop.permute.xlu1 %1950 }
 0x510   : > { %v1906_v20 = vpop.permute.xlu0 %1905 }
 0x512   : > { %v1953_v21 = vpop.permute.xlu1 %1952 }
 0x513   : > { %v1954_v22 = vsel %vm3861_vm8, %v1951_v19, %v1953_v21  ;;  %1958 = vst.msk [vmem:[#allocation2 + $0xc8] sm:$0xf0] %vm3862_vm9, %v1953_v21  ;;  %vm3869_vm8 = vcmask 805888   ;;  %vm3870_vm9 = vcmask 801792  }
 0x514   : > { %1957 = vst [vmem:[#allocation2 + $0xc0] sm:$0xf0] %v1954_v22  ;;  %v1908_v23 = vpop.permute.xlu0 %1907  ;;  %v1992_v32 = vld [vmem:[#allocation2 + $0xb8] sm:$0xff] }
 0x515   : > { %v1909_v24 = vsel %vm3863_vm10, %v1906_v20, %v1908_v23  ;;  %1913 = vst.msk [vmem:[#allocation2 + $0xa8] sm:$0xf] %vm3864_vm6, %v1908_v23  ;;  %vm3871_vm10 = vcmask 801796   ;;  %vm3872_vm6 = vcmask 998400  }
 0x516   : > { %1912 = vst [vmem:[#allocation2 + $0xa0] sm:$0xf] %v1909_v24  ;;  %v1933_v0 = vpop.permute.xlu1 %1932 }
 0x517   : > { %v1936_v25 = vsel %vm3865_vm5, %v1933_v0, %v1935_v18  ;;  %vm3873_vm5 = vcmask 994304  }
 0x518   : > { %1939 = vst [vmem:[#allocation2 + $0xb0] sm:$0xf0] %v1936_v25  ;;  %v1915_v26 = vpop.permute.xlu0 %1914 }
 0x51a   : > { %v1917_v27 = vpop.permute.xlu1 %1916  ;;  %v1994_v28 = vld [vmem:[#allocation2 + $0xc8] sm:$0xff] }
 0x51b   : > { %v1918_v29 = vsel %vm3866_vm14, %v1915_v26, %v1917_v27  ;;  %1922 = vst.msk [vmem:[#allocation2 + $0xa8] sm:$0xf0] %vm3867_vm3, %v1917_v27  ;;  %2012 = vmatprep.subr.mxu0 %v1994_v28  ;;  %v1993_v30 = vld [vmem:[#allocation2 + $0xc0] sm:$0xff]  ;;  %vm3874_vm14 = vcmask 990208   ;;  %vm3875_vm3 = vcmask 990212  }
 0x51c   : > { %1921 = vst [vmem:[#allocation2 + $0xa0] sm:$0xf0] %v1918_v29  ;;  %v1888_v31 = vpop.permute.xlu0 %1887  ;;  %2013 = vmatpush1.msra.mxu0 %v1993_v30 }
 0x51d   : > { %2014 = vmatprep.subr.mxu0 %v1992_v32 }
 0x51e   : > { %v1890_v33 = vpop.permute.xlu1 %1889 }
 0x51f   : > { %v1891_v34 = vsel %vm3868_vm4, %v1888_v31, %v1890_v33  ;;  %1895 = vst.msk [vmem:[#allocation2 + $0x98] sm:$0xf] %vm3869_vm8, %v1890_v33  ;;  %v1991_v35 = vld [vmem:[#allocation2 + $0xb0] sm:$0xff]  ;;  %vm3876_vm4 = vcmask 1039360   ;;  %vm3877_vm8 = vcmask 1035264  }
 0x520   : > { %1894 = vst [vmem:[#allocation2 + $0x90] sm:$0xf] %v1891_v34  ;;  %v1897_v36 = vpop.permute.xlu0 %1896  ;;  %2015 = vmatpush1.msra.mxu0 %v1991_v35 }
 0x522   : > { %v1899_v37 = vpop.permute.xlu1 %1898  ;;  %v1990_v38 = vld [vmem:[#allocation2 + $0xa8] sm:$0xff] }
 0x523   : > { %v1900_v39 = vsel %vm3870_vm9, %v1897_v36, %v1899_v37  ;;  %1904 = vst.msk [vmem:[#allocation2 + $0x98] sm:$0xf0] %vm3871_vm10, %v1899_v37  ;;  %2016 = vmatprep.subr.mxu0 %v1990_v38  ;;  %v1989_v40 = vld [vmem:[#allocation2 + $0xa0] sm:$0xff]  ;;  %vm3878_vm9 = vcmask 1006592   ;;  %vm3879_vm10 = vcmask 1006596  }
 0x524   : > { %1903 = vst [vmem:[#allocation2 + $0x90] sm:$0xf0] %v1900_v39  ;;  %v1870_v41 = vpop.permute.xlu0 %1869  ;;  %2017 = vmatpush1.msra.mxu0 %v1989_v40 }
 0x526   : > { %v1872_v44 = vpop.permute.xlu1 %1871 }
 0x527   : > { %v1873_v45 = vsel %vm3872_vm6, %v1870_v41, %v1872_v44  ;;  %1877 = vst.msk [vmem:[#allocation2 + $0x88] sm:$0xf] %vm3873_vm5, %v1872_v44  ;;  %vm3880_vm6 = vcmask 1043464   ;;  %vm3881_vm5 = vcmask 7168  }
 0x528   : > { %1876 = vst [vmem:[#allocation2 + $0x80] sm:$0xf] %v1873_v45  ;;  %v1879_v46 = vpop.permute.xlu0 %1878 }
 0x52a   : > { %v1881_v9 = vpop.permute.xlu1 %1880  ;;  %v1988_v13 = vld [vmem:[#allocation2 + $0x98] sm:$0xff] }
 0x52b   : > { %v1882_v47 = vsel %vm3874_vm14, %v1879_v46, %v1881_v9  ;;  %1886 = vst.msk [vmem:[#allocation2 + $0x88] sm:$0xf0] %vm3875_vm3, %v1881_v9  ;;  %2018 = vmatprep.subr.mxu0 %v1988_v13  ;;  %v1987_v49 = vld [vmem:[#allocation2 + $0x90] sm:$0xff]  ;;  %vm3882_vm14 = vcmask 1043504   ;;  %vm3883_vm3 = vcmask 48128  }
 0x52c   : > { %1885 = vst [vmem:[#allocation2 + $0x80] sm:$0xf0] %v1882_v47  ;;  %v1852_v10 = vpop.permute.xlu0 %1851  ;;  %2019 = vmatpush1.msra.mxu0 %v1987_v49 }
 0x52e   : > { %v1854_v50 = vpop.permute.xlu1 %1853 }
 0x52f   : > { %v1855_v51 = vsel %vm3876_vm4, %v1852_v10, %v1854_v50  ;;  %1859 = vst.msk [vmem:[#allocation2 + $0x78] sm:$0xf] %vm3877_vm8, %v1854_v50  ;;  %vm3884_vm4 = vcmask 1047596   ;;  %vm3885_vm8 = vcmask 39936  }
 0x530   : > { %1858 = vst [vmem:[#allocation2 + $0x70] sm:$0xf] %v1855_v51  ;;  %v1861_v15 = vpop.permute.xlu0 %1860  ;;  %v1968_v51 = vld [vmem:[%s3613_s7] sm:$0xf] }
 0x532   : > { %v1863_v52 = vpop.permute.xlu1 %1862  ;;  %v1986_v53 = vld [vmem:[#allocation2 + $0x88] sm:$0xff] }
 0x533   : > { %v1864_v55 = vsel %vm3878_vm9, %v1861_v15, %v1863_v52  ;;  %1868 = vst.msk [vmem:[#allocation2 + $0x78] sm:$0xf0] %vm3879_vm10, %v1863_v52  ;;  %2020 = vmatprep.subr.mxu0 %v1986_v53  ;;  %v1985_v12 = vld [vmem:[#allocation2 + $0x80] sm:$0xff]  ;;  %vm3886_vm9 = vcmask 1043688   ;;  %vm3887_vm10 = vcmask 236544  }
 0x534   : > { %1867 = vst [vmem:[#allocation2 + $0x70] sm:$0xf0] %v1864_v55  ;;  %v1839_v56 = vpop.permute.xlu0 %1838  ;;  %2021 = vmatpush1.msra.mxu0 %v1985_v12 }
 0x535   : > { %1845 = vst.msk [vmem:[#allocation2 + $0x60] sm:$0xf] %vm3880_vm6, %v1839_v56  ;;  %vm3888_vm6 = vcmask 1047612  }
 0x536   : > { %v1841_v59 = vpop.permute.xlu1 %1840 }
 0x537   : > { %v1842_v48 = vsel %vm3881_vm5, %v1839_v56, %v1841_v59  ;;  %vm3889_vm5 = vcmask 56320  }
 0x538   : > { %1846 = vst [vmem:[#allocation2 + $0x68] sm:$0xf] %v1842_v48  ;;  %v1821_v61 = vpop.permute.xlu0 %1820 }
 0x539   : > { %1827 = vst.msk [vmem:[#allocation2 + $0x50] sm:$0xf] %vm3882_vm14, %v1821_v61  ;;  %vm3890_vm14 = vcmask 1043704  }
 0x53a   : > { %v1823_v62 = vpop.permute.xlu1 %1822  ;;  %v1984_v63 = vld [vmem:[#allocation2 + $0x78] sm:$0xff] }
 0x53b   : > { %v1824_v1 = vsel %vm3883_vm3, %v1821_v61, %v1823_v62  ;;  %2022 = vmatprep.subr.mxu0 %v1984_v63  ;;  %v1983_v2 = vld [vmem:[#allocation2 + $0x70] sm:$0xff]  ;;  %vm3891_vm3 = vcmask 252928  }
 0x53c   : > { %1828 = vst [vmem:[#allocation2 + $0x58] sm:$0xf] %v1824_v1  ;;  %v1830_v57 = vpop.permute.xlu0 %1829  ;;  %2023 = vmatpush1.msra.mxu0 %v1983_v2  ;;  %v1981_v6 = vld [vmem:[#allocation2 + $0x60] sm:$0xff] }
 0x53d   : > { %1836 = vst.msk [vmem:[#allocation2 + $0x50] sm:$0xf0] %vm3884_vm4, %v1830_v57  ;;  %vm3892_vm4 = vcmask 1047796  }
 0x53e   : > { %v1832_v3 = vpop.permute.xlu1 %1831 }
 0x53f   : > { %v1833_v4 = vsel %vm3885_vm8, %v1830_v57, %v1832_v3  ;;  %v1982_v5 = vld [vmem:[#allocation2 + $0x68] sm:$0xff]  ;;  %vm3893_vm8 = vcmask 244736  }
 0x540   : > { %1837 = vst [vmem:[#allocation2 + $0x58] sm:$0xf0] %v1833_v4  ;;  %v1803_v58 = vpop.permute.xlu0 %1802  ;;  %2024 = vmatprep.subr.mxu0 %v1982_v5 }
 0x541   : > { %1809 = vst.msk [vmem:[#allocation2 + $0x40] sm:$0xf] %vm3886_vm9, %v1803_v58  ;;  %2025 = vmatpush1.msra.mxu0 %v1981_v6  ;;  %vm3894_vm9 = vcmask 1043744  }
 0x542   : > { %v1805_v7 = vpop.permute.xlu1 %1804 }
 0x543   : > { %v1806_v8 = vsel %vm3887_vm10, %v1803_v58, %v1805_v7  ;;  %vm3895_vm10 = vcmask 293888  }
 0x544   : > { %1810 = vst [vmem:[#allocation2 + $0x48] sm:$0xf] %v1806_v8  ;;  %v1812_v11 = vpop.permute.xlu0 %1811  ;;  %v1979_v19 = vld [vmem:[#allocation2 + $0x50] sm:$0xff] }
 0x545   : > { %1818 = vst.msk [vmem:[#allocation2 + $0x40] sm:$0xf0] %vm3888_vm6, %v1812_v11  ;;  %vm3896_vm6 = vcmask 1047836  }
 0x546   : > { %v1814_v14 = vpop.permute.xlu1 %1813 }
 0x547   : > { %v1815_v16 = vsel %vm3889_vm5, %v1812_v11, %v1814_v14  ;;  %v1980_v17 = vld [vmem:[#allocation2 + $0x58] sm:$0xff]  ;;  %vm3897_vm5 = vcmask 285696  }
 0x548   : > { %1819 = vst [vmem:[#allocation2 + $0x48] sm:$0xf0] %v1815_v16  ;;  %v1785_v18 = vpop.permute.xlu0 %1784  ;;  %2026 = vmatprep.subr.mxu0 %v1980_v17 }
 0x549   : > { %1791 = vst.msk [vmem:[#allocation2 + $0x30] sm:$0xf] %vm3890_vm14, %v1785_v18  ;;  %2027 = vmatpush1.msra.mxu0 %v1979_v19  ;;  %vm3898_vm14 = vcmask 1043784  }
 0x54a   : > { %v1787_v20 = vpop.permute.xlu1 %1786 }
 0x54b   : > { %v1788_v21 = vsel %vm3891_vm3, %v1785_v18, %v1787_v20  ;;  %vm3899_vm3 = vcmask 334848  }
 0x54c   : > { %1792 = vst [vmem:[#allocation2 + $0x38] sm:$0xf] %v1788_v21  ;;  %v1794_v22 = vpop.permute.xlu0 %1793  ;;  %v1977_v26 = vld [vmem:[#allocation2 + $0x40] sm:$0xff] }
 0x54d   : > { %1800 = vst.msk [vmem:[#allocation2 + $0x30] sm:$0xf0] %vm3892_vm4, %v1794_v22  ;;  %vm3900_vm4 = vcmask 1047852  }
 0x54e   : > { %v1796_v23 = vpop.permute.xlu1 %1795 }
 0x54f   : > { %v1797_v24 = vsel %vm3893_vm8, %v1794_v22, %v1796_v23  ;;  %v1978_v0 = vld [vmem:[#allocation2 + $0x48] sm:$0xff]  ;;  %vm3901_vm8 = vcmask 302080  }
 0x550   : > { %1801 = vst [vmem:[#allocation2 + $0x38] sm:$0xf0] %v1797_v24  ;;  %v1767_v25 = vpop.permute.xlu0 %1766  ;;  %2028 = vmatprep.subr.mxu0 %v1978_v0 }
 0x551   : > { %1773 = vst.msk [vmem:[#allocation2 + $0x20] sm:$0xf] %vm3894_vm9, %v1767_v25  ;;  %2029 = vmatpush1.msra.mxu0 %v1977_v26  ;;  %vm3902_vm9 = vcmask 1043456  }
 0x552   : > { %v1769_v27 = vpop.permute.xlu1 %1768 }
 0x553   : > { %v1770_v28 = vsel %vm3895_vm10, %v1767_v25, %v1769_v27  ;;  %vm3903_vm10 = vmmov %vm3902_vm9 }
 0x554   : > { %1774 = vst [vmem:[#allocation2 + $0x28] sm:$0xf] %v1770_v28  ;;  %v1776_v29 = vpop.permute.xlu0 %1775  ;;  %v1975_v34 = vld [vmem:[#allocation2 + $0x30] sm:$0xff] }
 0x555   : > { %1782 = vst.msk [vmem:[#allocation2 + $0x20] sm:$0xf0] %vm3896_vm6, %v1776_v29  ;;  %vm3904_vm6 = vmmov %vm3902_vm9 }
 0x556   : > { %v1778_v30 = vpop.permute.xlu1 %1777 }
 0x557   : > { %v1779_v31 = vsel %vm3897_vm5, %v1776_v29, %v1778_v30  ;;  %v1976_v32 = vld [vmem:[#allocation2 + $0x38] sm:$0xff]  ;;  %vm3905_vm5 = vmmov %vm3904_vm6 }
 0x558   : > { %1783 = vst [vmem:[#allocation2 + $0x28] sm:$0xf0] %v1779_v31  ;;  %v1749_v33 = vpop.permute.xlu0 %1748  ;;  %2030 = vmatprep.subr.mxu0 %v1976_v32 }
 0x559   : > { %1755 = vst.msk [vmem:[#allocation2 + $0x10] sm:$0xf] %vm3898_vm14, %v1749_v33  ;;  %2031 = vmatpush1.msra.mxu0 %v1975_v34  ;;  %vm3906_vm14 = vcmask 691200  }
 0x55a   : > { %v1751_v35 = vpop.permute.xlu1 %1750 }
 0x55b   : > { %v1752_v36 = vsel %vm3899_vm3, %v1749_v33, %v1751_v35  ;;  %vm3907_vm3 = vcmask 707584  }
 0x55c   : > { %1756 = vst [vmem:[#allocation2 + $0x18] sm:$0xf] %v1752_v36  ;;  %v1758_v37 = vpop.permute.xlu0 %1757  ;;  %v1973_v44 = vld [vmem:[#allocation2 + $0x20] sm:$0xff] }
 0x55d   : > { %1764 = vst.msk [vmem:[#allocation2 + $0x10] sm:$0xf0] %vm3900_vm4, %v1758_v37  ;;  %vm3908_vm4 = vcmask 711680  }
 0x55e   : > { %v1760_v38 = vpop.permute.xlu1 %1759 }
 0x55f   : > { %v1761_v39 = vsel %vm3901_vm8, %v1758_v37, %v1760_v38  ;;  %v1974_v40 = vld [vmem:[#allocation2 + $0x28] sm:$0xff]  ;;  %vm3910_vm8 = vcmask 752640  }
 0x560   : > { %1765 = vst [vmem:[#allocation2 + $0x18] sm:$0xf0] %v1761_v39  ;;  %v1729_v41 = vpop.permute.xlu0 %1728  ;;  %2032 = vmatprep.subr.mxu0 %v1974_v40 }
 0x561   : > { %1735 = vst.msk [vmem:[#allocation2] sm:$0xf] %vm555_vm1, %v1729_v41  ;;  %2033 = vmatpush1.msra.mxu0 %v1973_v44 }
 0x562   : > { %v1731_v45 = vpop.permute.xlu1 %1730 }
 0x563   : > { %v1732_v46 = vsel %vm551_vm0, %v1729_v41, %v1731_v45 }
 0x564   : > { %1736 = vst [vmem:[#allocation2 + $0x8] sm:$0xf] %v1732_v46  ;;  %v1740_v9 = vpop.permute.xlu0 %1739  ;;  %v1971_v10 = vld [vmem:[#allocation2 + $0x10] sm:$0xff] }
 0x565   : > { %1746 = vst.msk [vmem:[#allocation2] sm:$0xf0] %vm567_vm13, %v1740_v9 }
 0x566   : > { %v1742_v13 = vpop.permute.xlu1 %1741 }
 0x567   : > { %v1743_v47 = vsel %vm563_vm12, %v1740_v9, %v1742_v13  ;;  %v1972_v49 = vld [vmem:[#allocation2 + $0x18] sm:$0xff] }
 0x568   : > { %1747 = vst [vmem:[#allocation2 + $0x8] sm:$0xf0] %v1743_v47  ;;  %2034 = vmatprep.subr.mxu0 %v1972_v49 }
 0x569   : > { %2035 = vmatpush1.msra.mxu0 %v1971_v10 }
 0x56c   : > { %v1969_v15 = vld [vmem:[#allocation2] sm:$0xff] }
 0x56f   : > { %v1970_v50 = vld [vmem:[#allocation2 + $0x8] sm:$0xff] }
 0x570   : > { %2036 = vmatprep.subr.mxu0 %v1970_v50 }
 0x571   : > { %2037 = vmatpush1.msra.mxu0 %v1969_v15 }
 0x572   : > { %2558 = vmatmul.mubr.msk.f32.vlgmr.msra.gmra.mxu0 %vm866_vm15, %v1968_v51 }
 0x5ca   : > { %v1687_v52 = vpop.f32.mrf.mxu1 }
 0x5cb   : > { %v1692_v53 = vsel %vm505_vm11, %v1687_v52, 0.0 }
 0x5cc   : > { %v1700_v55 = vmul.f32 %v1692_v53, %v1692_v53  ;;  %v1689_v12 = vpop.f32.mrf.mxu1  ;;  %v1694_v59 = vsel %vm3902_vm9, %v1692_v53, 0.0  ;;  %vm3911_vm9 = vmmov %vm3905_vm5 }
 0x5cd   : > { %v1693_v56 = vsel %vm506_vm2, %v1689_v12, 0.0 }
 0x5ce   : > { %v1695_v48 = vsel %vm3903_vm10, %v1693_v56, 0.0  ;;  %v1701_v61 = vmul.f32 %v1693_v56, %v1693_v56  ;;  %v1702_v63 = vsel %vm3904_vm6, %v1700_v55, 0.0  ;;  %vm3912_vm10 = vmmov %vm3905_vm5 }
 0x5cf   : > { %v1696_v62 = vadd.f32 %v1695_v48, %v1694_v59  ;;  %vm3913_vm6 = vmmov %vm3905_vm5 }
 0x5d0   : > { %v1703_v1 = vsel %vm3905_vm5, %v1701_v61, 0.0 }
 0x5d1   : > { %1697 = vadd.xlane.f32.xlu0 %v1696_v62  ;;  %v1704_v2 = vadd.f32 %v1703_v1, %v1702_v63 }
 0x5d3   : > { %1705 = vadd.xlane.f32.xlu1 %v1704_v2 }
 0x65a   : > { %v1698_v57 = vpop.xlane.xlu0 %1697 }
 0x65b   : > { %v1699_v3 = vmul.f32 0.015625, %v1698_v57 }
 0x65c   : > { %v1706_v4 = vpop.xlane.xlu1 %1705 }
 0x65d   : > { %v1708_v5 = vmul.f32 %v1699_v3, %v1699_v3  ;;  %v1707_v58 = vmul.f32 0.015625, %v1706_v4  ;;  %v1710_v8 = vsub.f32 %v1687_v52, %v1699_v3  ;;  %v1711_v11 = vsub.f32 %v1689_v12, %v1699_v3 }
 0x65f   : > { %v1709_v6 = vsub.f32 %v1707_v58, %v1708_v5 }
 0x661   : > { %v1712_v7 = vadd.f32 1e-05, %v1709_v6 }
 0x663   : > { %2609 = vrsqrt.f32 %v1712_v7 }
 0x670   : > { %v2610_v14 = vpop.eup %2609 }
 0x671   : > { %v1714_v16 = vmul.f32 %v2610_v14, %v1710_v8  ;;  %v1715_v17 = vmul.f32 %v2610_v14, %v1711_v11 }
 0x673   : > { %v1716_v18 = vadd.f32 %v1714_v16, %v2987_v54  ;;  %v1717_v19 = vadd.f32 %v1715_v17, %v2991_v60  ;;  %v3523_v54 = vpop.f32.mrf.mxu0 }
 0x674   : > { %v2077_v29 = vsel %vm505_vm11, %v3523_v54, 0.0 }
 0x675   : > { %v1718_v20 = vsel %vm505_vm11, %v1716_v18, 0.0  ;;  %v1719_v21 = vsel %vm506_vm2, %v1717_v19, 0.0  ;;  %v3527_v25 = vpop.f32.mrf.mxu0  ;;  %v2079_v36 = vsel %vm3912_vm10, %v2077_v29, 0.0  ;;  %v2085_v38 = vmul.f32 %v2077_v29, %v2077_v29 }
 0x676   : > { %v2112_v22 = vrot.slane %v1718_v20, 4  ;;  %v2113_v23 = vrot.slane %v1719_v21, 4  ;;  %2336 = vrot.lane.b32.xlu1 %v1719_v21, %s3802_s9  ;;  %2334 = vrot.lane.b32.xlu0 %v1718_v20, %s3802_s9  ;;  %v2078_v30 = vsel %vm506_vm2, %v3527_v25, 0.0  ;;  %vm3920_vm10 = vcmask 994304  }
 0x677   : > { %v2080_v37 = vsel %vm3905_vm5, %v2078_v30, 0.0  ;;  %v2086_v39 = vmul.f32 %v2078_v30, %v2078_v30 }
 0x678   : > { %2464 = vst [vmem:[%s3155_s20] sm:$0xf0] %v2112_v22  ;;  %2465 = vst [vmem:[%s3155_s20 + $0x8] sm:$0xf0] %v2113_v23  ;;  %v2081_v44 = vadd.f32 %v2080_v37, %v2079_v36 }
 0x679   : > { %2224 = vst [vmem:[#allocation2 + $0x60] sm:$0xf0] %v2112_v22  ;;  %2225 = vst [vmem:[#allocation2 + $0x68] sm:$0xf0] %v2113_v23 }
 0x67a   : > { %2318 = vrot.lane.b32.xlu1 %v1719_v21, %s3788_s14  ;;  %2316 = vrot.lane.b32.xlu0 %v1718_v20, %s3788_s14 }
 0x67e   : > { %2300 = vrot.lane.b32.xlu1 %v1719_v21, %s3789_s27  ;;  %2298 = vrot.lane.b32.xlu0 %v1718_v20, %s3789_s27 }
 0x682   : > { %2282 = vrot.lane.b32.xlu1 %v1719_v21, %s3790_s11  ;;  %2280 = vrot.lane.b32.xlu0 %v1718_v20, %s3790_s11 }
 0x686   : > { %2264 = vrot.lane.b32.xlu1 %v1719_v21, %s3791_s16  ;;  %2262 = vrot.lane.b32.xlu0 %v1718_v20, %s3791_s16 }
 0x68a   : > { %2246 = vrot.lane.b32.xlu1 %v1719_v21, %s3792_s18  ;;  %2244 = vrot.lane.b32.xlu0 %v1718_v20, %s3792_s18 }
 0x68e   : > { %2228 = vrot.lane.b32.xlu1 %v1719_v21, %s3793_s29  ;;  %2226 = vrot.lane.b32.xlu0 %v1718_v20, %s3793_s29 }
 0x692   : > { %2215 = vrot.lane.b32.xlu1 %v1719_v21, %s3794_s25  ;;  %2213 = vrot.lane.b32.xlu0 %v1718_v20, %s3794_s25 }
 0x696   : > { %2197 = vrot.lane.b32.xlu1 %v1719_v21, %s3795_s21  ;;  %2195 = vrot.lane.b32.xlu0 %v1718_v20, %s3795_s21 }
 0x69a   : > { %2179 = vrot.lane.b32.xlu1 %v1719_v21, %s3796_s0  ;;  %2177 = vrot.lane.b32.xlu0 %v1718_v20, %s3796_s0 }
 0x69e   : > { %2161 = vrot.lane.b32.xlu1 %v1719_v21, %s3797_s2  ;;  %2159 = vrot.lane.b32.xlu0 %v1718_v20, %s3797_s2 }
 0x6a2   : > { %2143 = vrot.lane.b32.xlu1 %v1719_v21, %s3798_s3  ;;  %2141 = vrot.lane.b32.xlu0 %v1718_v20, %s3798_s3  ;;  %s3958_s3 = sld [smem:[#allocation5_spill]] }
 0x6a6   : > { %2125 = vrot.lane.b32.xlu1 %v1719_v21, %s3799_s4  ;;  %2123 = vrot.lane.b32.xlu0 %v1718_v20, %s3799_s4 }
 0x6aa   : > { %2105 = vrot.lane.b32.xlu1 %v1719_v21, %s3800_s5  ;;  %2103 = vrot.lane.b32.xlu0 %v1718_v20, %s3800_s5 }
 0x6ae   : > { %2327 = vrot.lane.b32.xlu1 %v2113_v23, %s3743_s26  ;;  %2325 = vrot.lane.b32.xlu0 %v2112_v22, %s3743_s26 }
 0x6b2   : > { %2309 = vrot.lane.b32.xlu1 %v2113_v23, %s3736_s30  ;;  %2307 = vrot.lane.b32.xlu0 %v2112_v22, %s3736_s30 }
 0x6b6   : > { %2291 = vrot.lane.b32.xlu1 %v2113_v23, %s3737_s12  ;;  %2289 = vrot.lane.b32.xlu0 %v2112_v22, %s3737_s12 }
 0x6ba   : > { %2273 = vrot.lane.b32.xlu1 %v2113_v23, %s3738_s19  ;;  %2271 = vrot.lane.b32.xlu0 %v2112_v22, %s3738_s19 }
 0x6be   : > { %2255 = vrot.lane.b32.xlu1 %v2113_v23, %s3739_s17  ;;  %2253 = vrot.lane.b32.xlu0 %v2112_v22, %s3739_s17 }
 0x6c2   : > { %2237 = vrot.lane.b32.xlu1 %v2113_v23, %s3740_s24  ;;  %2235 = vrot.lane.b32.xlu0 %v2112_v22, %s3740_s24 }
 0x6c6   : > { %2206 = vrot.lane.b32.xlu1 %v2113_v23, %s3741_s28  ;;  %2204 = vrot.lane.b32.xlu0 %v2112_v22, %s3741_s28 }
 0x6ca   : > { %2188 = vrot.lane.b32.xlu1 %v2113_v23, %s3742_s23  ;;  %2186 = vrot.lane.b32.xlu0 %v2112_v22, %s3742_s23 }
 0x6ce   : > { %2170 = vrot.lane.b32.xlu1 %v2113_v23, %s3744_s15  ;;  %2168 = vrot.lane.b32.xlu0 %v2112_v22, %s3744_s15 }
 0x6d2   : > { %2152 = vrot.lane.b32.xlu1 %v2113_v23, %s3745_s22  ;;  %2150 = vrot.lane.b32.xlu0 %v2112_v22, %s3745_s22 }
 0x6d6   : > { %2134 = vrot.lane.b32.xlu1 %v2113_v23, %s3845_s10  ;;  %2132 = vrot.lane.b32.xlu0 %v2112_v22, %s3845_s10 }
 0x6da   : > { %2116 = vrot.lane.b32.xlu1 %v2113_v23, %s3801_s8  ;;  %2114 = vrot.lane.b32.xlu0 %v2112_v22, %s3801_s8 }
 0x6e8   : > { %v2337_v60 = vpop.permute.xlu1 %2336  ;;  %v2335_v24 = vpop.permute.xlu0 %2334 }
 0x6e9   : > { %2342 = vst.msk [vmem:[#allocation2 + $0xd8] sm:$0xf] %vm3906_vm14, %v2337_v60  ;;  %v2338_v0 = vsel %vm830_vm7, %v2335_v24, %v2337_v60  ;;  %vm3909_vm7 = vcmask 748544   ;;  %vm3914_vm14 = vcmask 789504  }
 0x6ea   : > { %2341 = vst [vmem:[#allocation2 + $0xd0] sm:$0xf] %v2338_v0 }
 0x6ec   : > { %v2319_v26 = vpop.permute.xlu1 %2318  ;;  %v2317_v27 = vpop.permute.xlu0 %2316 }
 0x6ed   : > { %2324 = vst.msk [vmem:[#allocation2 + $0xc8] sm:$0xf] %vm3907_vm3, %v2319_v26  ;;  %v2320_v28 = vsel %vm3908_vm4, %v2317_v27, %v2319_v26  ;;  %vm3915_vm3 = vcmask 793600   ;;  %vm3916_vm4 = vmmov %vm3905_vm5  ;;  %vm3922_vm5 = vcmask 1035264  }
 0x6ee   : > { %2323 = vst [vmem:[#allocation2 + $0xc0] sm:$0xf] %v2320_v28  ;;  %v2087_v46 = vsel %vm3916_vm4, %v2085_v38, 0.0 }
 0x6f0   : > { %v2301_v31 = vpop.permute.xlu1 %2300  ;;  %v2299_v32 = vpop.permute.xlu0 %2298  ;;  %v2371_v33 = vld [vmem:[#allocation2 + $0xd8] sm:$0xf] }
 0x6f1   : > { %2306 = vst.msk [vmem:[#allocation2 + $0xb8] sm:$0xf] %vm3909_vm7, %v2301_v31  ;;  %v2302_v34 = vsel %vm3910_vm8, %v2299_v32, %v2301_v31  ;;  %2559 = vmatprep.subr.msk.mxu1 %vm3911_vm9, %v2371_v33  ;;  %v2370_v35 = vld [vmem:[#allocation2 + $0xd0] sm:$0xf]  ;;  %vm3917_vm7 = vmmov %vm3916_vm4  ;;  %vm3918_vm8 = vcmask 805888   ;;  %vm3919_vm9 = vcmask 809984  }
 0x6f2   : > { %2305 = vst [vmem:[#allocation2 + $0xb0] sm:$0xf] %v2302_v34  ;;  %2560 = vmatpush1.msk.msra.mxu1 %vm3913_vm6, %v2370_v35  ;;  %v2088_v9 = vsel %vm3917_vm7, %v2086_v39, 0.0  ;;  %vm3921_vm6 = vcmask 998400   ;;  %vm3925_vm4 = vcmask 1043464   ;;  %vm3926_vm7 = vcmask 48128  }
 0x6f3   : > { %v2089_v10 = vadd.f32 %v2088_v9, %v2087_v46 }
 0x6f4   : > { %v2283_v40 = vpop.permute.xlu1 %2282  ;;  %v2281_v41 = vpop.permute.xlu0 %2280 }
 0x6f5   : > { %2288 = vst.msk [vmem:[#allocation2 + $0xa8] sm:$0xf] %vm3914_vm14, %v2283_v40  ;;  %v2284_v45 = vsel %vm3915_vm3, %v2281_v41, %v2283_v40  ;;  %vm3923_vm14 = vcmask 1039360   ;;  %vm3924_vm3 = vcmask 7168  }
 0x6f6   : > { %2287 = vst [vmem:[#allocation2 + $0xa0] sm:$0xf] %v2284_v45 }
 0x6f8   : > { %v2265_v13 = vpop.permute.xlu1 %2264  ;;  %v2263_v47 = vpop.permute.xlu0 %2262 }
 0x6f9   : > { %2270 = vst.msk [vmem:[#allocation2 + $0x98] sm:$0xf] %vm3918_vm8, %v2265_v13  ;;  %v2266_v49 = vsel %vm3919_vm9, %v2263_v47, %v2265_v13  ;;  %2082 = vadd.xlane.f32.xlu0 %v2081_v44  ;;  %vm3927_vm8 = vcmask 1043504   ;;  %vm3928_vm9 = vcmask 236544  }
 0x6fa   : > { %2269 = vst [vmem:[#allocation2 + $0x90] sm:$0xf] %v2266_v49 }
 0x6fc   : > { %v2247_v50 = vpop.permute.xlu1 %2246  ;;  %v2245_v51 = vpop.permute.xlu0 %2244 }
 0x6fd   : > { %2252 = vst.msk [vmem:[#allocation2 + $0x88] sm:$0xf] %vm3920_vm10, %v2247_v50  ;;  %v2248_v15 = vsel %vm3921_vm6, %v2245_v51, %v2247_v50  ;;  %vm3929_vm10 = vcmask 1043688   ;;  %vm3930_vm6 = vcmask 252928  }
 0x6fe   : > { %2251 = vst [vmem:[#allocation2 + $0x80] sm:$0xf] %v2248_v15  ;;  %2090 = vadd.xlane.f32.xlu1 %v2089_v10 }
 0x700   : > { %v2229_v52 = vpop.permute.xlu1 %2228  ;;  %v2227_v53 = vpop.permute.xlu0 %2226 }
 0x701   : > { %2234 = vst.msk [vmem:[#allocation2 + $0x78] sm:$0xf] %vm3922_vm5, %v2229_v52  ;;  %v2230_v55 = vsel %vm3923_vm14, %v2227_v53, %v2229_v52  ;;  %vm3931_vm5 = vcmask 1043704   ;;  %vm3932_vm14 = vcmask 293888  }
 0x702   : > { %2233 = vst [vmem:[#allocation2 + $0x70] sm:$0xf] %v2230_v55 }
 0x704   : > { %v2216_v12 = vpop.permute.xlu1 %2215  ;;  %v2214_v56 = vpop.permute.xlu0 %2213 }
 0x705   : > { %v2217_v59 = vsel %vm3924_vm3, %v2214_v56, %v2216_v12  ;;  %2220 = vst.msk [vmem:[#allocation2 + $0x60] sm:$0xf] %vm3925_vm4, %v2214_v56  ;;  %vm3933_vm3 = vcmask 1043744   ;;  %vm3934_vm4 = vcmask 334848  }
 0x706   : > { %2221 = vst [vmem:[#allocation2 + $0x68] sm:$0xf] %v2217_v59 }
 0x708   : > { %v2198_v48 = vpop.permute.xlu1 %2197  ;;  %v2196_v61 = vpop.permute.xlu0 %2195 }
 0x709   : > { %v2199_v62 = vsel %vm3926_vm7, %v2196_v61, %v2198_v48  ;;  %2202 = vst.msk [vmem:[#allocation2 + $0x50] sm:$0xf] %vm3927_vm8, %v2196_v61  ;;  %vm3935_vm7 = vcmask 1043784   ;;  %vm3936_vm8 = vcmask 703492  }
 0x70a   : > { %2203 = vst [vmem:[#allocation2 + $0x58] sm:$0xf] %v2199_v62 }
 0x70c   : > { %v2180_v63 = vpop.permute.xlu1 %2179  ;;  %v2178_v1 = vpop.permute.xlu0 %2177  ;;  %v2356_v53 = vld [vmem:[#allocation2 + $0x60] sm:$0xff] }
 0x70d   : > { %v2181_v2 = vsel %vm3928_vm9, %v2178_v1, %v2180_v63  ;;  %2184 = vst.msk [vmem:[#allocation2 + $0x40] sm:$0xf] %vm3929_vm10, %v2178_v1  ;;  %vm3937_vm9 = vcmask 703488   ;;  %vm3938_vm10 = vcmask 744452   ;;  %v2357_v52 = vld [vmem:[#allocation2 + $0x68] sm:$0xff] }
 0x70e   : > { %2185 = vst [vmem:[#allocation2 + $0x48] sm:$0xf] %v2181_v2 }
 0x710   : > { %v2162_v57 = vpop.permute.xlu1 %2161  ;;  %v2160_v3 = vpop.permute.xlu0 %2159 }
 0x711   : > { %v2163_v4 = vsel %vm3930_vm6, %v2160_v3, %v2162_v57  ;;  %2166 = vst.msk [vmem:[#allocation2 + $0x30] sm:$0xf] %vm3931_vm5, %v2160_v3  ;;  %vm3939_vm6 = vcmask 744448   ;;  %vm3942_vm5 = vcmask 801796  }
 0x712   : > { %2167 = vst [vmem:[#allocation2 + $0x38] sm:$0xf] %v2163_v4 }
 0x714   : > { %v2144_v5 = vpop.permute.xlu1 %2143  ;;  %v2142_v58 = vpop.permute.xlu0 %2141 }
 0x715   : > { %v2145_v6 = vsel %vm3932_vm14, %v2142_v58, %v2144_v5  ;;  %2148 = vst.msk [vmem:[#allocation2 + $0x20] sm:$0xf] %vm3933_vm3, %v2142_v58  ;;  %vm3943_vm14 = vcmask 801792   ;;  %vm3944_vm3 = vcmask 990212  }
 0x716   : > { %2149 = vst [vmem:[#allocation2 + $0x28] sm:$0xf] %v2145_v6 }
 0x718   : > { %v2126_v7 = vpop.permute.xlu1 %2125  ;;  %v2124_v8 = vpop.permute.xlu0 %2123 }
 0x719   : > { %v2127_v11 = vsel %vm3934_vm4, %v2124_v8, %v2126_v7  ;;  %2130 = vst.msk [vmem:[#allocation2 + $0x10] sm:$0xf] %vm3935_vm7, %v2124_v8  ;;  %vm3945_vm4 = vcmask 990208   ;;  %vm3946_vm7 = vcmask 1006596  }
 0x71a   : > { %2131 = vst [vmem:[#allocation2 + $0x18] sm:$0xf] %v2127_v11 }
 0x71c   : > { %v2106_v14 = vpop.permute.xlu1 %2105  ;;  %v2104_v16 = vpop.permute.xlu0 %2103 }
 0x71d   : > { %v2107_v17 = vsel %vm551_vm0, %v2104_v16, %v2106_v14  ;;  %2110 = vst.msk [vmem:[#allocation2] sm:$0xf] %vm555_vm1, %v2104_v16  ;;  %vm3940_vm0 = vcmask 760836   ;;  %vm3941_vm1 = vcmask 760832  }
 0x71e   : > { %2111 = vst [vmem:[#allocation2 + $0x8] sm:$0xf] %v2107_v17 }
 0x720   : > { %v2328_v18 = vpop.permute.xlu1 %2327  ;;  %v2326_v19 = vpop.permute.xlu0 %2325 }
 0x721   : > { %2333 = vst.msk [vmem:[#allocation2 + $0xc8] sm:$0xf0] %vm3936_vm8, %v2328_v18  ;;  %v2329_v20 = vsel %vm3937_vm9, %v2326_v19, %v2328_v18  ;;  %vm3947_vm8 = vcmask 1006592   ;;  %vm3948_vm9 = vcmask 39936   ;;  %v2343_v19 = vld [vmem:[%s3958_s3] sm:$0xf] }
 0x722   : > { %2332 = vst [vmem:[#allocation2 + $0xc0] sm:$0xf0] %v2329_v20 }
 0x724   : > { %v2310_v21 = vpop.permute.xlu1 %2309  ;;  %v2308_v22 = vpop.permute.xlu0 %2307 }
 0x725   : > { %2315 = vst.msk [vmem:[#allocation2 + $0xb8] sm:$0xf0] %vm3938_vm10, %v2310_v21  ;;  %v2311_v23 = vsel %vm3939_vm6, %v2308_v22, %v2310_v21  ;;  %vm3949_vm10 = vcmask 1047596   ;;  %vm3950_vm6 = vcmask 56320  }
 0x726   : > { %2314 = vst [vmem:[#allocation2 + $0xb0] sm:$0xf0] %v2311_v23 }
 0x728   : > { %v2292_v60 = vpop.permute.xlu1 %2291  ;;  %v2290_v24 = vpop.permute.xlu0 %2289  ;;  %v2369_v0 = vld [vmem:[#allocation2 + $0xc8] sm:$0xff] }
 0x729   : > { %2297 = vst.msk [vmem:[#allocation2 + $0xa8] sm:$0xf0] %vm3940_vm0, %v2292_v60  ;;  %v2293_v26 = vsel %vm3941_vm1, %v2290_v24, %v2292_v60  ;;  %2387 = vmatprep.subr.mxu1 %v2369_v0  ;;  %v2368_v27 = vld [vmem:[#allocation2 + $0xc0] sm:$0xff]  ;;  %vm3951_vm0 = vcmask 1047612   ;;  %vm3952_vm1 = vcmask 244736  }
 0x72a   : > { %2296 = vst [vmem:[#allocation2 + $0xa0] sm:$0xf0] %v2293_v26  ;;  %2388 = vmatpush1.msra.mxu1 %v2368_v27 }
 0x72c   : > { %v2274_v28 = vpop.permute.xlu1 %2273  ;;  %v2272_v29 = vpop.permute.xlu0 %2271  ;;  %v2367_v30 = vld [vmem:[#allocation2 + $0xb8] sm:$0xff] }
 0x72d   : > { %2279 = vst.msk [vmem:[#allocation2 + $0x98] sm:$0xf0] %vm3942_vm5, %v2274_v28  ;;  %v2275_v31 = vsel %vm3943_vm14, %v2272_v29, %v2274_v28  ;;  %2389 = vmatprep.subr.mxu1 %v2367_v30  ;;  %v2366_v32 = vld [vmem:[#allocation2 + $0xb0] sm:$0xff]  ;;  %vm3953_vm5 = vcmask 1047796   ;;  %vm3954_vm14 = vcmask 285696  }
 0x72e   : > { %2278 = vst [vmem:[#allocation2 + $0x90] sm:$0xf0] %v2275_v31  ;;  %2390 = vmatpush1.msra.mxu1 %v2366_v32 }
 0x730   : > { %v2256_v33 = vpop.permute.xlu1 %2255  ;;  %v2254_v34 = vpop.permute.xlu0 %2253  ;;  %v2365_v35 = vld [vmem:[#allocation2 + $0xa8] sm:$0xff] }
 0x731   : > { %2261 = vst.msk [vmem:[#allocation2 + $0x88] sm:$0xf0] %vm3944_vm3, %v2256_v33  ;;  %v2257_v36 = vsel %vm3945_vm4, %v2254_v34, %v2256_v33  ;;  %2391 = vmatprep.subr.mxu1 %v2365_v35  ;;  %v2364_v37 = vld [vmem:[#allocation2 + $0xa0] sm:$0xff]  ;;  %vm3955_vm3 = vcmask 1047836   ;;  %vm3956_vm4 = vcmask 302080  }
 0x732   : > { %2260 = vst [vmem:[#allocation2 + $0x80] sm:$0xf0] %v2257_v36  ;;  %2392 = vmatpush1.msra.mxu1 %v2364_v37 }
 0x734   : > { %v2238_v38 = vpop.permute.xlu1 %2237  ;;  %v2236_v39 = vpop.permute.xlu0 %2235  ;;  %v2363_v40 = vld [vmem:[#allocation2 + $0x98] sm:$0xff] }
 0x735   : > { %2243 = vst.msk [vmem:[#allocation2 + $0x78] sm:$0xf0] %vm3946_vm7, %v2238_v38  ;;  %v2239_v41 = vsel %vm3947_vm8, %v2236_v39, %v2238_v38  ;;  %2393 = vmatprep.subr.mxu1 %v2363_v40  ;;  %v2362_v44 = vld [vmem:[#allocation2 + $0x90] sm:$0xff]  ;;  %vm3957_vm7 = vcmask 1047852  }
 0x736   : > { %2242 = vst [vmem:[#allocation2 + $0x70] sm:$0xf0] %v2239_v41  ;;  %2394 = vmatpush1.msra.mxu1 %v2362_v44 }
 0x738   : > { %v2207_v45 = vpop.permute.xlu1 %2206  ;;  %v2205_v46 = vpop.permute.xlu0 %2204  ;;  %v2361_v9 = vld [vmem:[#allocation2 + $0x88] sm:$0xff] }
 0x739   : > { %v2208_v13 = vsel %vm3948_vm9, %v2205_v46, %v2207_v45  ;;  %2211 = vst.msk [vmem:[#allocation2 + $0x50] sm:$0xf0] %vm3949_vm10, %v2205_v46  ;;  %2395 = vmatprep.subr.mxu1 %v2361_v9  ;;  %v2360_v47 = vld [vmem:[#allocation2 + $0x80] sm:$0xff] }
 0x73a   : > { %2212 = vst [vmem:[#allocation2 + $0x58] sm:$0xf0] %v2208_v13  ;;  %2396 = vmatpush1.msra.mxu1 %v2360_v47 }
 0x73c   : > { %v2189_v49 = vpop.permute.xlu1 %2188  ;;  %v2187_v10 = vpop.permute.xlu0 %2186  ;;  %v2359_v50 = vld [vmem:[#allocation2 + $0x78] sm:$0xff] }
 0x73d   : > { %v2190_v51 = vsel %vm3950_vm6, %v2187_v10, %v2189_v49  ;;  %2193 = vst.msk [vmem:[#allocation2 + $0x40] sm:$0xf0] %vm3951_vm0, %v2187_v10  ;;  %2397 = vmatprep.subr.mxu1 %v2359_v50  ;;  %v2358_v15 = vld [vmem:[#allocation2 + $0x70] sm:$0xff] }
 0x73e   : > { %2194 = vst [vmem:[#allocation2 + $0x48] sm:$0xf0] %v2190_v51  ;;  %2398 = vmatpush1.msra.mxu1 %v2358_v15 }
 0x73f   : > { %2399 = vmatprep.subr.mxu1 %v2357_v52 }
 0x740   : > { %v2171_v55 = vpop.permute.xlu1 %2170  ;;  %v2169_v12 = vpop.permute.xlu0 %2168  ;;  %2400 = vmatpush1.msra.mxu1 %v2356_v53  ;;  %v2354_v48 = vld [vmem:[#allocation2 + $0x50] sm:$0xff] }
 0x741   : > { %v2172_v56 = vsel %vm3952_vm1, %v2169_v12, %v2171_v55  ;;  %2175 = vst.msk [vmem:[#allocation2 + $0x30] sm:$0xf0] %vm3953_vm5, %v2169_v12  ;;  %v2355_v59 = vld [vmem:[#allocation2 + $0x58] sm:$0xff] }
 0x742   : > { %2176 = vst [vmem:[#allocation2 + $0x38] sm:$0xf0] %v2172_v56  ;;  %2401 = vmatprep.subr.mxu1 %v2355_v59 }
 0x743   : > { %2402 = vmatpush1.msra.mxu1 %v2354_v48 }
 0x744   : > { %v2153_v61 = vpop.permute.xlu1 %2152  ;;  %v2151_v62 = vpop.permute.xlu0 %2150  ;;  %v2352_v2 = vld [vmem:[#allocation2 + $0x40] sm:$0xff] }
 0x745   : > { %v2154_v63 = vsel %vm3954_vm14, %v2151_v62, %v2153_v61  ;;  %2157 = vst.msk [vmem:[#allocation2 + $0x20] sm:$0xf0] %vm3955_vm3, %v2151_v62  ;;  %v2353_v1 = vld [vmem:[#allocation2 + $0x48] sm:$0xff] }
 0x746   : > { %2158 = vst [vmem:[#allocation2 + $0x28] sm:$0xf0] %v2154_v63  ;;  %2403 = vmatprep.subr.mxu1 %v2353_v1 }
 0x747   : > { %2404 = vmatpush1.msra.mxu1 %v2352_v2 }
 0x748   : > { %v2135_v57 = vpop.permute.xlu1 %2134  ;;  %v2133_v3 = vpop.permute.xlu0 %2132  ;;  %v2350_v58 = vld [vmem:[#allocation2 + $0x30] sm:$0xff] }
 0x749   : > { %v2136_v4 = vsel %vm3956_vm4, %v2133_v3, %v2135_v57  ;;  %2139 = vst.msk [vmem:[#allocation2 + $0x10] sm:$0xf0] %vm3957_vm7, %v2133_v3  ;;  %v2351_v5 = vld [vmem:[#allocation2 + $0x38] sm:$0xff] }
 0x74a   : > { %2140 = vst [vmem:[#allocation2 + $0x18] sm:$0xf0] %v2136_v4  ;;  %2405 = vmatprep.subr.mxu1 %v2351_v5 }
 0x74b   : > { %2406 = vmatpush1.msra.mxu1 %v2350_v58 }
 0x74c   : > { %v2117_v6 = vpop.permute.xlu1 %2116  ;;  %v2115_v7 = vpop.permute.xlu0 %2114  ;;  %v2348_v14 = vld [vmem:[#allocation2 + $0x20] sm:$0xff] }
 0x74d   : > { %v2118_v8 = vsel %vm563_vm12, %v2115_v7, %v2117_v6  ;;  %2121 = vst.msk [vmem:[#allocation2] sm:$0xf0] %vm567_vm13, %v2115_v7  ;;  %v2349_v11 = vld [vmem:[#allocation2 + $0x28] sm:$0xff] }
 0x74e   : > { %2122 = vst [vmem:[#allocation2 + $0x8] sm:$0xf0] %v2118_v8  ;;  %2407 = vmatprep.subr.mxu1 %v2349_v11 }
 0x74f   : > { %2408 = vmatpush1.msra.mxu1 %v2348_v14 }
 0x750   : > { %v2346_v17 = vld [vmem:[#allocation2 + $0x10] sm:$0xff] }
 0x751   : > { %v2347_v16 = vld [vmem:[#allocation2 + $0x18] sm:$0xff] }
 0x752   : > { %2409 = vmatprep.subr.mxu1 %v2347_v16 }
 0x753   : > { %2410 = vmatpush1.msra.mxu1 %v2346_v17 }
 0x754   : > { %v2344_v20 = vld [vmem:[#allocation2] sm:$0xff] }
 0x755   : > { %v2345_v18 = vld [vmem:[#allocation2 + $0x8] sm:$0xff] }
 0x756   : > { %2411 = vmatprep.subr.mxu1 %v2345_v18 }
 0x757   : > { %2412 = vmatpush1.msra.mxu1 %v2344_v20 }
 0x758   : > { %2561 = vmatmul.mubr.msk.f32.vlgmr.msra.gmra.mxu1 %vm866_vm15, %v2343_v19 }
 0x782   : > { %v2083_v21 = vpop.xlane.xlu0 %2082 }
 0x783   : > { %v2084_v23 = vmul.f32 0.015625, %v2083_v21 }
 0x785   : > { %v2093_v24 = vmul.f32 %v2084_v23, %v2084_v23  ;;  %v2095_v28 = vsub.f32 %v3523_v54, %v2084_v23  ;;  %v2096_v29 = vsub.f32 %v3527_v25, %v2084_v23 }
 0x787   : > { %v2091_v22 = vpop.xlane.xlu1 %2090 }
 0x788   : > { %v2092_v60 = vmul.f32 0.015625, %v2091_v22 }
 0x78a   : > { %v2094_v0 = vsub.f32 %v2092_v60, %v2093_v24 }
 0x78c   : > { %v2097_v26 = vadd.f32 1e-05, %v2094_v0 }
 0x78e   : > { %2611 = vrsqrt.f32 %v2097_v26 }
 0x79b   : > { %v2612_v27 = vpop.eup %2611 }
 0x79c   : > { %v2099_v30 = vmul.f32 %v2612_v27, %v2095_v28  ;;  %v2100_v33 = vmul.f32 %v2612_v27, %v2096_v29 }
 0x818   : > { %v2447_v31 = vpop.f32.mrf.mxu1 }
 0x819   : > { %v2452_v32 = vadd.f32 %v2447_v31, %v2099_v30 }
 0x81a   : > { %v2449_v34 = vpop.f32.mrf.mxu1 }
 0x81b   : > { %v2454_v35 = vsel %vm505_vm11, %v2452_v32, 0.0  ;;  %v2453_v36 = vadd.f32 %v2449_v34, %v2100_v33 }
 0x81c   : > { %2466 = vst [vmem:[%s3155_s20 + $0x10] sm:$0xf] %v2454_v35 }
 0x81d   : > { %v2455_v37 = vsel %vm506_vm2, %v2453_v36, 0.0 }
 0x81e   : > { %2467 = vst [vmem:[%s3155_s20 + $0x18] sm:$0xf] %v2455_v37 }
 0x81f PF: > { %s3959_s4 = sld [smem:[#allocation3_spill]] }
 0x825   : > { %s20_s13 = sadd.s32 1, %s3959_s4  }
 0x826   : > { %p17_p4 = scmp.ge.s32.totalorder %s20_s13, 4  }
 0x828   :  { %19 = sbr.rel (!%p17_p4) target bundleno = 10 (0xa), region = 93 }

</bundles_post_ra>
